<compile_context>
chip_gen: v7x
topology: tpu7x:2x2x1
jax: 0.10.0
libtpu: 0.0.40
codegen_flags: <defaults>
</compile_context>

<pallas_src>
import numpy as np
import jax
import jax.numpy as jnp
from jax.experimental import pallas as pl
from jax.experimental.pallas import tpu as pltpu

# ---------------- model config (synthetic small ESM-like encoder) -----------
VOCAB = 32     # vocabulary size
D = 32         # hidden size
H = 2          # attention heads
DH = D // H    # head dim
F = 64         # FFN intermediate size (zero-padded to FP lanes for the kernel)
FP = 128       # padded FFN width (full lane width)
QKV_N = 256    # fused [q|k|v|qR|kR] projection width (5*D=160, padded to 256)
L = 2          # number of transformer layers
EPS = 1e-5

PARAM_ORDER = ("ln1_g", "ln1_b", "wqkv", "bqkv", "wo", "bo",
               "ln2_g", "ln2_b", "w1", "b1", "w2", "b2", "lnf_g", "lnf_b")

# ---------------- tiny deterministic tokenizer (glue, not kernel work) ------
_AA = "LAGVSERTIDPKQNFYMHWCXBUZO"
_AA_TO_ID = {c: 3 + i for i, c in enumerate(_AA)}
CLS_ID, PAD_ID, EOS_ID = 0, 1, 2
# TODO(synk): the real SaProt tokenizer uses structure-aware (AA, foldseek) pairs
# loaded from a checkpoint; this is a deterministic char-level stand-in.


def tokenize(proteins, max_length=512):
    seqs = []
    for p in proteins:
        ids = [CLS_ID] + [_AA_TO_ID.get(c, 3) for c in p] + [EOS_ID]
        seqs.append(ids[:max_length])
    longest = max(len(s) for s in seqs)
    input_ids = np.full((len(seqs), longest), PAD_ID, dtype=np.int32)
    attn = np.zeros((len(seqs), longest), dtype=np.int32)
    for i, s in enumerate(seqs):
        input_ids[i, : len(s)] = s
        attn[i, : len(s)] = 1
    return jnp.asarray(input_ids), jnp.asarray(attn)


# ---------------- constant tables (wrapper-side, shared by kernel & ref) ----
def rotary_tables(S):
    """cos/sin rotary tables pre-tiled across heads -> (S, D)."""
    inv_freq = 1.0 / (10000.0 ** (jnp.arange(0, DH, 2, dtype=jnp.float32) / DH))
    t = jnp.arange(S, dtype=jnp.float32)
    freqs = jnp.outer(t, inv_freq)                       # (S, DH//2)
    emb = jnp.concatenate([freqs, freqs], axis=-1)       # (S, DH)
    cos, sin = jnp.cos(emb), jnp.sin(emb)
    return jnp.tile(cos, (1, H)), jnp.tile(sin, (1, H))  # (S, D)


def rotate_half_matrix():
    """Signed per-head 'rotate_half' permutation: y @ R == rotate_half(y) per head."""
    R = np.zeros((D, D), np.float32)
    for h in range(H):
        for j in range(DH // 2):
            R[h * DH + j + DH // 2, h * DH + j] = -1.0   # first half receives -x2
            R[h * DH + j, h * DH + j + DH // 2] = 1.0    # second half receives +x1
    return jnp.asarray(R, jnp.float32)


# ---------------- shared math (used by both kernel and pure-JAX reference) --
def _layer_norm(x, gamma, beta):
    """Single-pass LayerNorm: var = E[x^2] - mu^2 (one fewer dependent reduction)."""
    mu = jnp.mean(x, axis=-1, keepdims=True)
    ms = jnp.mean(x * x, axis=-1, keepdims=True)
    var = ms - mu * mu
    return (x - mu) * jax.lax.rsqrt(var + EPS) * gamma + beta


def _mm(a, b):
    """MXU matmul: bf16 operands, f32 accumulation."""
    return jnp.dot(a.astype(jnp.bfloat16), b.astype(jnp.bfloat16),
                   preferred_element_type=jnp.float32)


def _encode_batch(x, bias, cos_sd, sin_sd, p, *, bt, s, recip, softmax_dtype):
    """ESM-like encoder over bt sequences flattened into the matmul M dimension.

    x: (bt*s, D) f32, bias: (bt,1,s) f32, cos/sin: (s, D) f32,
    p: dict of stacked per-layer params (jnp arrays for the reference path,
    VMEM refs inside the kernel).
    """
    m = bt * s
    # Hoisted loop-invariant broadcasts (JAX does not CSE broadcast_in_dim).
    cos_b = jnp.broadcast_to(cos_sd[None, :, :], (bt, s, D))
    sin_b = jnp.broadcast_to(sin_sd[None, :, :], (bt, s, D))
    bias_full = jnp.broadcast_to(bias, (bt, s, s))
    lane = jax.lax.broadcasted_iota(jnp.int32, (1, 1, D), 2)

    for l in range(L):  # TODO(synk): switch to lax.fori_loop if L grows large
        # --- pre-LN fused [q|k|v|q@R|k@R] projection (scale + rotate_half folded in) ---
        h = _layer_norm(x, p["ln1_g"][l][None, :], p["ln1_b"][l][None, :])
        qkv = _mm(h, p["wqkv"][l]) + p["bqkv"][l][None, :]          # (m, 256) lane-dense
        q = qkv[:, 0 * D:1 * D].reshape(bt, s, D)
        k = qkv[:, 1 * D:2 * D].reshape(bt, s, D)
        v3 = qkv[:, 2 * D:3 * D].reshape(bt, s, D)
        qr = qkv[:, 3 * D:4 * D].reshape(bt, s, D)                  # rotate_half(q)
        kr = qkv[:, 4 * D:5 * D].reshape(bt, s, D)                  # rotate_half(k)
        q3 = q * cos_b + qr * sin_b
        k3 = k * cos_b + kr * sin_b

        # --- per-head attention; fori_loop bounds the (bt,s,s) live ranges to one head ---
        q3b = q3.astype(jnp.bfloat16)
        k3t = jnp.swapaxes(k3, 1, 2).astype(jnp.bfloat16)           # one transpose / layer
        v3b = v3.astype(jnp.bfloat16)

        def head_body(hd, ctx):
            lo = hd * DH
            mask_h = ((lane >= lo) & (lane < lo + DH)).astype(jnp.float32)  # (1,1,D)
            qh = q3b * mask_h.astype(jnp.bfloat16)
            sc = jnp.einsum("bqd,bdk->bqk", qh, k3t,
                            preferred_element_type=jnp.float32) + bias_full
            sc = sc - jnp.max(sc, axis=-1, keepdims=True)
            pr = jnp.exp(sc.astype(softmax_dtype))                  # bf16 on v6e/v7x only
            denom = jnp.sum(pr, axis=-1, keepdims=True, dtype=jnp.float32)
            ctx_h = jnp.einsum("bqk,bkd->bqd", pr.astype(jnp.bfloat16), v3b,
                               preferred_element_type=jnp.float32)
            return ctx + ctx_h * (recip(denom) * mask_h)

        ctx = jax.lax.fori_loop(0, H, head_body, jnp.zeros((bt, s, D), jnp.float32))
        x = x + _mm(ctx.reshape(m, D), p["wo"][l]) + p["bo"][l][None, :]

        # --- pre-LN feed-forward (intermediate zero-padded to full lane width) ---
        h2 = _layer_norm(x, p["ln2_g"][l][None, :], p["ln2_b"][l][None, :])
        ff = _mm(h2, p["w1"][l]) + p["b1"][l][None, :]
        ff = jax.nn.gelu(ff, approximate=True)  # TODO(synk): ESM uses exact erf GELU
        x = x + _mm(ff, p["w2"][l]) + p["b2"][l][None, :]
    return _layer_norm(x, p["lnf_g"][...], p["lnf_b"][...])         # emb_layer_norm_after


# ---------------- chip-aware knobs -------------------------------------------
def _chip_config():
    """(softmax_bf16, vmem_limit_bytes, num_tensorcores) derived from the chip."""
    try:
        kind = jax.devices()[0].device_kind.lower()
    except Exception:
        kind = ""
    is_v7 = "v7" in kind
    softmax_bf16 = ("v6" in kind) or is_v7          # v5e/older: keep f32 VPU/EUP math
    vmem_cap = 64 * (1 << 20) if is_v7 else 128 * (1 << 20)
    try:
        vmem_cap = int(getattr(pltpu.get_tpu_info(), "vmem_capacity_bytes", vmem_cap))
    except Exception:
        pass
    vmem_limit = min(vmem_cap * 3 // 4, 96 * (1 << 20))   # ~48 MiB on v7x, ~96 MiB v5e/v6e
    num_tc = 2 if is_v7 else 1
    return softmax_bf16, vmem_limit, num_tc


def _choose_bt(B, S, softmax_bf16, vmem_limit, num_tc):
    """Fold several sequences into the MXU M dimension per grid step.

    Budgets the (bt,S,S) softmax intermediates against the scoped VMEM limit and
    keeps >= 2 grid steps per TensorCore so input/output DMAs overlap compute.
    """
    min_steps = 2 * num_tc
    pr_bytes = 2 if softmax_bf16 else 4
    # live per-sequence bytes: sc(f32) + hoisted bias broadcast(f32) + pr +
    # ~16 (S,D) f32 temps + the 256-lane fused projection (+ I/O double buffers)
    per_seq = S * S * (4 + 4 + pr_bytes) + 16 * S * D * 4 + 2 * S * QKV_N * 4
    bt_cap = max(1, int((vmem_limit * 6 // 10) // per_seq))
    bt = min(bt_cap, 16, max(1, B // min_steps))
    return max(1, bt)
    # TODO(synk): for S >= 1024 switch the attention block to an online-softmax
    # (flash-style) tiling over keys instead of materializing (bt,S,S) scores.


# ---------------- Pallas kernel wrapper --------------------------------------
def run_encoder_kernel(x, bias, cos_sd, sin_sd, params, bt, *,
                       vmem_limit_bytes, softmax_dtype):
    B, S, D_ = x.shape
    names = list(PARAM_ORDER)
    param_arrays = [params[n] for n in names]

    def kernel(x_ref, bias_ref, cos_ref, sin_ref, *refs):
        out_ref = refs[-1]
        p = dict(zip(names, refs[:-1]))              # weights stay refs; index per use
        xk = x_ref[...].astype(jnp.float32).reshape(bt * S, D_)   # bf16 DMA -> f32 math
        y = _encode_batch(xk, bias_ref[...], cos_ref[...], sin_ref[...], p,
                          bt=bt, s=S,
                          recip=lambda t: pl.reciprocal(t, approx=True),
                          softmax_dtype=softmax_dtype)
        out_ref[...] = y.reshape(bt, S, D_)

    def invariant(a):
        nd = a.ndim
        return pl.BlockSpec(a.shape, lambda b, _n=nd: (0,) * _n)

    in_specs = [
        pl.BlockSpec((bt, S, D_), lambda b: (b, 0, 0)),   # bf16 embeddings
        pl.BlockSpec((bt, 1, S), lambda b: (b, 0, 0)),    # additive attention bias
        invariant(cos_sd), invariant(sin_sd),
    ] + [invariant(a) for a in param_arrays]

    return pl.pallas_call(
        kernel,
        out_shape=jax.ShapeDtypeStruct((B, S, D_), jnp.float32),
        grid_spec=pltpu.PrefetchScalarGridSpec(
            num_scalar_prefetch=0,
            grid=(B // bt,),
            in_specs=in_specs,
            out_specs=pl.BlockSpec((bt, S, D_), lambda b: (b, 0, 0)),
        ),
        compiler_params=pltpu.CompilerParams(
            dimension_semantics=("parallel",),
            vmem_limit_bytes=vmem_limit_bytes,
        ),
    )(x, bias, cos_sd, sin_sd, *param_arrays)


# ---------------- parameters --------------------------------------------------
def init_params(key):
    ks = jax.random.split(key, 7)

    def nrm(k, shape):
        return jax.random.normal(k, shape, jnp.float32) * 0.02

    return dict(
        emb=nrm(ks[0], (VOCAB, D)),
        ln1_g=jnp.ones((L, D), jnp.float32), ln1_b=jnp.zeros((L, D), jnp.float32),
        wq=nrm(ks[1], (L, D, D)), bq=jnp.zeros((L, D), jnp.float32),
        wk=nrm(ks[2], (L, D, D)), bk=jnp.zeros((L, D), jnp.float32),
        wv=nrm(ks[3], (L, D, D)), bv=jnp.zeros((L, D), jnp.float32),
        wo=nrm(ks[4], (L, D, D)), bo=jnp.zeros((L, D), jnp.float32),
        ln2_g=jnp.ones((L, D), jnp.float32), ln2_b=jnp.zeros((L, D), jnp.float32),
        w1=nrm(ks[5], (L, D, F)), b1=jnp.zeros((L, F), jnp.float32),
        w2=nrm(ks[6], (L, F, D)), b2=jnp.zeros((L, D), jnp.float32),
        lnf_g=jnp.ones((1, D), jnp.float32), lnf_b=jnp.zeros((1, D), jnp.float32),
    )


def prep_params(raw):
    """Fuse [q|k|v|q@R|k@R], fold 1/sqrt(DH) into Wq, pad FFN to 128 lanes,
    cast MXU weights to bf16.  Used identically by kernel and reference.
    R is a signed permutation, so Wq@R in bf16 is bit-identical to permuting
    the bf16 Wq columns (the rotate_half fold loses no precision)."""
    scale = 1.0 / (DH ** 0.5)
    R = rotate_half_matrix()                             # (D, D) f32, entries in {0, +-1}
    wq_s = raw["wq"] * scale
    bq_s = raw["bq"] * scale
    wqr = jnp.einsum("lij,jk->lik", wq_s, R)
    wkr = jnp.einsum("lij,jk->lik", raw["wk"], R)
    bqr = jnp.einsum("li,ij->lj", bq_s, R)
    bkr = jnp.einsum("li,ij->lj", raw["bk"], R)

    wqkv = jnp.zeros((L, D, QKV_N), jnp.float32)
    wqkv = wqkv.at[:, :, 0 * D:1 * D].set(wq_s)
    wqkv = wqkv.at[:, :, 1 * D:2 * D].set(raw["wk"])
    wqkv = wqkv.at[:, :, 2 * D:3 * D].set(raw["wv"])
    wqkv = wqkv.at[:, :, 3 * D:4 * D].set(wqr)
    wqkv = wqkv.at[:, :, 4 * D:5 * D].set(wkr)
    bqkv = jnp.zeros((L, QKV_N), jnp.float32)
    bqkv = bqkv.at[:, 0 * D:1 * D].set(bq_s)
    bqkv = bqkv.at[:, 1 * D:2 * D].set(raw["bk"])
    bqkv = bqkv.at[:, 2 * D:3 * D].set(raw["bv"])
    bqkv = bqkv.at[:, 3 * D:4 * D].set(bqr)
    bqkv = bqkv.at[:, 4 * D:5 * D].set(bkr)

    w1 = jnp.zeros((L, D, FP), jnp.float32).at[:, :, :F].set(raw["w1"])
    b1 = jnp.zeros((L, FP), jnp.float32).at[:, :F].set(raw["b1"])
    w2 = jnp.zeros((L, FP, D), jnp.float32).at[:, :F, :].set(raw["w2"])
    mm = jnp.bfloat16   # MXU operand dtype (halves resident weight bytes)
    return dict(
        ln1_g=raw["ln1_g"], ln1_b=raw["ln1_b"],
        wqkv=wqkv.astype(mm), bqkv=bqkv,
        wo=raw["wo"].astype(mm), bo=raw["bo"],
        ln2_g=raw["ln2_g"], ln2_b=raw["ln2_b"],
        w1=w1.astype(mm), b1=b1,
        w2=w2.astype(mm), b2=raw["b2"],
        lnf_g=raw["lnf_g"], lnf_b=raw["lnf_b"],
    )


# ---------------- wrapper matching Protein3dEncoder.forward ------------------
def protein_3d_encoder(proteins, raw_params, dtype=jnp.float32, use_kernel=True):
    """Mirrors Protein3dEncoder.forward: returns (hidden[:, :-1, :], mask[:, :-1].bool())."""
    input_ids, attention_mask = tokenize(proteins, max_length=512)
    B, S = input_ids.shape
    softmax_bf16, vmem_limit, num_tc = _chip_config()
    softmax_dtype = jnp.bfloat16 if softmax_bf16 else jnp.float32

    # Pad S up to the native sublane granularity (8) so in-kernel
    # (bt,S,D)<->(bt*S,D) reshapes are free; padded keys are masked via the bias.
    Sp = ((S + 7) // 8) * 8
    ids_p = jnp.pad(input_ids, ((0, 0), (0, Sp - S)), constant_values=PAD_ID)
    mask_p = jnp.pad(attention_mask, ((0, 0), (0, Sp - S)))

    # Embedding gather (glue).  bf16 halves the per-step input DMA; both kernel
    # and reference see the identical bf16-rounded embeddings.
    x_bf16 = raw_params["emb"][ids_p].astype(jnp.bfloat16)               # (B, Sp, D)
    # TODO(synk): ESM token_dropout / mask-token rescaling not reproduced (no mask tokens).
    bias = (1.0 - mask_p.astype(jnp.float32))[:, None, :] * (-1e9)       # (B, 1, Sp)
    cos_sd, sin_sd = rotary_tables(Sp)
    params = prep_params(raw_params)

    if use_kernel:
        bt = _choose_bt(B, Sp, softmax_bf16, vmem_limit, num_tc)
        pad = (-B) % bt
        xb, biasb = x_bf16, bias
        if pad:  # pad the batch with dummy sequences so the grid tiles evenly
            xb = jnp.concatenate([x_bf16, jnp.zeros((pad, Sp, D), x_bf16.dtype)], axis=0)
            biasb = jnp.concatenate([bias, jnp.zeros((pad, 1, Sp), bias.dtype)], axis=0)
        hidden = run_encoder_kernel(xb, biasb, cos_sd, sin_sd, params, bt,
                                    vmem_limit_bytes=vmem_limit,
                                    softmax_dtype=softmax_dtype)[:B]
    else:  # pure-JAX reference with identical math (exact softmax divide)
        x_f32 = x_bf16.astype(jnp.float32)
        hidden = _encode_batch(x_f32.reshape(B * Sp, D), bias, cos_sd, sin_sd,
                               params, bt=B, s=Sp, recip=lambda t: 1.0 / t,
                               softmax_dtype=softmax_dtype).reshape(B, Sp, D)

    hidden = hidden[:, :S, :]
    out = hidden[:, :-1, :].astype(dtype)
    return out, attention_mask[:, :-1].astype(bool)


# ---------------- demo -------------------------------------------------------
if __name__ == "__main__":
    key = jax.random.PRNGKey(0)
    raw = init_params(key)

    # Four sequences, padding='longest' -> S = 8 (already a sublane multiple)
    proteins = ["MKVLAE", "ACDG", "WYHKQ", "TTSR"]

    hidden, mask = protein_3d_encoder(proteins, raw, dtype=jnp.float32, use_kernel=True)
    hidden = jax.block_until_ready(hidden)
    mask = jax.block_until_ready(mask)

    ref_hidden, ref_mask = protein_3d_encoder(proteins, raw, dtype=jnp.float32,
                                              use_kernel=False)
    ref_hidden = jax.block_until_ready(ref_hidden)

    assert hidden.shape == (4, 7, D), hidden.shape
    assert mask.shape == (4, 7) and mask.dtype == jnp.bool_, (mask.shape, mask.dtype)
    assert bool(jnp.all(jnp.isfinite(hidden)))
    assert bool(jnp.allclose(hidden, ref_hidden, atol=5e-2, rtol=5e-2))
    assert bool(jnp.array_equal(mask, ref_mask))

    print("KERNEL_OK")
</pallas_src>

<mosaic_0001>
module attributes {stable_mosaic.version = 11 : i64} {
  func.func @kernel(%arg0: i32, %arg1: memref<2x8x32xbf16, #tpu.memory_space<vmem>>, %arg2: memref<2x1x8xf32, #tpu.memory_space<vmem>>, %arg3: memref<8x32xf32, #tpu.memory_space<vmem>>, %arg4: memref<8x32xf32, #tpu.memory_space<vmem>>, %arg5: memref<2x32xf32, #tpu.memory_space<vmem>>, %arg6: memref<2x32xf32, #tpu.memory_space<vmem>>, %arg7: memref<2x32x256xbf16, #tpu.memory_space<vmem>>, %arg8: memref<2x256xf32, #tpu.memory_space<vmem>>, %arg9: memref<2x32x32xbf16, #tpu.memory_space<vmem>>, %arg10: memref<2x32xf32, #tpu.memory_space<vmem>>, %arg11: memref<2x32xf32, #tpu.memory_space<vmem>>, %arg12: memref<2x32xf32, #tpu.memory_space<vmem>>, %arg13: memref<2x32x128xbf16, #tpu.memory_space<vmem>>, %arg14: memref<2x128xf32, #tpu.memory_space<vmem>>, %arg15: memref<2x128x32xbf16, #tpu.memory_space<vmem>>, %arg16: memref<2x32xf32, #tpu.memory_space<vmem>>, %arg17: memref<1x32xf32, #tpu.memory_space<vmem>>, %arg18: memref<1x32xf32, #tpu.memory_space<vmem>>, %arg19: memref<2x8x32xf32, #tpu.memory_space<vmem>>) attributes {dimension_semantics = [#tpu.dimension_semantics<parallel>], iteration_bounds = array<i64: 2>, scalar_prefetch = 0 : i64, scratch_operands = 0 : i64, tpu.core_type = #tpu.core_type<tc>, window_params = [{transform_indices = @transform_0, window_bounds = array<i64: 2, 8, 32>}, {transform_indices = @transform_1, window_bounds = array<i64: 2, 1, 8>}, {pipeline_mode = #tpu.pipeline_mode<synchronous>, transform_indices = @transform_2, window_bounds = array<i64: 8, 32>}, {pipeline_mode = #tpu.pipeline_mode<synchronous>, transform_indices = @transform_3, window_bounds = array<i64: 8, 32>}, {pipeline_mode = #tpu.pipeline_mode<synchronous>, transform_indices = @transform_4, window_bounds = array<i64: 2, 32>}, {pipeline_mode = #tpu.pipeline_mode<synchronous>, transform_indices = @transform_5, window_bounds = array<i64: 2, 32>}, {pipeline_mode = #tpu.pipeline_mode<synchronous>, transform_indices = @transform_6, window_bounds = array<i64: 2, 32, 256>}, {pipeline_mode = #tpu.pipeline_mode<synchronous>, transform_indices = @transform_7, window_bounds = array<i64: 2, 256>}, {pipeline_mode = #tpu.pipeline_mode<synchronous>, transform_indices = @transform_8, window_bounds = array<i64: 2, 32, 32>}, {pipeline_mode = #tpu.pipeline_mode<synchronous>, transform_indices = @transform_9, window_bounds = array<i64: 2, 32>}, {pipeline_mode = #tpu.pipeline_mode<synchronous>, transform_indices = @transform_10, window_bounds = array<i64: 2, 32>}, {pipeline_mode = #tpu.pipeline_mode<synchronous>, transform_indices = @transform_11, window_bounds = array<i64: 2, 32>}, {pipeline_mode = #tpu.pipeline_mode<synchronous>, transform_indices = @transform_12, window_bounds = array<i64: 2, 32, 128>}, {pipeline_mode = #tpu.pipeline_mode<synchronous>, transform_indices = @transform_13, window_bounds = array<i64: 2, 128>}, {pipeline_mode = #tpu.pipeline_mode<synchronous>, transform_indices = @transform_14, window_bounds = array<i64: 2, 128, 32>}, {pipeline_mode = #tpu.pipeline_mode<synchronous>, transform_indices = @transform_15, window_bounds = array<i64: 2, 32>}, {pipeline_mode = #tpu.pipeline_mode<synchronous>, transform_indices = @transform_16, window_bounds = array<i64: 1, 32>}, {pipeline_mode = #tpu.pipeline_mode<synchronous>, transform_indices = @transform_17, window_bounds = array<i64: 1, 32>}, {transform_indices = @transform_18, window_bounds = array<i64: 2, 8, 32>}]} {
    %c0 = arith.constant 0 : index
    %c0_0 = arith.constant 0 : index
    %c0_1 = arith.constant 0 : index
    %0 = vector.load %arg1[%c0, %c0_0, %c0_1] : memref<2x8x32xbf16, #tpu.memory_space<vmem>>, vector<2x8x32xbf16>
    %1 = arith.extf %0 : vector<2x8x32xbf16> to vector<2x8x32xf32>
    %2 = vector.shape_cast %1 : vector<2x8x32xf32> to vector<16x32xf32>
    %c0_2 = arith.constant 0 : index
    %c0_3 = arith.constant 0 : index
    %c0_4 = arith.constant 0 : index
    %3 = vector.load %arg2[%c0_2, %c0_3, %c0_4] : memref<2x1x8xf32, #tpu.memory_space<vmem>>, vector<2x1x8xf32>
    %c0_5 = arith.constant 0 : index
    %c0_6 = arith.constant 0 : index
    %4 = vector.load %arg3[%c0_5, %c0_6] : memref<8x32xf32, #tpu.memory_space<vmem>>, vector<8x32xf32>
    %c0_7 = arith.constant 0 : index
    %c0_8 = arith.constant 0 : index
    %5 = vector.load %arg4[%c0_7, %c0_8] : memref<8x32xf32, #tpu.memory_space<vmem>>, vector<8x32xf32>
    %6 = vector.shape_cast %4 : vector<8x32xf32> to vector<1x8x32xf32>
    %7 = vector.shape_cast %6 : vector<1x8x32xf32> to vector<1x8x32xf32>
    %8 = vector.broadcast %7 : vector<1x8x32xf32> to vector<2x8x32xf32>
    %9 = vector.shape_cast %5 : vector<8x32xf32> to vector<1x8x32xf32>
    %10 = vector.shape_cast %9 : vector<1x8x32xf32> to vector<1x8x32xf32>
    %11 = vector.broadcast %10 : vector<1x8x32xf32> to vector<2x8x32xf32>
    %12 = vector.shape_cast %3 : vector<2x1x8xf32> to vector<2x1x8xf32>
    %13 = vector.broadcast %12 : vector<2x1x8xf32> to vector<2x8x8xf32>
    %14 = tpu.iota {dimensions = array<i32: 2>} : vector<1x1x32xi32>
    %c0_9 = arith.constant 0 : index
    %c0_10 = arith.constant 0 : index
    %15 = vector.load %arg5[%c0_9, %c0_10] : memref<2x32xf32, #tpu.memory_space<vmem>>, vector<1x32xf32>
    %16 = vector.shape_cast %15 : vector<1x32xf32> to vector<32xf32>
    %17 = vector.shape_cast %16 : vector<32xf32> to vector<1x32xf32>
    %c0_11 = arith.constant 0 : index
    %c0_12 = arith.constant 0 : index
    %18 = vector.load %arg6[%c0_11, %c0_12] : memref<2x32xf32, #tpu.memory_space<vmem>>, vector<1x32xf32>
    %19 = vector.shape_cast %18 : vector<1x32xf32> to vector<32xf32>
    %20 = vector.shape_cast %19 : vector<32xf32> to vector<1x32xf32>
    %cst = arith.constant dense<0.000000e+00> : vector<16xf32>
    %21 = vector.multi_reduction <add>, %2, %cst [1] : vector<16x32xf32> to vector<16xf32>
    %22 = vector.shape_cast %21 : vector<16xf32> to vector<16x1xf32>
    %cst_13 = arith.constant 3.200000e+01 : f32
    %23 = vector.broadcast %cst_13 : f32 to vector<16x1xf32>
    %24 = arith.divf %22, %23 : vector<16x1xf32>
    %25 = arith.mulf %2, %2 : vector<16x32xf32>
    %cst_14 = arith.constant dense<0.000000e+00> : vector<16xf32>
    %26 = vector.multi_reduction <add>, %25, %cst_14 [1] : vector<16x32xf32> to vector<16xf32>
    %27 = vector.shape_cast %26 : vector<16xf32> to vector<16x1xf32>
    %cst_15 = arith.constant 3.200000e+01 : f32
    %28 = vector.broadcast %cst_15 : f32 to vector<16x1xf32>
    %29 = arith.divf %27, %28 : vector<16x1xf32>
    %30 = arith.mulf %24, %24 : vector<16x1xf32>
    %31 = arith.subf %29, %30 : vector<16x1xf32>
    %32 = vector.broadcast %24 : vector<16x1xf32> to vector<16x32xf32>
    %33 = arith.subf %2, %32 : vector<16x32xf32>
    %cst_16 = arith.constant 9.99999974E-6 : f32
    %34 = vector.broadcast %cst_16 : f32 to vector<16x1xf32>
    %35 = arith.addf %31, %34 : vector<16x1xf32>
    %36 = math.rsqrt %35 : vector<16x1xf32>
    %37 = vector.broadcast %36 : vector<16x1xf32> to vector<16x32xf32>
    %38 = arith.mulf %33, %37 : vector<16x32xf32>
    %39 = vector.broadcast %17 : vector<1x32xf32> to vector<16x32xf32>
    %40 = arith.mulf %38, %39 : vector<16x32xf32>
    %41 = vector.broadcast %20 : vector<1x32xf32> to vector<16x32xf32>
    %42 = arith.addf %40, %41 : vector<16x32xf32>
    %c0_17 = arith.constant 0 : index
    %c0_18 = arith.constant 0 : index
    %c0_19 = arith.constant 0 : index
    %43 = vector.load %arg7[%c0_17, %c0_18, %c0_19] : memref<2x32x256xbf16, #tpu.memory_space<vmem>>, vector<1x32x256xbf16>
    %44 = vector.shape_cast %43 : vector<1x32x256xbf16> to vector<32x256xbf16>
    %45 = arith.truncf %42 : vector<16x32xf32> to vector<16x32xbf16>
    %cst_20 = arith.constant dense<0.000000e+00> : vector<16x256xf32>
    %46 = tpu.matmul %45, %44, %cst_20 {dimension_numbers = #tpu.dot_dimension_numbers<[1], [0], [0], [1], [0, 0, 1, 1], [], []>} : vector<16x32xbf16>, vector<32x256xbf16>, vector<16x256xf32> -> vector<16x256xf32>
    %c0_21 = arith.constant 0 : index
    %c0_22 = arith.constant 0 : index
    %47 = vector.load %arg8[%c0_21, %c0_22] : memref<2x256xf32, #tpu.memory_space<vmem>>, vector<1x256xf32>
    %48 = vector.shape_cast %47 : vector<1x256xf32> to vector<256xf32>
    %49 = vector.shape_cast %48 : vector<256xf32> to vector<1x256xf32>
    %50 = vector.broadcast %49 : vector<1x256xf32> to vector<16x256xf32>
    %51 = arith.addf %46, %50 : vector<16x256xf32>
    %52 = vector.extract_strided_slice %51 {offsets = [0, 0], sizes = [16, 32], strides = [1, 1]} : vector<16x256xf32> to vector<16x32xf32>
    %53 = vector.shape_cast %52 : vector<16x32xf32> to vector<2x8x32xf32>
    %54 = vector.extract_strided_slice %51 {offsets = [0, 32], sizes = [16, 32], strides = [1, 1]} : vector<16x256xf32> to vector<16x32xf32>
    %55 = vector.shape_cast %54 : vector<16x32xf32> to vector<2x8x32xf32>
    %56 = vector.extract_strided_slice %51 {offsets = [0, 64], sizes = [16, 32], strides = [1, 1]} : vector<16x256xf32> to vector<16x32xf32>
    %57 = vector.shape_cast %56 : vector<16x32xf32> to vector<2x8x32xf32>
    %58 = vector.extract_strided_slice %51 {offsets = [0, 96], sizes = [16, 32], strides = [1, 1]} : vector<16x256xf32> to vector<16x32xf32>
    %59 = vector.shape_cast %58 : vector<16x32xf32> to vector<2x8x32xf32>
    %60 = vector.extract_strided_slice %51 {offsets = [0, 128], sizes = [16, 32], strides = [1, 1]} : vector<16x256xf32> to vector<16x32xf32>
    %61 = vector.shape_cast %60 : vector<16x32xf32> to vector<2x8x32xf32>
    %62 = arith.mulf %53, %8 : vector<2x8x32xf32>
    %63 = arith.mulf %59, %11 : vector<2x8x32xf32>
    %64 = arith.addf %62, %63 : vector<2x8x32xf32>
    %65 = arith.mulf %55, %8 : vector<2x8x32xf32>
    %66 = arith.mulf %61, %11 : vector<2x8x32xf32>
    %67 = arith.addf %65, %66 : vector<2x8x32xf32>
    %68 = arith.truncf %64 : vector<2x8x32xf32> to vector<2x8x32xbf16>
    %69 = tpu.transpose %67, [0, 2, 1] : vector<2x8x32xf32> -> vector<2x32x8xf32>
    %70 = arith.truncf %69 : vector<2x32x8xf32> to vector<2x32x8xbf16>
    %71 = arith.truncf %57 : vector<2x8x32xf32> to vector<2x8x32xbf16>
    %cst_23 = arith.constant 0.000000e+00 : f32
    %72 = vector.broadcast %cst_23 : f32 to vector<2x8x32xf32>
    %c0_i32 = arith.constant 0 : i32
    %c2_i32 = arith.constant 2 : i32
    %73 = arith.addi %c0_i32, %c2_i32 : i32
    %c1_i32 = arith.constant 1 : i32
    %74 = scf.for %arg20 = %c0_i32 to %73 step %c1_i32 iter_args(%arg21 = %72) -> (vector<2x8x32xf32>)  : i32 {
      %c16_i32 = arith.constant 16 : i32
      %303 = arith.muli %arg20, %c16_i32 : i32
      %304 = vector.broadcast %303 : i32 to vector<1x1x32xi32>
      %305 = arith.cmpi sge, %14, %304 : vector<1x1x32xi32>
      %c16_i32_118 = arith.constant 16 : i32
      %306 = arith.addi %303, %c16_i32_118 : i32
      %307 = vector.broadcast %306 : i32 to vector<1x1x32xi32>
      %308 = arith.cmpi slt, %14, %307 : vector<1x1x32xi32>
      %309 = arith.andi %305, %308 : vector<1x1x32xi1>
      %310 = arith.extui %309 : vector<1x1x32xi1> to vector<1x1x32xi32>
      %311 = arith.sitofp %310 : vector<1x1x32xi32> to vector<1x1x32xf32>
      %312 = arith.truncf %311 : vector<1x1x32xf32> to vector<1x1x32xbf16>
      %313 = vector.broadcast %312 : vector<1x1x32xbf16> to vector<2x8x32xbf16>
      %314 = arith.mulf %68, %313 : vector<2x8x32xbf16>
      "tpu.trace_start"() <{level = 10 : i32, message = "bqd,bdk->bqk"}> : () -> ()
      %cst_119 = arith.constant dense<0.000000e+00> : vector<2x8x8xf32>
      %315 = tpu.matmul %314, %70, %cst_119 {dimension_numbers = #tpu.dot_dimension_numbers<[2], [1], [1], [2], [0, 0, 0, 1, 1, 2], [0], [0]>} : vector<2x8x32xbf16>, vector<2x32x8xbf16>, vector<2x8x8xf32> -> vector<2x8x8xf32>
      "tpu.trace_stop"() : () -> ()
      %316 = arith.addf %315, %13 : vector<2x8x8xf32>
      %cst_120 = arith.constant dense<0xFF800000> : vector<2x8xf32>
      %317 = vector.multi_reduction <maximumf>, %316, %cst_120 [2] : vector<2x8x8xf32> to vector<2x8xf32>
      %318 = vector.shape_cast %317 : vector<2x8xf32> to vector<2x8x1xf32>
      %319 = vector.broadcast %318 : vector<2x8x1xf32> to vector<2x8x8xf32>
      %320 = arith.subf %316, %319 : vector<2x8x8xf32>
      %321 = math.exp %320 : vector<2x8x8xf32>
      %cst_121 = arith.constant dense<0.000000e+00> : vector<2x8xf32>
      %322 = vector.multi_reduction <add>, %321, %cst_121 [2] : vector<2x8x8xf32> to vector<2x8xf32>
      %323 = vector.shape_cast %322 : vector<2x8xf32> to vector<2x8x1xf32>
      %324 = arith.truncf %321 : vector<2x8x8xf32> to vector<2x8x8xbf16>
      "tpu.trace_start"() <{level = 10 : i32, message = "bqk,bkd->bqd"}> : () -> ()
      %cst_122 = arith.constant dense<0.000000e+00> : vector<2x8x32xf32>
      %325 = tpu.matmul %324, %71, %cst_122 {dimension_numbers = #tpu.dot_dimension_numbers<[2], [1], [1], [2], [0, 0, 0, 1, 1, 2], [0], [0]>} : vector<2x8x8xbf16>, vector<2x8x32xbf16>, vector<2x8x32xf32> -> vector<2x8x32xf32>
      "tpu.trace_stop"() : () -> ()
      %326 = tpu.reciprocal %323 {approx = true} : vector<2x8x1xf32> -> vector<2x8x1xf32>
      %327 = vector.broadcast %326 : vector<2x8x1xf32> to vector<2x8x32xf32>
      %328 = vector.broadcast %311 : vector<1x1x32xf32> to vector<2x8x32xf32>
      %329 = arith.mulf %327, %328 : vector<2x8x32xf32>
      %330 = arith.mulf %325, %329 : vector<2x8x32xf32>
      %331 = arith.addf %arg21, %330 : vector<2x8x32xf32>
      scf.yield %331 : vector<2x8x32xf32>
    }
    %c2_i32_24 = arith.constant 2 : i32
    %75 = vector.shape_cast %74 : vector<2x8x32xf32> to vector<16x32xf32>
    %c0_25 = arith.constant 0 : index
    %c0_26 = arith.constant 0 : index
    %c0_27 = arith.constant 0 : index
    %76 = vector.load %arg9[%c0_25, %c0_26, %c0_27] : memref<2x32x32xbf16, #tpu.memory_space<vmem>>, vector<1x32x32xbf16>
    %77 = vector.shape_cast %76 : vector<1x32x32xbf16> to vector<32x32xbf16>
    %78 = arith.truncf %75 : vector<16x32xf32> to vector<16x32xbf16>
    %cst_28 = arith.constant dense<0.000000e+00> : vector<16x32xf32>
    %79 = tpu.matmul %78, %77, %cst_28 {dimension_numbers = #tpu.dot_dimension_numbers<[1], [0], [0], [1], [0, 0, 1, 1], [], []>} : vector<16x32xbf16>, vector<32x32xbf16>, vector<16x32xf32> -> vector<16x32xf32>
    %80 = arith.addf %2, %79 : vector<16x32xf32>
    %c0_29 = arith.constant 0 : index
    %c0_30 = arith.constant 0 : index
    %81 = vector.load %arg10[%c0_29, %c0_30] : memref<2x32xf32, #tpu.memory_space<vmem>>, vector<1x32xf32>
    %82 = vector.shape_cast %81 : vector<1x32xf32> to vector<32xf32>
    %83 = vector.shape_cast %82 : vector<32xf32> to vector<1x32xf32>
    %84 = vector.broadcast %83 : vector<1x32xf32> to vector<16x32xf32>
    %85 = arith.addf %80, %84 : vector<16x32xf32>
    %c0_31 = arith.constant 0 : index
    %c0_32 = arith.constant 0 : index
    %86 = vector.load %arg11[%c0_31, %c0_32] : memref<2x32xf32, #tpu.memory_space<vmem>>, vector<1x32xf32>
    %87 = vector.shape_cast %86 : vector<1x32xf32> to vector<32xf32>
    %88 = vector.shape_cast %87 : vector<32xf32> to vector<1x32xf32>
    %c0_33 = arith.constant 0 : index
    %c0_34 = arith.constant 0 : index
    %89 = vector.load %arg12[%c0_33, %c0_34] : memref<2x32xf32, #tpu.memory_space<vmem>>, vector<1x32xf32>
    %90 = vector.shape_cast %89 : vector<1x32xf32> to vector<32xf32>
    %91 = vector.shape_cast %90 : vector<32xf32> to vector<1x32xf32>
    %cst_35 = arith.constant dense<0.000000e+00> : vector<16xf32>
    %92 = vector.multi_reduction <add>, %85, %cst_35 [1] : vector<16x32xf32> to vector<16xf32>
    %93 = vector.shape_cast %92 : vector<16xf32> to vector<16x1xf32>
    %cst_36 = arith.constant 3.200000e+01 : f32
    %94 = vector.broadcast %cst_36 : f32 to vector<16x1xf32>
    %95 = arith.divf %93, %94 : vector<16x1xf32>
    %96 = arith.mulf %85, %85 : vector<16x32xf32>
    %cst_37 = arith.constant dense<0.000000e+00> : vector<16xf32>
    %97 = vector.multi_reduction <add>, %96, %cst_37 [1] : vector<16x32xf32> to vector<16xf32>
    %98 = vector.shape_cast %97 : vector<16xf32> to vector<16x1xf32>
    %cst_38 = arith.constant 3.200000e+01 : f32
    %99 = vector.broadcast %cst_38 : f32 to vector<16x1xf32>
    %100 = arith.divf %98, %99 : vector<16x1xf32>
    %101 = arith.mulf %95, %95 : vector<16x1xf32>
    %102 = arith.subf %100, %101 : vector<16x1xf32>
    %103 = vector.broadcast %95 : vector<16x1xf32> to vector<16x32xf32>
    %104 = arith.subf %85, %103 : vector<16x32xf32>
    %cst_39 = arith.constant 9.99999974E-6 : f32
    %105 = vector.broadcast %cst_39 : f32 to vector<16x1xf32>
    %106 = arith.addf %102, %105 : vector<16x1xf32>
    %107 = math.rsqrt %106 : vector<16x1xf32>
    %108 = vector.broadcast %107 : vector<16x1xf32> to vector<16x32xf32>
    %109 = arith.mulf %104, %108 : vector<16x32xf32>
    %110 = vector.broadcast %88 : vector<1x32xf32> to vector<16x32xf32>
    %111 = arith.mulf %109, %110 : vector<16x32xf32>
    %112 = vector.broadcast %91 : vector<1x32xf32> to vector<16x32xf32>
    %113 = arith.addf %111, %112 : vector<16x32xf32>
    %c0_40 = arith.constant 0 : index
    %c0_41 = arith.constant 0 : index
    %c0_42 = arith.constant 0 : index
    %114 = vector.load %arg13[%c0_40, %c0_41, %c0_42] : memref<2x32x128xbf16, #tpu.memory_space<vmem>>, vector<1x32x128xbf16>
    %115 = vector.shape_cast %114 : vector<1x32x128xbf16> to vector<32x128xbf16>
    %116 = arith.truncf %113 : vector<16x32xf32> to vector<16x32xbf16>
    %cst_43 = arith.constant dense<0.000000e+00> : vector<16x128xf32>
    %117 = tpu.matmul %116, %115, %cst_43 {dimension_numbers = #tpu.dot_dimension_numbers<[1], [0], [0], [1], [0, 0, 1, 1], [], []>} : vector<16x32xbf16>, vector<32x128xbf16>, vector<16x128xf32> -> vector<16x128xf32>
    %c0_44 = arith.constant 0 : index
    %c0_45 = arith.constant 0 : index
    %118 = vector.load %arg14[%c0_44, %c0_45] : memref<2x128xf32, #tpu.memory_space<vmem>>, vector<1x128xf32>
    %119 = vector.shape_cast %118 : vector<1x128xf32> to vector<128xf32>
    %120 = vector.shape_cast %119 : vector<128xf32> to vector<1x128xf32>
    %121 = vector.broadcast %120 : vector<1x128xf32> to vector<16x128xf32>
    %122 = arith.addf %117, %121 : vector<16x128xf32>
    %123 = arith.mulf %122, %122 : vector<16x128xf32>
    %124 = arith.mulf %122, %123 : vector<16x128xf32>
    %cst_46 = arith.constant 4.471500e-02 : f32
    %125 = vector.broadcast %cst_46 : f32 to vector<16x128xf32>
    %126 = arith.mulf %125, %124 : vector<16x128xf32>
    %127 = arith.addf %122, %126 : vector<16x128xf32>
    %cst_47 = arith.constant 0.797884583 : f32
    %128 = vector.broadcast %cst_47 : f32 to vector<16x128xf32>
    %129 = arith.mulf %128, %127 : vector<16x128xf32>
    %130 = math.tanh %129 : vector<16x128xf32>
    %cst_48 = arith.constant 1.000000e+00 : f32
    %131 = vector.broadcast %cst_48 : f32 to vector<16x128xf32>
    %132 = arith.addf %131, %130 : vector<16x128xf32>
    %cst_49 = arith.constant 5.000000e-01 : f32
    %133 = vector.broadcast %cst_49 : f32 to vector<16x128xf32>
    %134 = arith.mulf %133, %132 : vector<16x128xf32>
    %135 = arith.mulf %122, %134 : vector<16x128xf32>
    %c0_50 = arith.constant 0 : index
    %c0_51 = arith.constant 0 : index
    %c0_52 = arith.constant 0 : index
    %136 = vector.load %arg15[%c0_50, %c0_51, %c0_52] : memref<2x128x32xbf16, #tpu.memory_space<vmem>>, vector<1x128x32xbf16>
    %137 = vector.shape_cast %136 : vector<1x128x32xbf16> to vector<128x32xbf16>
    %138 = arith.truncf %135 : vector<16x128xf32> to vector<16x128xbf16>
    %cst_53 = arith.constant dense<0.000000e+00> : vector<16x32xf32>
    %139 = tpu.matmul %138, %137, %cst_53 {dimension_numbers = #tpu.dot_dimension_numbers<[1], [0], [0], [1], [0, 0, 1, 1], [], []>} : vector<16x128xbf16>, vector<128x32xbf16>, vector<16x32xf32> -> vector<16x32xf32>
    %140 = arith.addf %85, %139 : vector<16x32xf32>
    %c0_54 = arith.constant 0 : index
    %c0_55 = arith.constant 0 : index
    %141 = vector.load %arg16[%c0_54, %c0_55] : memref<2x32xf32, #tpu.memory_space<vmem>>, vector<1x32xf32>
    %142 = vector.shape_cast %141 : vector<1x32xf32> to vector<32xf32>
    %143 = vector.shape_cast %142 : vector<32xf32> to vector<1x32xf32>
    %144 = vector.broadcast %143 : vector<1x32xf32> to vector<16x32xf32>
    %145 = arith.addf %140, %144 : vector<16x32xf32>
    %c1 = arith.constant 1 : index
    %c0_56 = arith.constant 0 : index
    %146 = vector.load %arg5[%c1, %c0_56] : memref<2x32xf32, #tpu.memory_space<vmem>>, vector<1x32xf32>
    %147 = vector.shape_cast %146 : vector<1x32xf32> to vector<32xf32>
    %148 = vector.shape_cast %147 : vector<32xf32> to vector<1x32xf32>
    %c1_57 = arith.constant 1 : index
    %c0_58 = arith.constant 0 : index
    %149 = vector.load %arg6[%c1_57, %c0_58] : memref<2x32xf32, #tpu.memory_space<vmem>>, vector<1x32xf32>
    %150 = vector.shape_cast %149 : vector<1x32xf32> to vector<32xf32>
    %151 = vector.shape_cast %150 : vector<32xf32> to vector<1x32xf32>
    %cst_59 = arith.constant dense<0.000000e+00> : vector<16xf32>
    %152 = vector.multi_reduction <add>, %145, %cst_59 [1] : vector<16x32xf32> to vector<16xf32>
    %153 = vector.shape_cast %152 : vector<16xf32> to vector<16x1xf32>
    %cst_60 = arith.constant 3.200000e+01 : f32
    %154 = vector.broadcast %cst_60 : f32 to vector<16x1xf32>
    %155 = arith.divf %153, %154 : vector<16x1xf32>
    %156 = arith.mulf %145, %145 : vector<16x32xf32>
    %cst_61 = arith.constant dense<0.000000e+00> : vector<16xf32>
    %157 = vector.multi_reduction <add>, %156, %cst_61 [1] : vector<16x32xf32> to vector<16xf32>
    %158 = vector.shape_cast %157 : vector<16xf32> to vector<16x1xf32>
    %cst_62 = arith.constant 3.200000e+01 : f32
    %159 = vector.broadcast %cst_62 : f32 to vector<16x1xf32>
    %160 = arith.divf %158, %159 : vector<16x1xf32>
    %161 = arith.mulf %155, %155 : vector<16x1xf32>
    %162 = arith.subf %160, %161 : vector<16x1xf32>
    %163 = vector.broadcast %155 : vector<16x1xf32> to vector<16x32xf32>
    %164 = arith.subf %145, %163 : vector<16x32xf32>
    %cst_63 = arith.constant 9.99999974E-6 : f32
    %165 = vector.broadcast %cst_63 : f32 to vector<16x1xf32>
    %166 = arith.addf %162, %165 : vector<16x1xf32>
    %167 = math.rsqrt %166 : vector<16x1xf32>
    %168 = vector.broadcast %167 : vector<16x1xf32> to vector<16x32xf32>
    %169 = arith.mulf %164, %168 : vector<16x32xf32>
    %170 = vector.broadcast %148 : vector<1x32xf32> to vector<16x32xf32>
    %171 = arith.mulf %169, %170 : vector<16x32xf32>
    %172 = vector.broadcast %151 : vector<1x32xf32> to vector<16x32xf32>
    %173 = arith.addf %171, %172 : vector<16x32xf32>
    %c1_64 = arith.constant 1 : index
    %c0_65 = arith.constant 0 : index
    %c0_66 = arith.constant 0 : index
    %174 = vector.load %arg7[%c1_64, %c0_65, %c0_66] : memref<2x32x256xbf16, #tpu.memory_space<vmem>>, vector<1x32x256xbf16>
    %175 = vector.shape_cast %174 : vector<1x32x256xbf16> to vector<32x256xbf16>
    %176 = arith.truncf %173 : vector<16x32xf32> to vector<16x32xbf16>
    %cst_67 = arith.constant dense<0.000000e+00> : vector<16x256xf32>
    %177 = tpu.matmul %176, %175, %cst_67 {dimension_numbers = #tpu.dot_dimension_numbers<[1], [0], [0], [1], [0, 0, 1, 1], [], []>} : vector<16x32xbf16>, vector<32x256xbf16>, vector<16x256xf32> -> vector<16x256xf32>
    %c1_68 = arith.constant 1 : index
    %c0_69 = arith.constant 0 : index
    %178 = vector.load %arg8[%c1_68, %c0_69] : memref<2x256xf32, #tpu.memory_space<vmem>>, vector<1x256xf32>
    %179 = vector.shape_cast %178 : vector<1x256xf32> to vector<256xf32>
    %180 = vector.shape_cast %179 : vector<256xf32> to vector<1x256xf32>
    %181 = vector.broadcast %180 : vector<1x256xf32> to vector<16x256xf32>
    %182 = arith.addf %177, %181 : vector<16x256xf32>
    %183 = vector.extract_strided_slice %182 {offsets = [0, 0], sizes = [16, 32], strides = [1, 1]} : vector<16x256xf32> to vector<16x32xf32>
    %184 = vector.shape_cast %183 : vector<16x32xf32> to vector<2x8x32xf32>
    %185 = vector.extract_strided_slice %182 {offsets = [0, 32], sizes = [16, 32], strides = [1, 1]} : vector<16x256xf32> to vector<16x32xf32>
    %186 = vector.shape_cast %185 : vector<16x32xf32> to vector<2x8x32xf32>
    %187 = vector.extract_strided_slice %182 {offsets = [0, 64], sizes = [16, 32], strides = [1, 1]} : vector<16x256xf32> to vector<16x32xf32>
    %188 = vector.shape_cast %187 : vector<16x32xf32> to vector<2x8x32xf32>
    %189 = vector.extract_strided_slice %182 {offsets = [0, 96], sizes = [16, 32], strides = [1, 1]} : vector<16x256xf32> to vector<16x32xf32>
    %190 = vector.shape_cast %189 : vector<16x32xf32> to vector<2x8x32xf32>
    %191 = vector.extract_strided_slice %182 {offsets = [0, 128], sizes = [16, 32], strides = [1, 1]} : vector<16x256xf32> to vector<16x32xf32>
    %192 = vector.shape_cast %191 : vector<16x32xf32> to vector<2x8x32xf32>
    %193 = arith.mulf %184, %8 : vector<2x8x32xf32>
    %194 = arith.mulf %190, %11 : vector<2x8x32xf32>
    %195 = arith.addf %193, %194 : vector<2x8x32xf32>
    %196 = arith.mulf %186, %8 : vector<2x8x32xf32>
    %197 = arith.mulf %192, %11 : vector<2x8x32xf32>
    %198 = arith.addf %196, %197 : vector<2x8x32xf32>
    %199 = arith.truncf %195 : vector<2x8x32xf32> to vector<2x8x32xbf16>
    %200 = tpu.transpose %198, [0, 2, 1] : vector<2x8x32xf32> -> vector<2x32x8xf32>
    %201 = arith.truncf %200 : vector<2x32x8xf32> to vector<2x32x8xbf16>
    %202 = arith.truncf %188 : vector<2x8x32xf32> to vector<2x8x32xbf16>
    %cst_70 = arith.constant 0.000000e+00 : f32
    %203 = vector.broadcast %cst_70 : f32 to vector<2x8x32xf32>
    %c0_i32_71 = arith.constant 0 : i32
    %c2_i32_72 = arith.constant 2 : i32
    %204 = arith.addi %c0_i32_71, %c2_i32_72 : i32
    %c1_i32_73 = arith.constant 1 : i32
    %205 = scf.for %arg20 = %c0_i32_71 to %204 step %c1_i32_73 iter_args(%arg21 = %203) -> (vector<2x8x32xf32>)  : i32 {
      %c16_i32 = arith.constant 16 : i32
      %303 = arith.muli %arg20, %c16_i32 : i32
      %304 = vector.broadcast %303 : i32 to vector<1x1x32xi32>
      %305 = arith.cmpi sge, %14, %304 : vector<1x1x32xi32>
      %c16_i32_118 = arith.constant 16 : i32
      %306 = arith.addi %303, %c16_i32_118 : i32
      %307 = vector.broadcast %306 : i32 to vector<1x1x32xi32>
      %308 = arith.cmpi slt, %14, %307 : vector<1x1x32xi32>
      %309 = arith.andi %305, %308 : vector<1x1x32xi1>
      %310 = arith.extui %309 : vector<1x1x32xi1> to vector<1x1x32xi32>
      %311 = arith.sitofp %310 : vector<1x1x32xi32> to vector<1x1x32xf32>
      %312 = arith.truncf %311 : vector<1x1x32xf32> to vector<1x1x32xbf16>
      %313 = vector.broadcast %312 : vector<1x1x32xbf16> to vector<2x8x32xbf16>
      %314 = arith.mulf %199, %313 : vector<2x8x32xbf16>
      "tpu.trace_start"() <{level = 10 : i32, message = "bqd,bdk->bqk"}> : () -> ()
      %cst_119 = arith.constant dense<0.000000e+00> : vector<2x8x8xf32>
      %315 = tpu.matmul %314, %201, %cst_119 {dimension_numbers = #tpu.dot_dimension_numbers<[2], [1], [1], [2], [0, 0, 0, 1, 1, 2], [0], [0]>} : vector<2x8x32xbf16>, vector<2x32x8xbf16>, vector<2x8x8xf32> -> vector<2x8x8xf32>
      "tpu.trace_stop"() : () -> ()
      %316 = arith.addf %315, %13 : vector<2x8x8xf32>
      %cst_120 = arith.constant dense<0xFF800000> : vector<2x8xf32>
      %317 = vector.multi_reduction <maximumf>, %316, %cst_120 [2] : vector<2x8x8xf32> to vector<2x8xf32>
      %318 = vector.shape_cast %317 : vector<2x8xf32> to vector<2x8x1xf32>
      %319 = vector.broadcast %318 : vector<2x8x1xf32> to vector<2x8x8xf32>
      %320 = arith.subf %316, %319 : vector<2x8x8xf32>
      %321 = math.exp %320 : vector<2x8x8xf32>
      %cst_121 = arith.constant dense<0.000000e+00> : vector<2x8xf32>
      %322 = vector.multi_reduction <add>, %321, %cst_121 [2] : vector<2x8x8xf32> to vector<2x8xf32>
      %323 = vector.shape_cast %322 : vector<2x8xf32> to vector<2x8x1xf32>
      %324 = arith.truncf %321 : vector<2x8x8xf32> to vector<2x8x8xbf16>
      "tpu.trace_start"() <{level = 10 : i32, message = "bqk,bkd->bqd"}> : () -> ()
      %cst_122 = arith.constant dense<0.000000e+00> : vector<2x8x32xf32>
      %325 = tpu.matmul %324, %202, %cst_122 {dimension_numbers = #tpu.dot_dimension_numbers<[2], [1], [1], [2], [0, 0, 0, 1, 1, 2], [0], [0]>} : vector<2x8x8xbf16>, vector<2x8x32xbf16>, vector<2x8x32xf32> -> vector<2x8x32xf32>
      "tpu.trace_stop"() : () -> ()
      %326 = tpu.reciprocal %323 {approx = true} : vector<2x8x1xf32> -> vector<2x8x1xf32>
      %327 = vector.broadcast %326 : vector<2x8x1xf32> to vector<2x8x32xf32>
      %328 = vector.broadcast %311 : vector<1x1x32xf32> to vector<2x8x32xf32>
      %329 = arith.mulf %327, %328 : vector<2x8x32xf32>
      %330 = arith.mulf %325, %329 : vector<2x8x32xf32>
      %331 = arith.addf %arg21, %330 : vector<2x8x32xf32>
      scf.yield %331 : vector<2x8x32xf32>
    }
    %c2_i32_74 = arith.constant 2 : i32
    %206 = vector.shape_cast %205 : vector<2x8x32xf32> to vector<16x32xf32>
    %c1_75 = arith.constant 1 : index
    %c0_76 = arith.constant 0 : index
    %c0_77 = arith.constant 0 : index
    %207 = vector.load %arg9[%c1_75, %c0_76, %c0_77] : memref<2x32x32xbf16, #tpu.memory_space<vmem>>, vector<1x32x32xbf16>
    %208 = vector.shape_cast %207 : vector<1x32x32xbf16> to vector<32x32xbf16>
    %209 = arith.truncf %206 : vector<16x32xf32> to vector<16x32xbf16>
    %cst_78 = arith.constant dense<0.000000e+00> : vector<16x32xf32>
    %210 = tpu.matmul %209, %208, %cst_78 {dimension_numbers = #tpu.dot_dimension_numbers<[1], [0], [0], [1], [0, 0, 1, 1], [], []>} : vector<16x32xbf16>, vector<32x32xbf16>, vector<16x32xf32> -> vector<16x32xf32>
    %211 = arith.addf %145, %210 : vector<16x32xf32>
    %c1_79 = arith.constant 1 : index
    %c0_80 = arith.constant 0 : index
    %212 = vector.load %arg10[%c1_79, %c0_80] : memref<2x32xf32, #tpu.memory_space<vmem>>, vector<1x32xf32>
    %213 = vector.shape_cast %212 : vector<1x32xf32> to vector<32xf32>
    %214 = vector.shape_cast %213 : vector<32xf32> to vector<1x32xf32>
    %215 = vector.broadcast %214 : vector<1x32xf32> to vector<16x32xf32>
    %216 = arith.addf %211, %215 : vector<16x32xf32>
    %c1_81 = arith.constant 1 : index
    %c0_82 = arith.constant 0 : index
    %217 = vector.load %arg11[%c1_81, %c0_82] : memref<2x32xf32, #tpu.memory_space<vmem>>, vector<1x32xf32>
    %218 = vector.shape_cast %217 : vector<1x32xf32> to vector<32xf32>
    %219 = vector.shape_cast %218 : vector<32xf32> to vector<1x32xf32>
    %c1_83 = arith.constant 1 : index
    %c0_84 = arith.constant 0 : index
    %220 = vector.load %arg12[%c1_83, %c0_84] : memref<2x32xf32, #tpu.memory_space<vmem>>, vector<1x32xf32>
    %221 = vector.shape_cast %220 : vector<1x32xf32> to vector<32xf32>
    %222 = vector.shape_cast %221 : vector<32xf32> to vector<1x32xf32>
    %cst_85 = arith.constant dense<0.000000e+00> : vector<16xf32>
    %223 = vector.multi_reduction <add>, %216, %cst_85 [1] : vector<16x32xf32> to vector<16xf32>
    %224 = vector.shape_cast %223 : vector<16xf32> to vector<16x1xf32>
    %cst_86 = arith.constant 3.200000e+01 : f32
    %225 = vector.broadcast %cst_86 : f32 to vector<16x1xf32>
    %226 = arith.divf %224, %225 : vector<16x1xf32>
    %227 = arith.mulf %216, %216 : vector<16x32xf32>
    %cst_87 = arith.constant dense<0.000000e+00> : vector<16xf32>
    %228 = vector.multi_reduction <add>, %227, %cst_87 [1] : vector<16x32xf32> to vector<16xf32>
    %229 = vector.shape_cast %228 : vector<16xf32> to vector<16x1xf32>
    %cst_88 = arith.constant 3.200000e+01 : f32
    %230 = vector.broadcast %cst_88 : f32 to vector<16x1xf32>
    %231 = arith.divf %229, %230 : vector<16x1xf32>
    %232 = arith.mulf %226, %226 : vector<16x1xf32>
    %233 = arith.subf %231, %232 : vector<16x1xf32>
    %234 = vector.broadcast %226 : vector<16x1xf32> to vector<16x32xf32>
    %235 = arith.subf %216, %234 : vector<16x32xf32>
    %cst_89 = arith.constant 9.99999974E-6 : f32
    %236 = vector.broadcast %cst_89 : f32 to vector<16x1xf32>
    %237 = arith.addf %233, %236 : vector<16x1xf32>
    %238 = math.rsqrt %237 : vector<16x1xf32>
    %239 = vector.broadcast %238 : vector<16x1xf32> to vector<16x32xf32>
    %240 = arith.mulf %235, %239 : vector<16x32xf32>
    %241 = vector.broadcast %219 : vector<1x32xf32> to vector<16x32xf32>
    %242 = arith.mulf %240, %241 : vector<16x32xf32>
    %243 = vector.broadcast %222 : vector<1x32xf32> to vector<16x32xf32>
    %244 = arith.addf %242, %243 : vector<16x32xf32>
    %c1_90 = arith.constant 1 : index
    %c0_91 = arith.constant 0 : index
    %c0_92 = arith.constant 0 : index
    %245 = vector.load %arg13[%c1_90, %c0_91, %c0_92] : memref<2x32x128xbf16, #tpu.memory_space<vmem>>, vector<1x32x128xbf16>
    %246 = vector.shape_cast %245 : vector<1x32x128xbf16> to vector<32x128xbf16>
    %247 = arith.truncf %244 : vector<16x32xf32> to vector<16x32xbf16>
    %cst_93 = arith.constant dense<0.000000e+00> : vector<16x128xf32>
    %248 = tpu.matmul %247, %246, %cst_93 {dimension_numbers = #tpu.dot_dimension_numbers<[1], [0], [0], [1], [0, 0, 1, 1], [], []>} : vector<16x32xbf16>, vector<32x128xbf16>, vector<16x128xf32> -> vector<16x128xf32>
    %c1_94 = arith.constant 1 : index
    %c0_95 = arith.constant 0 : index
    %249 = vector.load %arg14[%c1_94, %c0_95] : memref<2x128xf32, #tpu.memory_space<vmem>>, vector<1x128xf32>
    %250 = vector.shape_cast %249 : vector<1x128xf32> to vector<128xf32>
    %251 = vector.shape_cast %250 : vector<128xf32> to vector<1x128xf32>
    %252 = vector.broadcast %251 : vector<1x128xf32> to vector<16x128xf32>
    %253 = arith.addf %248, %252 : vector<16x128xf32>
    %254 = arith.mulf %253, %253 : vector<16x128xf32>
    %255 = arith.mulf %253, %254 : vector<16x128xf32>
    %cst_96 = arith.constant 4.471500e-02 : f32
    %256 = vector.broadcast %cst_96 : f32 to vector<16x128xf32>
    %257 = arith.mulf %256, %255 : vector<16x128xf32>
    %258 = arith.addf %253, %257 : vector<16x128xf32>
    %cst_97 = arith.constant 0.797884583 : f32
    %259 = vector.broadcast %cst_97 : f32 to vector<16x128xf32>
    %260 = arith.mulf %259, %258 : vector<16x128xf32>
    %261 = math.tanh %260 : vector<16x128xf32>
    %cst_98 = arith.constant 1.000000e+00 : f32
    %262 = vector.broadcast %cst_98 : f32 to vector<16x128xf32>
    %263 = arith.addf %262, %261 : vector<16x128xf32>
    %cst_99 = arith.constant 5.000000e-01 : f32
    %264 = vector.broadcast %cst_99 : f32 to vector<16x128xf32>
    %265 = arith.mulf %264, %263 : vector<16x128xf32>
    %266 = arith.mulf %253, %265 : vector<16x128xf32>
    %c1_100 = arith.constant 1 : index
    %c0_101 = arith.constant 0 : index
    %c0_102 = arith.constant 0 : index
    %267 = vector.load %arg15[%c1_100, %c0_101, %c0_102] : memref<2x128x32xbf16, #tpu.memory_space<vmem>>, vector<1x128x32xbf16>
    %268 = vector.shape_cast %267 : vector<1x128x32xbf16> to vector<128x32xbf16>
    %269 = arith.truncf %266 : vector<16x128xf32> to vector<16x128xbf16>
    %cst_103 = arith.constant dense<0.000000e+00> : vector<16x32xf32>
    %270 = tpu.matmul %269, %268, %cst_103 {dimension_numbers = #tpu.dot_dimension_numbers<[1], [0], [0], [1], [0, 0, 1, 1], [], []>} : vector<16x128xbf16>, vector<128x32xbf16>, vector<16x32xf32> -> vector<16x32xf32>
    %271 = arith.addf %216, %270 : vector<16x32xf32>
    %c1_104 = arith.constant 1 : index
    %c0_105 = arith.constant 0 : index
    %272 = vector.load %arg16[%c1_104, %c0_105] : memref<2x32xf32, #tpu.memory_space<vmem>>, vector<1x32xf32>
    %273 = vector.shape_cast %272 : vector<1x32xf32> to vector<32xf32>
    %274 = vector.shape_cast %273 : vector<32xf32> to vector<1x32xf32>
    %275 = vector.broadcast %274 : vector<1x32xf32> to vector<16x32xf32>
    %276 = arith.addf %271, %275 : vector<16x32xf32>
    %c0_106 = arith.constant 0 : index
    %c0_107 = arith.constant 0 : index
    %277 = vector.load %arg17[%c0_106, %c0_107] : memref<1x32xf32, #tpu.memory_space<vmem>>, vector<1x32xf32>
    %c0_108 = arith.constant 0 : index
    %c0_109 = arith.constant 0 : index
    %278 = vector.load %arg18[%c0_108, %c0_109] : memref<1x32xf32, #tpu.memory_space<vmem>>, vector<1x32xf32>
    %cst_110 = arith.constant dense<0.000000e+00> : vector<16xf32>
    %279 = vector.multi_reduction <add>, %276, %cst_110 [1] : vector<16x32xf32> to vector<16xf32>
    %280 = vector.shape_cast %279 : vector<16xf32> to vector<16x1xf32>
    %cst_111 = arith.constant 3.200000e+01 : f32
    %281 = vector.broadcast %cst_111 : f32 to vector<16x1xf32>
    %282 = arith.divf %280, %281 : vector<16x1xf32>
    %283 = arith.mulf %276, %276 : vector<16x32xf32>
    %cst_112 = arith.constant dense<0.000000e+00> : vector<16xf32>
    %284 = vector.multi_reduction <add>, %283, %cst_112 [1] : vector<16x32xf32> to vector<16xf32>
    %285 = vector.shape_cast %284 : vector<16xf32> to vector<16x1xf32>
    %cst_113 = arith.constant 3.200000e+01 : f32
    %286 = vector.broadcast %cst_113 : f32 to vector<16x1xf32>
    %287 = arith.divf %285, %286 : vector<16x1xf32>
    %288 = arith.mulf %282, %282 : vector<16x1xf32>
    %289 = arith.subf %287, %288 : vector<16x1xf32>
    %290 = vector.broadcast %282 : vector<16x1xf32> to vector<16x32xf32>
    %291 = arith.subf %276, %290 : vector<16x32xf32>
    %cst_114 = arith.constant 9.99999974E-6 : f32
    %292 = vector.broadcast %cst_114 : f32 to vector<16x1xf32>
    %293 = arith.addf %289, %292 : vector<16x1xf32>
    %294 = math.rsqrt %293 : vector<16x1xf32>
    %295 = vector.broadcast %294 : vector<16x1xf32> to vector<16x32xf32>
    %296 = arith.mulf %291, %295 : vector<16x32xf32>
    %297 = vector.broadcast %277 : vector<1x32xf32> to vector<16x32xf32>
    %298 = arith.mulf %296, %297 : vector<16x32xf32>
    %299 = vector.broadcast %278 : vector<1x32xf32> to vector<16x32xf32>
    %300 = arith.addf %298, %299 : vector<16x32xf32>
    %301 = vector.shape_cast %300 : vector<16x32xf32> to vector<2x8x32xf32>
    %c0_115 = arith.constant 0 : index
    %c0_116 = arith.constant 0 : index
    %c0_117 = arith.constant 0 : index
    %302 = vector.load %arg19[%c0_115, %c0_116, %c0_117] : memref<2x8x32xf32, #tpu.memory_space<vmem>>, vector<2x8x32xf32>
    tpu.vector_store %arg19[%c0_115, %c0_116, %c0_117], %301 {strides = array<i32>} : memref<2x8x32xf32, #tpu.memory_space<vmem>>, vector<2x8x32xf32>,
    return
  }
  func.func @transform_0(%arg0: i32) -> (i32, i32, i32) {
    %c0_i32 = arith.constant 0 : i32
    %c0_i32_0 = arith.constant 0 : i32
    %c0_i32_1 = arith.constant 0 : i32
    return %arg0, %c0_i32, %c0_i32_0 : i32, i32, i32
  }
  func.func @transform_1(%arg0: i32) -> (i32, i32, i32) {
    %c0_i32 = arith.constant 0 : i32
    %c0_i32_0 = arith.constant 0 : i32
    %c0_i32_1 = arith.constant 0 : i32
    return %arg0, %c0_i32, %c0_i32_0 : i32, i32, i32
  }
  func.func @transform_2(%arg0: i32) -> (i32, i32) {
    %c0_i32 = arith.constant 0 : i32
    %c0_i32_0 = arith.constant 0 : i32
    %c0_i32_1 = arith.constant 0 : i32
    return %c0_i32, %c0_i32_0 : i32, i32
  }
  func.func @transform_3(%arg0: i32) -> (i32, i32) {
    %c0_i32 = arith.constant 0 : i32
    %c0_i32_0 = arith.constant 0 : i32
    %c0_i32_1 = arith.constant 0 : i32
    return %c0_i32, %c0_i32_0 : i32, i32
  }
  func.func @transform_4(%arg0: i32) -> (i32, i32) {
    %c0_i32 = arith.constant 0 : i32
    %c0_i32_0 = arith.constant 0 : i32
    %c0_i32_1 = arith.constant 0 : i32
    return %c0_i32, %c0_i32_0 : i32, i32
  }
  func.func @transform_5(%arg0: i32) -> (i32, i32) {
    %c0_i32 = arith.constant 0 : i32
    %c0_i32_0 = arith.constant 0 : i32
    %c0_i32_1 = arith.constant 0 : i32
    return %c0_i32, %c0_i32_0 : i32, i32
  }
  func.func @transform_6(%arg0: i32) -> (i32, i32, i32) {
    %c0_i32 = arith.constant 0 : i32
    %c0_i32_0 = arith.constant 0 : i32
    %c0_i32_1 = arith.constant 0 : i32
    %c0_i32_2 = arith.constant 0 : i32
    return %c0_i32, %c0_i32_0, %c0_i32_1 : i32, i32, i32
  }
  func.func @transform_7(%arg0: i32) -> (i32, i32) {
    %c0_i32 = arith.constant 0 : i32
    %c0_i32_0 = arith.constant 0 : i32
    %c0_i32_1 = arith.constant 0 : i32
    return %c0_i32, %c0_i32_0 : i32, i32
  }
  func.func @transform_8(%arg0: i32) -> (i32, i32, i32) {
    %c0_i32 = arith.constant 0 : i32
    %c0_i32_0 = arith.constant 0 : i32
    %c0_i32_1 = arith.constant 0 : i32
    %c0_i32_2 = arith.constant 0 : i32
    return %c0_i32, %c0_i32_0, %c0_i32_1 : i32, i32, i32
  }
  func.func @transform_9(%arg0: i32) -> (i32, i32) {
    %c0_i32 = arith.constant 0 : i32
    %c0_i32_0 = arith.constant 0 : i32
    %c0_i32_1 = arith.constant 0 : i32
    return %c0_i32, %c0_i32_0 : i32, i32
  }
  func.func @transform_10(%arg0: i32) -> (i32, i32) {
    %c0_i32 = arith.constant 0 : i32
    %c0_i32_0 = arith.constant 0 : i32
    %c0_i32_1 = arith.constant 0 : i32
    return %c0_i32, %c0_i32_0 : i32, i32
  }
  func.func @transform_11(%arg0: i32) -> (i32, i32) {
    %c0_i32 = arith.constant 0 : i32
    %c0_i32_0 = arith.constant 0 : i32
    %c0_i32_1 = arith.constant 0 : i32
    return %c0_i32, %c0_i32_0 : i32, i32
  }
  func.func @transform_12(%arg0: i32) -> (i32, i32, i32) {
    %c0_i32 = arith.constant 0 : i32
    %c0_i32_0 = arith.constant 0 : i32
    %c0_i32_1 = arith.constant 0 : i32
    %c0_i32_2 = arith.constant 0 : i32
    return %c0_i32, %c0_i32_0, %c0_i32_1 : i32, i32, i32
  }
  func.func @transform_13(%arg0: i32) -> (i32, i32) {
    %c0_i32 = arith.constant 0 : i32
    %c0_i32_0 = arith.constant 0 : i32
    %c0_i32_1 = arith.constant 0 : i32
    return %c0_i32, %c0_i32_0 : i32, i32
  }
  func.func @transform_14(%arg0: i32) -> (i32, i32, i32) {
    %c0_i32 = arith.constant 0 : i32
    %c0_i32_0 = arith.constant 0 : i32
    %c0_i32_1 = arith.constant 0 : i32
    %c0_i32_2 = arith.constant 0 : i32
    return %c0_i32, %c0_i32_0, %c0_i32_1 : i32, i32, i32
  }
  func.func @transform_15(%arg0: i32) -> (i32, i32) {
    %c0_i32 = arith.constant 0 : i32
    %c0_i32_0 = arith.constant 0 : i32
    %c0_i32_1 = arith.constant 0 : i32
    return %c0_i32, %c0_i32_0 : i32, i32
  }
  func.func @transform_16(%arg0: i32) -> (i32, i32) {
    %c0_i32 = arith.constant 0 : i32
    %c0_i32_0 = arith.constant 0 : i32
    %c0_i32_1 = arith.constant 0 : i32
    return %c0_i32, %c0_i32_0 : i32, i32
  }
  func.func @transform_17(%arg0: i32) -> (i32, i32) {
    %c0_i32 = arith.constant 0 : i32
    %c0_i32_0 = arith.constant 0 : i32
    %c0_i32_1 = arith.constant 0 : i32
    return %c0_i32, %c0_i32_0 : i32, i32
  }
  func.func @transform_18(%arg0: i32) -> (i32, i32, i32) {
    %c0_i32 = arith.constant 0 : i32
    %c0_i32_0 = arith.constant 0 : i32
    %c0_i32_1 = arith.constant 0 : i32
    return %arg0, %c0_i32, %c0_i32_0 : i32, i32, i32
  }
}

</mosaic_0001>

<bundles_post_ra>
// kernel: tpu_custom_call.1
= control target key start
LH: loop header
LB: loop body
LE: loop exit
PB: predicated region body
PF: predicated region fallthrough
CT: control target
= control target key end

     0   :  { %s5263_s0 = inlined_call_operand.hbm [shape: bf16[4,8,32], index: 0, kind: input, shape index: {}]   ;;  %s5264_s1 = inlined_call_operand.hbm [shape: f32[4,1,8], index: 1, kind: input, shape index: {}]   ;;  %s5265_s2 = inlined_call_operand.hbm [shape: f32[8,32], index: 2, kind: input, shape index: {}]   ;;  %s5266_s3 = inlined_call_operand.hbm [shape: f32[8,32], index: 3, kind: input, shape index: {}]   ;;  %s5267_s4 = inlined_call_operand.hbm [shape: f32[2,32], index: 4, kind: input, shape index: {}]   ;;  %s5268_s5 = inlined_call_operand.hbm [shape: f32[2,32], index: 5, kind: input, shape index: {}]   ;;  %s5269_s6 = inlined_call_operand.hbm [shape: bf16[2,32,256], index: 6, kind: input, shape index: {}]   ;;  %s5270_s7 = inlined_call_operand.hbm [shape: f32[2,256], index: 7, kind: input, shape index: {}]   ;;  %s5271_s8 = inlined_call_operand.hbm [shape: bf16[2,32,32], index: 8, kind: input, shape index: {}]   ;;  %s5272_s9 = inlined_call_operand.hbm [shape: f32[2,32], index: 9, kind: input, shape index: {}]   ;;  %s5273_s10 = inlined_call_operand.hbm [shape: f32[2,32], index: 10, kind: input, shape index: {}]   ;;  %s5274_s11 = inlined_call_operand.hbm [shape: f32[2,32], index: 11, kind: input, shape index: {}]   ;;  %s5275_s12 = inlined_call_operand.hbm [shape: bf16[2,32,128], index: 12, kind: input, shape index: {}]   ;;  %s5276_s13 = inlined_call_operand.hbm [shape: f32[2,128], index: 13, kind: input, shape index: {}]   ;;  %s5277_s14 = inlined_call_operand.hbm [shape: bf16[2,128,32], index: 14, kind: input, shape index: {}]   ;;  %s5278_s15 = inlined_call_operand.hbm [shape: f32[2,32], index: 15, kind: input, shape index: {}]   ;;  %s5279_s16 = inlined_call_operand.hbm [shape: f32[1,32], index: 16, kind: input, shape index: {}]   ;;  %s5280_s17 = inlined_call_operand.hbm [shape: f32[1,32], index: 17, kind: input, shape index: {}]   ;;  %s5281_s18 = inlined_call_operand.hbm [shape: f32[4,8,32], index: 18, kind: output, shape index: {}]  }
   0x1   :  { %5299 = sst [smem:[#allocation50_spill]] %s5263_s0 }
   0x2   :  { %5300 = sst [smem:[#allocation51_spill]] %s5264_s1 }
   0x3   :  { %5301 = sst [smem:[#allocation52_spill]] %s5265_s2 }
   0x4   :  { %5302 = sst [smem:[#allocation53_spill]] %s5266_s3 }
   0x5   :  { %5303 = sst [smem:[#allocation54_spill]] %s5267_s4 }
   0x6   :  { %5304 = sst [smem:[#allocation55_spill]] %s5268_s5 }
   0x7   :  { %5305 = sst [smem:[#allocation56_spill]] %s5269_s6 }
   0x8   :  { %5306 = sst [smem:[#allocation57_spill]] %s5270_s7 }
   0x9   :  { %5307 = sst [smem:[#allocation58_spill]] %s5271_s8 }
   0xa   :  { %5308 = sst [smem:[#allocation59_spill]] %s5272_s9 }
   0xb   :  { %5309 = sst [smem:[#allocation60_spill]] %s5273_s10 }
   0xc   :  { %5310 = sst [smem:[#allocation61_spill]] %s5274_s11 }
   0xd   :  { %5311 = sst [smem:[#allocation62_spill]] %s5275_s12 }
   0xe   :  { %5312 = sst [smem:[#allocation63_spill]] %s5276_s13 }
   0xf   :  { %5313 = sst [smem:[#allocation64_spill]] %s5281_s18 }
  0x10   :  { %23 = vsyncpa [#allocation3], 0 }
  0x11   :  { %25 = vsyncpa [#allocation3 + $0x1], 0 }
  0x12   :  { %26 = vsyncpa [#allocation6], 0 }
  0x13   :  { %28 = vsyncpa [#allocation6 + $0x1], 0 }
  0x14   :  { %29 = vsyncpa [#allocation9], 0 }
  0x15   :  { %30 = vsyncpa [#allocation12], 0 }
  0x16   :  { %31 = vsyncpa [#allocation15], 0 }
  0x17   :  { %32 = vsyncpa [#allocation18], 0 }
  0x18   :  { %33 = vsyncpa [#allocation21], 0 }
  0x19   :  { %34 = vsyncpa [#allocation24], 0 }
  0x1a   :  { %35 = vsyncpa [#allocation27], 0 }
  0x1b   :  { %36 = vsyncpa [#allocation30], 0 }
  0x1c   :  { %37 = vsyncpa [#allocation4], 0 }
  0x1d   :  { %39 = vsyncpa [#allocation4 + $0x1], 0  ;;  %s4294_s27 = smov 0   ;;  %s4296_s28 = smov 0  }
  0x1e   :  { %s4298_s29 = smov 0   ;;  %s4300_s30 = smov 0  }
  0x1f LB: > { %5314 = sst [smem:[#allocation44_spill]] %s4123_s27  ;;  %s4161_s0 = smov [#allocation7]   ;;  %s4135_s30 = sphi %s4300_s30, %s5389_s30   ;;  %s4131_s29 = sphi %s4298_s29, %s5388_s29   ;;  %s4127_s28 = sphi %s4296_s28, %s5387_s28   ;;  %s4123_s27 = sphi %s4294_s27, %s5386_s27  }
  0x20   : > { %5315 = sst [smem:[#allocation45_spill]] %s4127_s28  ;;  %s477_s19 = sshll.u32 %s4161_s0, 4  ;;  %s4320_s19 = int_to_ptr.vmem [resolvable:$true] %s477_s19 }
  0x21   : > { %5316 = sst [smem:[#allocation46_spill]] %s4131_s29  ;;  %s4315_s1 = sadd.s32 4294967295, %s4135_s30  }
  0x22   : > { %5317 = sst [smem:[#allocation47_spill]] %s4135_s30  ;;  %p2782_p0 = scmp.ge.s32.totalorder %s4135_s30, 1 }
  0x23   : > { %5318 = sst [smem:[#allocation48_spill]] %s4315_s1  ;;  %p5294_p1 = scmp.eq.s32.totalorder %s4315_s1, 0 }
  0x24   : > { %p464_p2 = scmp.lt.s32.totalorder %s4135_s30, 3  ;;  %s4162_s21 = smov [#allocation8]  }
  0x25   : > { %s488_s22 = sshll.u32 %s4162_s21, 4  ;;  %s4163_s2 = smov [#allocation11]   ;;  %s4329_s22 = int_to_ptr.vmem [resolvable:$true] %s488_s22 }
  0x26   : > { %p4322_p3 = pnand %p2782_p0, %p464_p2  ;;  %s510_s23 = sshll.u32 %s4163_s2, 4  ;;  %s4337_s23 = int_to_ptr.vmem [resolvable:$true] %s510_s23 }
  0x27   : > { %s4164_s25 = smov [#allocation14]  }
  0x28   : > { %s5319_s20 = scalar_select %p4322_p3, 1, 0 }
  0x29   : > { %p3154_p5 = pneg %p4322_p3  ;;  %s4339_s26 = sshll.u32 %s4164_s25, 4  ;;  %s535_s26 = int_to_ptr.vmem [resolvable:$true] %s4339_s26 }
  0x2a   : > { %5320 = sst [smem:[#allocation49_spill]] %s5319_s20  ;;  %s5322_s20 = sld [smem:[#allocation52_spill]] }
  0x2b   : > { %p4333_p6 = pnand %p3154_p5, %p5294_p1 }
  0x2d   : > { %p4349_p8 = pneg %p4333_p6 }
  0x30   : > { %s3497_s27 = scalar_lea.hbm %s5322_s20, 128 }
  0x31   : > { %p3498_p7 = scmp.ne.s32.totalorder %s5322_s20, %s3497_s27  ;;  %p3504_p11 = scmp.lt.u32.totalorder %s3497_s27, %s5322_s20 }
  0x33   : > { %p3500_p9 = pnand %p4349_p8, %p3498_p7 }
  0x35   : > { %p3501_p10 = pneg %p3500_p9 }
  0x37   : > { %p3506_p12 = pnand %p3504_p11, %p3501_p10 }
  0x39   : > { %3509 = shalt.err (!%p3506_p12)
}
  0x3a   : > { %s3510_s18 = scalar_lea.vmem %s4320_s19, 128  ;;  %p3518_p5 = scmp.lt.s32.totalorder %s4320_s19, %s4320_s19 }
  0x3b   : > { %p3511_p13 = scmp.ne.s32.totalorder %s4320_s19, %s3510_s18  ;;  %p3519_p4 = scmp.lt.s32.totalorder %s3510_s18, %s3510_s18 }
  0x3d   : > { %p3513_p0 = pnand %p3511_p13, %p4349_p8  ;;  %p3520_p7 = por %p3519_p4, %p3518_p5 }
  0x3f   : > { %p3514_p2 = pneg %p3513_p0 }
  0x41   : > { %p3521_p9 = pnand %p3520_p7, %p3514_p2 }
  0x43   : > { %3524 = shalt.err (!%p3521_p9)
}
  0x44   : > { %3157 = dma.hbm_to_vmem [thread:$0]  (!%p4333_p6), %s5322_s20, 128, %s4320_s19, [#allocation6]  }
  0x45   : > { %s5324_s3 = sld [smem:[#allocation53_spill]] }
  0x4b   : > { %s3525_s21 = scalar_lea.hbm %s5324_s3, 128 }
  0x4c   : > { %p3526_p10 = scmp.ne.s32.totalorder %s5324_s3, %s3525_s21  ;;  %p3532_p12 = scmp.lt.u32.totalorder %s3525_s21, %s5324_s3 }
  0x4e   : > { %p3528_p4 = pnand %p3526_p10, %p4349_p8 }
  0x50   : > { %p3529_p11 = pneg %p3528_p4 }
  0x52   : > { %p3534_p13 = pnand %p3532_p12, %p3529_p11 }
  0x54   : > { %3537 = shalt.err (!%p3534_p13)
}
  0x55   : > { %s3538_s19 = scalar_lea.vmem %s4329_s22, 128  ;;  %p3546_p7 = scmp.lt.s32.totalorder %s4329_s22, %s4329_s22 }
  0x56   : > { %p3539_p0 = scmp.ne.s32.totalorder %s4329_s22, %s3538_s19  ;;  %p3547_p9 = scmp.lt.s32.totalorder %s3538_s19, %s3538_s19 }
  0x58   : > { %p3541_p2 = pnand %p3539_p0, %p4349_p8  ;;  %p3548_p10 = por %p3547_p9, %p3546_p7 }
  0x5a   : > { %p3542_p5 = pneg %p3541_p2 }
  0x5c   : > { %p3549_p4 = pnand %p3548_p10, %p3542_p5 }
  0x5e   : > { %3552 = shalt.err (!%p3549_p4)
}
  0x5f   : > { %3160 = dma.hbm_to_vmem [thread:$0]  (!%p4333_p6), %s5324_s3, 128, %s4329_s22, [#allocation9]  }
  0x60   : > { %s5325_s5 = sld [smem:[#allocation55_spill]] }
  0x66   : > { %s3553_s1 = scalar_lea.hbm %s5325_s5, 32 }
  0x67   : > { %p3554_p11 = scmp.ne.s32.totalorder %s5325_s5, %s3553_s1  ;;  %p3560_p0 = scmp.lt.u32.totalorder %s3553_s1, %s5325_s5 }
  0x69   : > { %p3556_p12 = pnand %p3554_p11, %p4349_p8 }
  0x6b   : > { %p3557_p13 = pneg %p3556_p12 }
  0x6d   : > { %p3562_p2 = pnand %p3560_p0, %p3557_p13 }
  0x6f   : > { %3565 = shalt.err (!%p3562_p2)
}
  0x70   : > { %s3566_s22 = scalar_lea.vmem %s4337_s23, 32  ;;  %p3574_p10 = scmp.lt.s32.totalorder %s4337_s23, %s4337_s23 }
  0x71   : > { %p3567_p5 = scmp.ne.s32.totalorder %s4337_s23, %s3566_s22  ;;  %p3575_p4 = scmp.lt.s32.totalorder %s3566_s22, %s3566_s22 }
  0x73   : > { %p3569_p7 = pnand %p3567_p5, %p4349_p8  ;;  %p3576_p11 = por %p3575_p4, %p3574_p10 }
  0x75   : > { %p3570_p9 = pneg %p3569_p7 }
  0x77   : > { %p3577_p12 = pnand %p3576_p11, %p3570_p9 }
  0x79   : > { %3580 = shalt.err (!%p3577_p12)
}
  0x7a   : > { %3166 = dma.hbm_to_vmem [thread:$0]  (!%p4333_p6), %s5325_s5, 32, %s4337_s23, [#allocation12]  }
  0x7b   : > { %s4165_s30 = smov [#allocation17]   ;;  %s5326_s7 = sld [smem:[#allocation57_spill]] }
  0x7c   : > { %s558_s27 = sshll.u32 %s4165_s30, 4  ;;  %s559_s27 = int_to_ptr.vmem [resolvable:$true] %s558_s27 }
  0x81   : > { %s3581_s0 = scalar_lea.hbm %s5326_s7, 64 }
  0x82   : > { %p3582_p13 = scmp.ne.s32.totalorder %s5326_s7, %s3581_s0  ;;  %p3588_p5 = scmp.lt.u32.totalorder %s3581_s0, %s5326_s7 }
  0x84   : > { %p3584_p0 = pnand %p3582_p13, %p4349_p8 }
  0x86   : > { %p3585_p2 = pneg %p3584_p0 }
  0x88   : > { %p3590_p7 = pnand %p3588_p5, %p3585_p2 }
  0x8a   : > { %3593 = shalt.err (!%p3590_p7)
}
  0x8b   : > { %s3594_s23 = scalar_lea.vmem %s535_s26, 64  ;;  %p3602_p11 = scmp.lt.s32.totalorder %s535_s26, %s535_s26 }
  0x8c   : > { %p3595_p9 = scmp.ne.s32.totalorder %s535_s26, %s3594_s23  ;;  %p3603_p12 = scmp.lt.s32.totalorder %s3594_s23, %s3594_s23 }
  0x8e   : > { %p3597_p10 = pnand %p3595_p9, %p4349_p8  ;;  %p3604_p1 = por %p3603_p12, %p3602_p11 }
  0x90   : > { %p3598_p4 = pneg %p3597_p10 }
  0x92   : > { %p3605_p3 = pnand %p3604_p1, %p3598_p4 }
  0x94   : > { %3608 = shalt.err (!%p3605_p3)
}
  0x95   : > { %3172 = dma.hbm_to_vmem [thread:$0]  (!%p4333_p6), %s5326_s7, 64, %s535_s26, [#allocation15]  }
  0x96   : > { %s5327_s9 = sld [smem:[#allocation59_spill]] }
  0x9c   : > { %s3609_s1 = scalar_lea.hbm %s5327_s9, 32 }
  0x9d   : > { %p3610_p13 = scmp.ne.s32.totalorder %s5327_s9, %s3609_s1  ;;  %p3616_p3 = scmp.lt.u32.totalorder %s3609_s1, %s5327_s9 }
  0x9f   : > { %p3612_p0 = pnand %p3610_p13, %p4349_p8 }
  0xa1   : > { %p3613_p1 = pneg %p3612_p0 }
  0xa3   : > { %p3618_p2 = pnand %p3616_p3, %p3613_p1 }
  0xa5   : > { %3621 = shalt.err (!%p3618_p2)
}
  0xa6   : > { %s3622_s22 = scalar_lea.vmem %s559_s27, 32  ;;  %p3630_p10 = scmp.lt.s32.totalorder %s559_s27, %s559_s27 }
  0xa7   : > { %p3623_p5 = scmp.ne.s32.totalorder %s559_s27, %s3622_s22  ;;  %p3631_p4 = scmp.lt.s32.totalorder %s3622_s22, %s3622_s22 }
  0xa9   : > { %p3625_p7 = pnand %p3623_p5, %p4349_p8  ;;  %p3632_p11 = por %p3631_p4, %p3630_p10 }
  0xab   : > { %p3626_p9 = pneg %p3625_p7 }
  0xad   : > { %p3633_p12 = pnand %p3632_p11, %p3626_p9 }
  0xaf   : > { %3636 = shalt.err (!%p3633_p12)
}
  0xb0   : > { %3178 = dma.hbm_to_vmem [thread:$0]  (!%p4333_p6), %s5327_s9, 32, %s559_s27, [#allocation18]  }
  0xb1   : > { %s4166_s19 = smov [#allocation20]   ;;  %s4167_s30 = smov [#allocation23]  }
  0xb2   : > { %s580_s29 = sshll.u32 %s4166_s19, 4  ;;  %s604_s28 = sshll.u32 %s4167_s30, 4  ;;  %s581_s29 = int_to_ptr.vmem [resolvable:$true] %s580_s29  ;;  %s605_s28 = int_to_ptr.vmem [resolvable:$true] %s604_s28 }
  0xb3   : > { %s5328_s11 = sld [smem:[#allocation61_spill]] }
  0xb9   : > { %s3637_s21 = scalar_lea.hbm %s5328_s11, 32 }
  0xba   : > { %p3638_p13 = scmp.ne.s32.totalorder %s5328_s11, %s3637_s21  ;;  %p3644_p3 = scmp.lt.u32.totalorder %s3637_s21, %s5328_s11 }
  0xbc   : > { %p3640_p0 = pnand %p3638_p13, %p4349_p8 }
  0xbe   : > { %p3641_p1 = pneg %p3640_p0 }
  0xc0   : > { %p3646_p2 = pnand %p3644_p3, %p3641_p1 }
  0xc2   : > { %3649 = shalt.err (!%p3646_p2)
}
  0xc3   : > { %s3650_s27 = scalar_lea.vmem %s581_s29, 32  ;;  %p3658_p10 = scmp.lt.s32.totalorder %s581_s29, %s581_s29 }
  0xc4   : > { %p3651_p5 = scmp.ne.s32.totalorder %s581_s29, %s3650_s27  ;;  %p3659_p4 = scmp.lt.s32.totalorder %s3650_s27, %s3650_s27 }
  0xc6   : > { %p3653_p7 = pnand %p3651_p5, %p4349_p8  ;;  %p3660_p11 = por %p3659_p4, %p3658_p10 }
  0xc8   : > { %p3654_p9 = pneg %p3653_p7 }
  0xca   : > { %p3661_p12 = pnand %p3660_p11, %p3654_p9 }
  0xcc   : > { %3664 = shalt.err (!%p3661_p12)
}
  0xcd   : > { %3184 = dma.hbm_to_vmem [thread:$0]  (!%p4333_p6), %s5328_s11, 32, %s581_s29, [#allocation21]  }
  0xce   : > { %s5329_s13 = sld [smem:[#allocation63_spill]] }
  0xd4   : > { %s3665_s0 = scalar_lea.hbm %s5329_s13, 32 }
  0xd5   : > { %p3666_p13 = scmp.ne.s32.totalorder %s5329_s13, %s3665_s0  ;;  %p3672_p3 = scmp.lt.u32.totalorder %s3665_s0, %s5329_s13 }
  0xd7   : > { %p3668_p0 = pnand %p3666_p13, %p4349_p8 }
  0xd9   : > { %p3669_p1 = pneg %p3668_p0 }
  0xdb   : > { %p3674_p2 = pnand %p3672_p3, %p3669_p1 }
  0xdd   : > { %3677 = shalt.err (!%p3674_p2)
}
  0xde   : > { %s3678_s26 = scalar_lea.vmem %s605_s28, 32  ;;  %p3686_p10 = scmp.lt.s32.totalorder %s605_s28, %s605_s28 }
  0xdf   : > { %p3679_p5 = scmp.ne.s32.totalorder %s605_s28, %s3678_s26  ;;  %p3687_p4 = scmp.lt.s32.totalorder %s3678_s26, %s3678_s26 }
  0xe1   : > { %p3681_p7 = pnand %p3679_p5, %p4349_p8  ;;  %p3688_p11 = por %p3687_p4, %p3686_p10 }
  0xe3   : > { %p3682_p9 = pneg %p3681_p7 }
  0xe5   : > { %p3689_p12 = pnand %p3688_p11, %p3682_p9 }
  0xe7   : > { %3692 = shalt.err (!%p3689_p12)
}
  0xe8   : > { %3190 = dma.hbm_to_vmem [thread:$0]  (!%p4333_p6), %s5329_s13, 32, %s605_s28, [#allocation24]  }
  0xe9   : > { %s4168_s23 = smov [#allocation26]   ;;  %s4169_s30 = smov [#allocation10]  }
  0xea   : > { %s628_s19 = sshll.u32 %s4168_s23, 4  ;;  %s499_s1 = sshll.u32 %s4169_s30, 4  ;;  %s629_s19 = int_to_ptr.vmem [resolvable:$true] %s628_s19  ;;  %s500_s1 = int_to_ptr.vmem [resolvable:$true] %s499_s1 }
  0xeb   : > { %s3693_s25 = scalar_lea.hbm %s5278_s15, 32 }
  0xec   : > { %p3694_p13 = scmp.ne.s32.totalorder %s5278_s15, %s3693_s25  ;;  %p3700_p3 = scmp.lt.u32.totalorder %s3693_s25, %s5278_s15 }
  0xee   : > { %p3696_p0 = pnand %p3694_p13, %p4349_p8 }
  0xf0   : > { %p3697_p1 = pneg %p3696_p0 }
  0xf2   : > { %p3702_p2 = pnand %p3700_p3, %p3697_p1 }
  0xf4   : > { %3705 = shalt.err (!%p3702_p2)
}
  0xf5   : > { %s3706_s28 = scalar_lea.vmem %s629_s19, 32  ;;  %p3714_p10 = scmp.lt.s32.totalorder %s629_s19, %s629_s19 }
  0xf6   : > { %p3707_p5 = scmp.ne.s32.totalorder %s629_s19, %s3706_s28  ;;  %p3715_p4 = scmp.lt.s32.totalorder %s3706_s28, %s3706_s28 }
  0xf8   : > { %p3709_p7 = pnand %p3707_p5, %p4349_p8  ;;  %p3716_p11 = por %p3715_p4, %p3714_p10 }
  0xfa   : > { %p3710_p9 = pneg %p3709_p7 }
  0xfc   : > { %p3717_p12 = pnand %p3716_p11, %p3710_p9 }
  0xfe   : > { %3720 = shalt.err (!%p3717_p12)
}
  0xff   : > { %3196 = dma.hbm_to_vmem [thread:$0]  (!%p4333_p6), %s5278_s15, 32, %s629_s19, [#allocation27]  }
 0x100   : > { %s5330_s4 = sld [smem:[#allocation54_spill]] }
 0x106   : > { %s3721_s21 = scalar_lea.hbm %s5330_s4, 32 }
 0x107   : > { %p3722_p13 = scmp.ne.s32.totalorder %s5330_s4, %s3721_s21  ;;  %p3728_p3 = scmp.lt.u32.totalorder %s3721_s21, %s5330_s4 }
 0x109   : > { %p3724_p0 = pnand %p3722_p13, %p4349_p8 }
 0x10b   : > { %p3725_p1 = pneg %p3724_p0 }
 0x10d   : > { %p3730_p2 = pnand %p3728_p3, %p3725_p1 }
 0x10f   : > { %3733 = shalt.err (!%p3730_p2)
}
 0x110   : > { %s3734_s29 = scalar_lea.vmem %s500_s1, 32  ;;  %p3742_p10 = scmp.lt.s32.totalorder %s500_s1, %s500_s1 }
 0x111   : > { %p3735_p5 = scmp.ne.s32.totalorder %s500_s1, %s3734_s29  ;;  %p3743_p4 = scmp.lt.s32.totalorder %s3734_s29, %s3734_s29 }
 0x113   : > { %p3737_p7 = pnand %p3735_p5, %p4349_p8  ;;  %p3744_p11 = por %p3743_p4, %p3742_p10 }
 0x115   : > { %p3738_p9 = pneg %p3737_p7 }
 0x117   : > { %p3745_p12 = pnand %p3744_p11, %p3738_p9 }
 0x119   : > { %3748 = shalt.err (!%p3745_p12)
}
 0x11a   : > { %3163 = dma.hbm_to_vmem [thread:$0]  (!%p4333_p6), %s5330_s4, 32, %s500_s1, [#allocation9]  }
 0x11b   : > { %s4170_s27 = smov [#allocation13]   ;;  %s5331_s6 = sld [smem:[#allocation56_spill]] }
 0x11c   : > { %s520_s23 = sshll.u32 %s4170_s27, 4  ;;  %s521_s23 = int_to_ptr.vmem [resolvable:$true] %s520_s23 }
 0x121   : > { %s3749_s21 = scalar_lea.hbm %s5331_s6, 1024 }
 0x122   : > { %p3750_p13 = scmp.ne.s32.totalorder %s5331_s6, %s3749_s21  ;;  %p3756_p3 = scmp.lt.u32.totalorder %s3749_s21, %s5331_s6 }
 0x124   : > { %p3752_p0 = pnand %p3750_p13, %p4349_p8 }
 0x126   : > { %p3753_p1 = pneg %p3752_p0 }
 0x128   : > { %p3758_p2 = pnand %p3756_p3, %p3753_p1 }
 0x12a   : > { %3761 = shalt.err (!%p3758_p2)
}
 0x12b   : > { %s3762_s1 = scalar_lea.vmem %s521_s23, 1024  ;;  %p3770_p10 = scmp.lt.s32.totalorder %s521_s23, %s521_s23 }
 0x12c   : > { %p3763_p5 = scmp.ne.s32.totalorder %s521_s23, %s3762_s1  ;;  %p3771_p4 = scmp.lt.s32.totalorder %s3762_s1, %s3762_s1 }
 0x12e   : > { %p3765_p7 = pnand %p3763_p5, %p4349_p8  ;;  %p3772_p11 = por %p3771_p4, %p3770_p10 }
 0x130   : > { %p3766_p9 = pneg %p3765_p7 }
 0x132   : > { %p3773_p12 = pnand %p3772_p11, %p3766_p9 }
 0x134   : > { %3776 = shalt.err (!%p3773_p12)
}
 0x135   : > { %s4171_s29 = smov 128   ;;  %s4172_s19 = smov 8  }
 0x136   : > { %3169 = dma.hbm_to_vmem [thread:$0]  (!%p4333_p6), %s5331_s6, 1024, %s521_s23, [#allocation12], %s4171_s29, %s4171_s29, %s4172_s19  }
 0x137   : > { %s4173_s30 = smov [#allocation16]   ;;  %s5332_s8 = sld [smem:[#allocation58_spill]] }
 0x138   : > { %s544_s0 = sshll.u32 %s4173_s30, 4  ;;  %s545_s0 = int_to_ptr.vmem [resolvable:$true] %s544_s0 }
 0x13d   : > { %s3777_s18 = scalar_lea.hbm %s5332_s8, 512 }
 0x13e   : > { %p3778_p13 = scmp.ne.s32.totalorder %s5332_s8, %s3777_s18  ;;  %p3784_p3 = scmp.lt.u32.totalorder %s3777_s18, %s5332_s8 }
 0x140   : > { %p3780_p0 = pnand %p3778_p13, %p4349_p8 }
 0x142   : > { %p3781_p1 = pneg %p3780_p0 }
 0x144   : > { %p3786_p2 = pnand %p3784_p3, %p3781_p1 }
 0x146   : > { %3789 = shalt.err (!%p3786_p2)
}
 0x147   : > { %s3790_s23 = scalar_lea.vmem %s545_s0, 512  ;;  %p3798_p10 = scmp.lt.s32.totalorder %s545_s0, %s545_s0 }
 0x148   : > { %p3791_p5 = scmp.ne.s32.totalorder %s545_s0, %s3790_s23  ;;  %p3799_p4 = scmp.lt.s32.totalorder %s3790_s23, %s3790_s23 }
 0x14a   : > { %p3793_p7 = pnand %p3791_p5, %p4349_p8  ;;  %p3800_p11 = por %p3799_p4, %p3798_p10 }
 0x14c   : > { %p3794_p9 = pneg %p3793_p7 }
 0x14e   : > { %p3801_p12 = pnand %p3800_p11, %p3794_p9 }
 0x150   : > { %3804 = shalt.err (!%p3801_p12)
}
 0x151   : > { %s5296_s29 = smov 64   ;;  %s5297_s19 = smov 4  }
 0x152   : > { %3175 = dma.hbm_to_vmem [thread:$0]  (!%p4333_p6), %s5332_s8, 512, %s545_s0, [#allocation15], %s5296_s29, %s5296_s29, %s5297_s19  }
 0x153   : > { %s4176_s27 = smov [#allocation19]   ;;  %s4177_s21 = smov [#allocation22]  }
 0x154   : > { %s569_s30 = sshll.u32 %s4176_s27, 4  ;;  %s590_s25 = sshll.u32 %s4177_s21, 4  ;;  %s570_s30 = int_to_ptr.vmem [resolvable:$true] %s569_s30  ;;  %s591_s25 = int_to_ptr.vmem [resolvable:$true] %s590_s25 }
 0x155   : > { %s5333_s10 = sld [smem:[#allocation60_spill]] }
 0x15b   : > { %s3805_s26 = scalar_lea.hbm %s5333_s10, 32 }
 0x15c   : > { %p3806_p13 = scmp.ne.s32.totalorder %s5333_s10, %s3805_s26  ;;  %p3812_p3 = scmp.lt.u32.totalorder %s3805_s26, %s5333_s10 }
 0x15e   : > { %p3808_p0 = pnand %p3806_p13, %p4349_p8 }
 0x160   : > { %p3809_p1 = pneg %p3808_p0 }
 0x162   : > { %p3814_p2 = pnand %p3812_p3, %p3809_p1 }
 0x164   : > { %3817 = shalt.err (!%p3814_p2)
}
 0x165   : > { %s3818_s0 = scalar_lea.vmem %s570_s30, 32  ;;  %p3826_p10 = scmp.lt.s32.totalorder %s570_s30, %s570_s30 }
 0x166   : > { %p3819_p5 = scmp.ne.s32.totalorder %s570_s30, %s3818_s0  ;;  %p3827_p4 = scmp.lt.s32.totalorder %s3818_s0, %s3818_s0 }
 0x168   : > { %p3821_p7 = pnand %p3819_p5, %p4349_p8  ;;  %p3828_p11 = por %p3827_p4, %p3826_p10 }
 0x16a   : > { %p3822_p9 = pneg %p3821_p7 }
 0x16c   : > { %p3829_p12 = pnand %p3828_p11, %p3822_p9 }
 0x16e   : > { %3832 = shalt.err (!%p3829_p12)
}
 0x16f   : > { %3181 = dma.hbm_to_vmem [thread:$0]  (!%p4333_p6), %s5333_s10, 32, %s570_s30, [#allocation18]  }
 0x170   : > { %s5334_s12 = sld [smem:[#allocation62_spill]] }
 0x176   : > { %s3833_s27 = scalar_lea.hbm %s5334_s12, 512 }
 0x177   : > { %p3834_p13 = scmp.ne.s32.totalorder %s5334_s12, %s3833_s27  ;;  %p3840_p3 = scmp.lt.u32.totalorder %s3833_s27, %s5334_s12 }
 0x179   : > { %p3836_p0 = pnand %p3834_p13, %p4349_p8 }
 0x17b   : > { %p3837_p1 = pneg %p3836_p0 }
 0x17d   : > { %p3842_p2 = pnand %p3840_p3, %p3837_p1 }
 0x17f   : > { %3845 = shalt.err (!%p3842_p2)
}
 0x180   : > { %s3846_s1 = scalar_lea.vmem %s591_s25, 512  ;;  %p3854_p10 = scmp.lt.s32.totalorder %s591_s25, %s591_s25 }
 0x181   : > { %p3847_p5 = scmp.ne.s32.totalorder %s591_s25, %s3846_s1  ;;  %p3855_p4 = scmp.lt.s32.totalorder %s3846_s1, %s3846_s1 }
 0x183   : > { %p3849_p7 = pnand %p3847_p5, %p4349_p8  ;;  %p3856_p11 = por %p3855_p4, %p3854_p10 }
 0x185   : > { %p3850_p9 = pneg %p3849_p7 }
 0x187   : > { %p3857_p12 = pnand %p3856_p11, %p3850_p9 }
 0x189   : > { %3860 = shalt.err (!%p3857_p12)
}
 0x18a   : > { %3187 = dma.hbm_to_vmem [thread:$0]  (!%p4333_p6), %s5334_s12, 512, %s591_s25, [#allocation21], %s5296_s29, %s5296_s29, %s5297_s19  }
 0x18b   : > { %s4178_s0 = smov [#allocation25]   ;;  %s4179_s28 = smov [#allocation28]  }
 0x18c   : > { %s614_s3 = sshll.u32 %s4178_s0, 4  ;;  %s639_s4 = sshll.u32 %s4179_s28, 4  ;;  %s615_s3 = int_to_ptr.vmem [resolvable:$true] %s614_s3  ;;  %s640_s4 = int_to_ptr.vmem [resolvable:$true] %s639_s4 }
 0x18d   : > { %s3861_s21 = scalar_lea.hbm %s5277_s14, 2048 }
 0x18e   : > { %p3862_p13 = scmp.ne.s32.totalorder %s5277_s14, %s3861_s21  ;;  %p3868_p3 = scmp.lt.u32.totalorder %s3861_s21, %s5277_s14 }
 0x190   : > { %p3864_p0 = pnand %p3862_p13, %p4349_p8 }
 0x192   : > { %p3865_p1 = pneg %p3864_p0 }
 0x194   : > { %p3870_p2 = pnand %p3868_p3, %p3865_p1 }
 0x196   : > { %3873 = shalt.err (!%p3870_p2)
}
 0x197   : > { %s3874_s25 = scalar_lea.vmem %s615_s3, 2048  ;;  %p3882_p10 = scmp.lt.s32.totalorder %s615_s3, %s615_s3 }
 0x198   : > { %p3875_p5 = scmp.ne.s32.totalorder %s615_s3, %s3874_s25  ;;  %p3883_p4 = scmp.lt.s32.totalorder %s3874_s25, %s3874_s25 }
 0x19a   : > { %p3877_p7 = pnand %p3875_p5, %p4349_p8  ;;  %p3884_p11 = por %p3883_p4, %p3882_p10 }
 0x19c   : > { %p3878_p9 = pneg %p3877_p7 }
 0x19e   : > { %p3885_p12 = pnand %p3884_p11, %p3878_p9 }
 0x1a0   : > { %3888 = shalt.err (!%p3885_p12)
}
 0x1a1   : > { %3193 = dma.hbm_to_vmem [thread:$0]  (!%p4333_p6), %s5277_s14, 2048, %s615_s3, [#allocation24], %s5296_s29, %s5296_s29, %s5297_s19  }
 0x1a2   : > { %s3889_s5 = scalar_lea.hbm %s5279_s16, 16 }
 0x1a3   : > { %p3890_p13 = scmp.ne.s32.totalorder %s5279_s16, %s3889_s5  ;;  %p3896_p3 = scmp.lt.u32.totalorder %s3889_s5, %s5279_s16 }
 0x1a5   : > { %p3892_p0 = pnand %p3890_p13, %p4349_p8 }
 0x1a7   : > { %p3893_p1 = pneg %p3892_p0 }
 0x1a9   : > { %p3898_p2 = pnand %p3896_p3, %p3893_p1 }
 0x1ab   : > { %3901 = shalt.err (!%p3898_p2)
}
 0x1ac   : > { %s3902_s26 = scalar_lea.vmem %s640_s4, 16  ;;  %s3909_s3 = scalar_lea.vmem %s640_s4, 32 }
 0x1ad   : > { %p3903_p5 = scmp.ne.s32.totalorder %s640_s4, %s3902_s26  ;;  %p3910_p10 = scmp.lt.s32.totalorder %s640_s4, %s640_s4 }
 0x1ae   : > { %p3911_p4 = scmp.lt.s32.totalorder %s3909_s3, %s3902_s26 }
 0x1af   : > { %p3905_p7 = pnand %p3903_p5, %p4349_p8 }
 0x1b0   : > { %p3912_p11 = por %p3911_p4, %p3910_p10 }
 0x1b1   : > { %p3906_p9 = pneg %p3905_p7 }
 0x1b3   : > { %p3913_p12 = pnand %p3912_p11, %p3906_p9 }
 0x1b5   : > { %3916 = shalt.err (!%p3913_p12)
}
 0x1b6   : > { %3199 = dma.hbm_to_vmem [thread:$0]  (!%p4333_p6), %s5279_s16, 16, %s640_s4, [#allocation27]  }
 0x1b7   : > { %s4180_s30 = smov [#allocation29]   ;;  %s3917_s5 = scalar_lea.hbm %s5280_s17, 16 }
 0x1b8   : > { %s650_s23 = sshll.u32 %s4180_s30, 4  ;;  %p3918_p13 = scmp.ne.s32.totalorder %s5280_s17, %s3917_s5  ;;  %s651_s23 = int_to_ptr.vmem [resolvable:$true] %s650_s23 }
 0x1b9   : > { %p3924_p3 = scmp.lt.u32.totalorder %s3917_s5, %s5280_s17 }
 0x1ba   : > { %p3920_p0 = pnand %p3918_p13, %p4349_p8 }
 0x1bc   : > { %p3921_p1 = pneg %p3920_p0 }
 0x1be   : > { %p3926_p2 = pnand %p3924_p3, %p3921_p1 }
 0x1c0   : > { %3929 = shalt.err (!%p3926_p2)
}
 0x1c1   : > { %s3930_s4 = scalar_lea.vmem %s651_s23, 16  ;;  %s3937_s26 = scalar_lea.vmem %s651_s23, 32 }
 0x1c2   : > { %p3931_p5 = scmp.ne.s32.totalorder %s651_s23, %s3930_s4  ;;  %p3938_p10 = scmp.lt.s32.totalorder %s651_s23, %s651_s23 }
 0x1c3   : > { %p3939_p4 = scmp.lt.s32.totalorder %s3937_s26, %s3930_s4 }
 0x1c4   : > { %p3933_p7 = pnand %p3931_p5, %p4349_p8 }
 0x1c5   : > { %p3940_p11 = por %p3939_p4, %p3938_p10 }
 0x1c6   : > { %p3934_p9 = pneg %p3933_p7 }
 0x1c8   : > { %p3941_p12 = pnand %p3940_p11, %p3934_p9 }
 0x1ca   : > { %3944 = shalt.err (!%p3941_p12)
}
 0x1cb   : > { %s5335_s25 = sld [smem:[#allocation47_spill]]  ;;  %s5336_s30 = sld [smem:[#allocation46_spill]] }
 0x1cc   : > { %s5337_s0 = sld [smem:[#allocation45_spill]]  ;;  %s5338_s2 = sld [smem:[#allocation44_spill]] }
 0x1cd   : > { %s5339_s28 = sld [smem:[#allocation48_spill]] }
 0x1ce   : > { %3202 = dma.hbm_to_vmem [thread:$0]  (!%p4333_p6), %s5280_s17, 16, %s651_s23, [#allocation30]  }
 0x1d1   : > { %s2781_s5 = sadd.s32 4294967294, %s5335_s25   ;;  %s4662_s24 = sadd.s32 1, %s5335_s25  }
 0x1d2   : > { %s49_s27 = ssub.s32 %s5335_s25, %s4662_s24  ;;  %s52_s21 = sadd.s32 1, %s5336_s30 }
 0x1d3   : > { %p50_p8 = scmp.eq.s32.totalorder %s49_s27, 0  ;;  %p59_p13 = scmp.ne.s32.totalorder %s5336_s30, %s5337_s0 }
 0x1d4   : > { %p60_p0 = scmp.eq.s32.totalorder %s5335_s25, 0  ;;  %p65_p1 = scmp.ne.s32.totalorder %s5337_s0, %s5338_s2 }
 0x1d5   : > { %s4673_s18 = scalar_select %p50_p8, %s5336_s30, %s52_s21  }
 0x1d6   : > { %p4675_p3 = por %p60_p0, %p59_p13  ;;  %p5341_p2 = scmp.eq.s32.totalorder %s5339_s28, 0 }
 0x1d7   : > { %p451_p5 = scmp.eq.s32.totalorder %s5339_s28, 1  ;;  %p457_p7 = scmp.eq.s32.totalorder %s2781_s5, 1 }
 0x1d8   : > { %p4681_p6 = por %p5341_p2, %p65_p1  ;;  %p3230_p9 = scmp.lt.s32.totalorder %s5335_s25, 2 }
 0x1d9   : > { %s4688_s4 = sand.u32 1, %s5336_s30   ;;  %p4690_p10 = por %p451_p5, %p59_p13 }
 0x1da   : > { %p4694_p4 = por %p457_p7, %p65_p1  ;;  %s2800_s1 = sshll.u32 %s4688_s4, 3 }
 0x1db   : > { %s5343_s26 = scalar_select %p4690_p10, 1, 0 }
 0x1dc   : > { %s5344_s3 = scalar_select %p4694_p4, 1, 0 }
 0x1dd   : > { %s2899_s0 = sshll.u32 %s5335_s25, 7  ;;  %s5345_s28 = sld [smem:[#allocation50_spill]] }
 0x1de   : > { %s665_s30 = scalar_lea.vmem [#allocation2], %s2800_s1  ;;  %p4709_p11 = pnand %p3230_p9, %p4675_p3 }
 0x1df   : > { %s672_s29 = sshll.u32 %s665_s30, 4  ;;  %s662_s2 = scalar_lea.sflag [#allocation3], %s4688_s4  ;;  %s4705_s29 = int_to_ptr.vmem [resolvable:$true] %s672_s29 }
 0x1e0   : > { %p3947_p8 = pneg %p4709_p11 }
 0x1e3   : > { %s5346_s21 = smov %s5345_s28  ;;  %s4703_s5 = scalar_lea.hbm %s5345_s28, %s2899_s0 }
 0x1e4   : > { %s3945_s0 = scalar_lea.hbm %s4703_s5, 128  ;;  %s3950_s22 = scalar_lea.hbm %s5346_s21, 256 }
 0x1e5   : > { %p3946_p12 = scmp.ne.s32.totalorder %s4703_s5, %s3945_s0  ;;  %p3951_p1 = scmp.lt.u32.totalorder %s4703_s5, %s5346_s21 }
 0x1e6   : > { %p3952_p3 = scmp.lt.u32.totalorder %s3950_s22, %s3945_s0  ;;  %p3954_p5 = scmp.lt.u32.totalorder %s3945_s0, %s4703_s5 }
 0x1e7   : > { %p3948_p13 = pnand %p3947_p8, %p3946_p12 }
 0x1e8   : > { %p3953_p2 = por %p3952_p3, %p3951_p1 }
 0x1e9   : > { %p3949_p0 = pneg %p3948_p13 }
 0x1ea   : > { %p3955_p7 = por %p3954_p5, %p3953_p2 }
 0x1ec   : > { %p3956_p9 = pnand %p3955_p7, %p3949_p0 }
 0x1ee   : > { %3959 = shalt.err (!%p3956_p9)
}
 0x1ef   : > { %s3960_s6 = scalar_lea.vmem %s4705_s29, 128  ;;  %s4181_s1 = smov [#allocation2]  }
 0x1f0   : > { %p3961_p12 = scmp.ne.s32.totalorder %s4705_s29, %s3960_s6  ;;  %s3965_s27 = sshll.u32 %s4181_s1, 4  ;;  %s3966_s27 = int_to_ptr.vmem [resolvable:$false] %s3965_s27 }
 0x1f1   : > { %s3967_s28 = scalar_lea.vmem %s3966_s27, 256  ;;  %p3968_p10 = scmp.lt.s32.totalorder %s4705_s29, %s3966_s27 }
 0x1f2   : > { %p3963_p13 = pnand %p3961_p12, %p3947_p8  ;;  %p3969_p1 = scmp.lt.s32.totalorder %s3967_s28, %s3960_s6 }
 0x1f4   : > { %p3964_p4 = pneg %p3963_p13  ;;  %p3970_p3 = por %p3969_p1, %p3968_p10 }
 0x1f6   : > { %p3971_p2 = pnand %p3970_p3, %p3964_p4 }
 0x1f8   : > { %3974 = shalt.err (!%p3971_p2)
}
 0x1f9   : > { %s5348_s0 = smov 4   ;;  %s5349_s22 = smov 64  }
 0x1fa   : > { %3206 = dma.hbm_to_vmem [thread:$0]  (!%p4709_p11), %s4703_s5, 128, %s4705_s29, %s662_s2, %s5349_s22, %s5349_s22, %s5348_s0  }
 0x1fb   : > { %s2900_s30 = sshll.u32 %s5335_s25, 5  ;;  %s5350_s27 = sld [smem:[#allocation51_spill]] }
 0x1fc   : > { %s5352_s8 = sshll.u32 %s4688_s4, 1  ;;  %s5353_s11 = sand.u32 1, %s5335_s25  }
 0x1fd   : > { %s686_s9 = scalar_lea.vmem [#allocation5], %s5352_s8  ;;  %s4758_s12 = scalar_lea.sflag [#allocation6], %s5353_s11 }
 0x1fe   : > { %s693_s10 = sshll.u32 %s686_s9, 4  ;;  %s4754_s10 = int_to_ptr.vmem [resolvable:$true] %s693_s10 }
 0x201   : > { %s5351_s7 = smov %s5350_s27  ;;  %s4750_s28 = scalar_lea.hbm %s5350_s27, %s2900_s30 }
 0x202   : > { %s3975_s13 = scalar_lea.hbm %s4750_s28, 32  ;;  %s3980_s4 = scalar_lea.hbm %s5351_s7, 64 }
 0x203   : > { %p3976_p10 = scmp.ne.s32.totalorder %s4750_s28, %s3975_s13  ;;  %p3981_p5 = scmp.lt.u32.totalorder %s4750_s28, %s5351_s7 }
 0x204   : > { %p3982_p7 = scmp.lt.u32.totalorder %s3980_s4, %s3975_s13  ;;  %p3984_p12 = scmp.lt.u32.totalorder %s3975_s13, %s4750_s28 }
 0x205   : > { %p3978_p4 = pnand %p3976_p10, %p3947_p8 }
 0x206   : > { %p3983_p9 = por %p3982_p7, %p3981_p5 }
 0x207   : > { %p3979_p0 = pneg %p3978_p4 }
 0x208   : > { %p3985_p13 = por %p3984_p12, %p3983_p9 }
 0x20a   : > { %p3986_p1 = pnand %p3985_p13, %p3979_p0 }
 0x20c   : > { %3989 = shalt.err (!%p3986_p1)
}
 0x20d   : > { %s3990_s8 = scalar_lea.vmem %s4754_s10, 32  ;;  %s4182_s9 = smov [#allocation5]  }
 0x20e   : > { %p3991_p3 = scmp.ne.s32.totalorder %s4754_s10, %s3990_s8  ;;  %s3995_s11 = sshll.u32 %s4182_s9, 4  ;;  %s3996_s11 = int_to_ptr.vmem [resolvable:$false] %s3995_s11 }
 0x20f   : > { %s3997_s25 = scalar_lea.vmem %s3996_s11, 64  ;;  %p3998_p4 = scmp.lt.s32.totalorder %s4754_s10, %s3996_s11 }
 0x210   : > { %p3993_p2 = pnand %p3991_p3, %p3947_p8  ;;  %p3999_p5 = scmp.lt.s32.totalorder %s3997_s25, %s3990_s8 }
 0x212   : > { %p3994_p10 = pneg %p3993_p2  ;;  %p4000_p7 = por %p3999_p5, %p3998_p4 }
 0x214   : > { %p4001_p9 = pnand %p4000_p7, %p3994_p10 }
 0x216   : > { %4004 = shalt.err (!%p4001_p9)
}
 0x217   : > { %s4183_s13 = smov 16   ;;  %s4184_s22 = smov 1  }
 0x218   : > { %3209 = dma.hbm_to_vmem [thread:$0]  (!%p4709_p11), %s4750_s28, 32, %s4754_s10, %s4758_s12, %s4183_s13, %s4183_s13, %s4184_s22  }
 0x219   : > { %s5354_s30 = sld [smem:[#allocation49_spill]] }
 0x21f   : > { %p5355_p8 = scmp.ne.s32.totalorder %s5354_s30, 0 }
 0x220   : > { %s5356_s1 = sld [smem:[#allocation45_spill]] (!%p5355_p8) }
 0x221   : > { %705 = sbr.rel (%p5355_p8) target bundleno = 5248 (0x1480), region = 92 }
 0x226   : > { %s4787_s6 = sand.u32 (!%p5355_p8), 1, %s5356_s1  }
 0x227   : > { %s2807_s27 = sshll.u32 (!%p5355_p8), %s4787_s6, 3  ;;  %s708_s29 = scalar_lea.sflag (!%p5355_p8), [#allocation3], %s4787_s6 }
 0x228   : > { %s711_s5 = scalar_lea.vmem [#allocation2], %s2807_s27 }
 0x229   : > { %4074 = dma.done.wait (%p4681_p6), %s708_s29, 128  }
 0x22a   : > { %4076 = vsyncadd (%p4681_p6), %s708_s29, 4294967168  ;;  %s5357_s4 = sld [smem:[#allocation48_spill]]  ;;  %s2808_s12 = sshll.u32 %s4787_s6, 1 }
 0x22b   : > { %s720_s28 = scalar_lea.vmem [#allocation5], %s2808_s12 }
 0x230   : > { %s716_s10 = sand.u32 1, %s5357_s4  }
 0x231   : > { %s717_s19 = scalar_lea.sflag [#allocation6], %s716_s10 }
 0x232   : > { %4078 = dma.done.wait (%p4681_p6), %s717_s19, 32  }
 0x233   : > { %4080 = vsyncadd (%p4681_p6), %s717_s19, 4294967264  ;;  %p5358_p11 = scmp.eq.s32.totalorder %s5357_s4, 0 }
 0x235   : > { %4082 = dma.done.wait (%p5358_p11), [#allocation6], 128   ;;  %p5359_p0 = pmov %p5358_p11 }
 0x237   : > { %4084 = vsyncadd (%p5359_p0), [#allocation6], 4294967168  ;;  %p5360_p12 = pmov %p5359_p0 }
 0x238   : > { %p5361_p13 = pmov %p5359_p0 }
 0x239   : > { %4086 = dma.done.wait (%p5360_p12), [#allocation9], 160  }
 0x23a   : > { %4088 = vsyncadd (%p5361_p13), [#allocation9], 4294967136  ;;  %p5362_p1 = pmov %p5359_p0 }
 0x23b   : > { %p5363_p3 = pmov %p5359_p0 }
 0x23c   : > { %4090 = dma.done.wait (%p5362_p1), [#allocation12], 1056  }
 0x23d   : > { %4092 = vsyncadd (%p5363_p3), [#allocation12], 4294966240  ;;  %p5364_p6 = pmov %p5359_p0 }
 0x23e   : > { %p5365_p2 = pmov %p5359_p0 }
 0x23f   : > { %4094 = dma.done.wait (%p5364_p6), [#allocation15], 576  }
 0x240   : > { %4096 = vsyncadd (%p5365_p2), [#allocation15], 4294966720  ;;  %p5366_p10 = pmov %p5359_p0 }
 0x241   : > { %p5367_p4 = pmov %p5359_p0 }
 0x242   : > { %4098 = dma.done.wait (%p5366_p10), [#allocation18], 64  }
 0x243   : > { %4100 = vsyncadd (%p5367_p4), [#allocation18], 4294967232  ;;  %p5368_p5 = pmov %p5359_p0 }
 0x244   : > { %p5369_p7 = pmov %p5359_p0 }
 0x245   : > { %4102 = dma.done.wait (%p5368_p5), [#allocation21], 544  }
 0x246   : > { %4104 = vsyncadd (%p5369_p7), [#allocation21], 4294966752  ;;  %p5370_p9 = pmov %p5359_p0 }
 0x247   : > { %p5371_p8 = pmov %p5359_p0 }
 0x248   : > { %4106 = dma.done.wait (%p5370_p9), [#allocation24], 2080  }
 0x249   : > { %4108 = vsyncadd (%p5371_p8), [#allocation24], 4294965216  ;;  %p5372_p11 = pmov %p5359_p0 }
 0x24b   : > { %4110 = dma.done.wait (%p5372_p11), [#allocation27], 48  }
 0x24c   : > { %4112 = vsyncadd (%p5359_p0), [#allocation27], 4294967248  ;;  %p5373_p12 = pmov %p5359_p0 }
 0x24d   : > { %p5374_p13 = pmov %p5359_p0 }
 0x24e   : > { %4114 = dma.done.wait (%p5373_p12), [#allocation30], 16  }
 0x24f   : > { %4116 = vsyncadd (%p5374_p13), [#allocation30], 4294967280  ;;  %v4837_v0 = vld [vmem:[%s720_s28] ss:$0 sm:$0xff]  ;;  %v4839_v1 = vld [vmem:[%s720_s28 + $0x1] ss:$0 sm:$0xff]  ;;  %v866_v17 = vlaneseq }
 0x250   : > { %v2903_v2 = vld [vmem:[%s711_s5] sm:$0xff]   ;;  %vm870_vm0 = vcmask 261120   ;;  %s2825_s23 = sshll.u32 %s4787_s6, 4  ;;  %v4185_v14 = vmov 0   ;;  %v4857_v16 = vld [vmem:[#allocation7] sm:$0xff]  ;;  %s4186_s2 = smov 32  }
 0x251   : > { %v4841_v3 = vunpack.c.l.bf16 %v2903_v2  ;;  %v4843_v4 = vunpack.c.h.bf16 %v2903_v2  ;;  %v3390_v11 = vld [vmem:[#allocation13 + $0x4] ss:$8 sps:$4 sm:$0xff]   ;;  %v3392_v12 = vld [vmem:[#allocation13] ss:$8 sps:$4 sm:$0xff]   ;;  %v3393_v13 = vld [vmem:[#allocation13 + $0x14] ss:$8 sps:$4 sm:$0xff]   ;;  %986 = vmatprep.mubr.bf16.mxu0 %v4185_v14 }
 0x252   : > { %954 = vmatprep.subr.bf16.mxu0 %v3390_v11  ;;  %v3395_v15 = vld [vmem:[#allocation13 + $0x10] ss:$8 sps:$4 sm:$0xff]   ;;  %v4861_v18 = vand.u32 127, %v866_v17  ;;  %v2828_v36 = vld [vmem:[#allocation10] ss:$0 sm:$0xff]  ;;  %v4866_v46 = vshrl.u32 %v866_v17, 7 }
 0x253   : > { %v871_v5 = vsel %vm870_vm0, %v4841_v3, 0.0  ;;  %v880_v6 = vmul.f32 %v4841_v3, %v4841_v3  ;;  %v881_v7 = vmul.f32 %v4843_v4, %v4843_v4  ;;  %v874_v9 = vsel %vm870_vm0, %v4843_v4, 0.0  ;;  %955 = vmatpush1.bf16.msra.mxu0 %v3392_v12  ;;  %v2829_v41 = vld [vmem:[#allocation11] ss:$0 sm:$0xff]  ;;  %v4876_v54 = vld [vmem:[#allocation8] sm:$0xff]  ;;  %s4187_s0 = smov 96  }
 0x254   : > { %872 = vadd.xlane.f32.xlu0 %v871_v5  ;;  %956 = vmatprep.subr.bf16.mxu0 %v3393_v13  ;;  %v923_v47 = vsub.s32 0, %v4866_v46  ;;  %v919_v48 = vld [vmem:[#allocation14] ss:$2 sm:$0x3]  ;;  %v927_v49 = vsub.s32 1, %v4866_v46  ;;  %s4927_s8 = scalar_lea.vmem [#allocation31], %s2825_s23 }
 0x255   : > { %v882_v8 = vsel %vm870_vm0, %v880_v6, 0.0  ;;  %v885_v10 = vsel %vm870_vm0, %v881_v7, 0.0  ;;  %s4933_s9 = smov 0  }
 0x256   : > { %883 = vadd.xlane.f32.xlu1 %v882_v8  ;;  %v924_v50 = vrot.slane %v919_v48, %v923_v47  ;;  %v928_v51 = vrot.slane %v919_v48, %v927_v49 }
 0x257   : > { %957 = vmatpush1.bf16.msra.mxu0 %v3395_v15 }
 0x258   : > { %875 = vadd.xlane.f32.xlu0 %v874_v9 }
 0x25a   : > { %886 = vadd.xlane.f32.xlu1 %v885_v10 }
 0x26e   : > { %1016 = vrot.lane.b32.xlu0 %v4857_v16, %s4186_s2 }
 0x2e1   : > { %v873_v19 = vpop.xlane.xlu0 %872 }
 0x2e2   : > { %v878_v20 = vmul.f32 0.03125, %v873_v19 }
 0x2e3   : > { %v884_v21 = vpop.xlane.xlu1 %883 }
 0x2e4   : > { %v890_v22 = vmul.f32 %v878_v20, %v878_v20  ;;  %v888_v23 = vmul.f32 0.03125, %v884_v21  ;;  %v894_v33 = vsub.f32 %v4841_v3, %v878_v20 }
 0x2e5   : > { %v876_v24 = vpop.xlane.xlu0 %875 }
 0x2e6   : > { %v892_v25 = vsub.f32 %v888_v23, %v890_v22  ;;  %v879_v26 = vmul.f32 0.03125, %v876_v24 }
 0x2e7   : > { %v887_v27 = vpop.xlane.xlu1 %886 }
 0x2e8   : > { %v896_v28 = vadd.f32 1e-05, %v892_v25  ;;  %v891_v29 = vmul.f32 %v879_v26, %v879_v26  ;;  %v889_v30 = vmul.f32 0.03125, %v887_v27  ;;  %v895_v37 = vsub.f32 %v4843_v4, %v879_v26 }
 0x2e9   : > { %v4890_v5 = vpop.permute.xlu0 %1016 }
 0x2ea   : > { %3396 = vrsqrt.f32 %v896_v28  ;;  %v893_v31 = vsub.f32 %v889_v30, %v891_v29 }
 0x2ec   : > { %v897_v32 = vadd.f32 1e-05, %v893_v31 }
 0x2ee   : > { %3398 = vrsqrt.f32 %v897_v32 }
 0x2f4   : > { %v3397_v34 = vpop.eup %3396 }
 0x2f5   : > { %v900_v35 = vmul.f32 %v3397_v34, %v894_v33 }
 0x2f7   : > { %v906_v40 = vmul.f32 %v2828_v36, %v900_v35 }
 0x2f8   : > { %v3399_v38 = vpop.eup %3398 }
 0x2f9   : > { %v901_v39 = vmul.f32 %v3399_v38, %v895_v37  ;;  %v912_v43 = vadd.f32 %v2829_v41, %v906_v40 }
 0x2fb   : > { %v907_v42 = vmul.f32 %v2828_v36, %v901_v39 }
 0x2fd   : > { %v913_v44 = vadd.f32 %v2829_v41, %v907_v42 }
 0x2ff   : > { %v918_v45 = vpack.c.bf16 %v913_v44, %v912_v43  ;;  %v4929_v44 = vmov 0.0  }
 0x301   : > { %2834 = vmatmul.mubr.msk.bf16.vlgmr.msra.gmra.mrb[0].mxu0 %vm870_vm0, %v918_v45  ;;  %v4931_v45 = vmov 0.0  }
 0x3d4   : > { %v988_v52 = vpop.f32.mrb[0].mxu0 }
 0x3d5   : > { %v4874_v53 = vadd.f32 %v988_v52, %v924_v50  ;;  %v990_v55 = vpop.f32.mrb[1].mxu0 }
 0x3d6   : > { %v991_v56 = vadd.f32 %v990_v55, %v928_v51  ;;  %v992_v57 = vpop.f32.mrb[2].mxu0 }
 0x3d7   : > { %v1111_v58 = vpack.c.bf16 %v4874_v53, %v4874_v53  ;;  %v4880_v59 = vadd.f32 %v992_v57, %v924_v50  ;;  %v994_v60 = vpop.f32.mrb[3].mxu0  ;;  %v1019_v7 = vmul.f32 %v4890_v5, %v4874_v53  ;;  %v997_v20 = vmul.f32 %v4874_v53, %v4857_v16 }
 0x3d8   : > { %v1021_v61 = vmul.f32 %v991_v56, %v4876_v54  ;;  %v995_v62 = vadd.f32 %v994_v60, %v928_v51 }
 0x3d9   : > { %v1112_v63 = vpack.c.bf16 %v4880_v59, %v4880_v59  ;;  %v1020_v8 = vmul.f32 %v4890_v5, %v4880_v59  ;;  %v998_v23 = vmul.f32 %v4880_v59, %v4857_v16 }
 0x3da   : > { %1025 = vrot.lane.b32.xlu1 %v1021_v61, %s4186_s2  ;;  %v1022_v2 = vmul.f32 %v995_v62, %v4876_v54 }
 0x3de   : > { %1027 = vrot.lane.b32.xlu1 %v1022_v2, %s4186_s2 }
 0x3e2   : > { %1000 = vrot.lane.b32.xlu1 %v4876_v54, %s4187_s0 }
 0x44c   : > { %v1026_v6 = vpop.permute.xlu1 %1025 }
 0x44d   : > { %v1031_v10 = vadd.f32 %v1026_v6, %v1019_v7 }
 0x450   : > { %v1028_v9 = vpop.permute.xlu1 %1027 }
 0x451   : > { %v1032_v11 = vadd.f32 %v1028_v9, %v1020_v8 }
 0x453   : > { %v3363_v12 = vpack.i.bf16 %v1032_v11, %v1031_v10 }
 0x454   : > { %v4896_v13 = vpop.permute.xlu1 %1000 }
 0x455   : > { %v1003_v15 = vmul.f32 %v4896_v13, %v4874_v53  ;;  %3364 = vrot.lane.b32.xlu0 %v3363_v12, %s4187_s0  ;;  %v1004_v17 = vmul.f32 %v4896_v13, %v4880_v59 }
 0x457   : > { %1007 = vrot.lane.b32.xlu1 %v1003_v15, %s4186_s2 }
 0x459   : > { %1009 = vrot.lane.b32.xlu0 %v1004_v17, %s4186_s2 }
 0x4c7   : > { %v3365_v19 = vpop.permute.xlu0 %3364 }
 0x4c8   : > { %3369 = vxpose.xlu1.b32.start.end [1/1] (short) (narrow) %v3365_v19, 32 }
 0x4c9   : > { %v1008_v21 = vpop.permute.xlu1 %1007 }
 0x4ca   : > { %v4907_v22 = vadd.f32 %v1008_v21, %v997_v20 }
 0x4cb   : > { %v1010_v24 = vpop.permute.xlu0 %1009 }
 0x4cc   : > { %v1033_v25 = vpack.c.bf16 %v4907_v22, %v4907_v22  ;;  %v4913_v26 = vadd.f32 %v1010_v24, %v998_v23 }
 0x4ce   : > { %v1034_v27 = vpack.c.bf16 %v4913_v26, %v4913_v26 }
 0x548   : > { %v3370_v28 = vpop.trf.xlu1 }
 0x549   : > { %v3374_v29 = vunpack.i.h.bf16 %v3370_v28  ;;  %v3371_v30 = vunpack.i.l.bf16 %v3370_v28 }
 0x54c   : > { %v3375_v31 = vpop.trf.xlu1 }
 0x54d   : > { %v3379_v32 = vunpack.i.h.bf16 %v3375_v31  ;;  %v3376_v33 = vunpack.i.l.bf16 %v3375_v31 }
 0x54f   : > { %v4917_v34 = vpack.c.bf16 %v3376_v33, %v3371_v30  ;;  %v4919_v35 = vpack.c.bf16 %v3379_v32, %v3374_v29 }
 0x550   : > { %v3380_v36 = vpop.trf.xlu1 }
 0x551   : > { %v3384_v37 = vunpack.i.h.bf16 %v3380_v36  ;;  %v3381_v38 = vunpack.i.l.bf16 %v3380_v36 }
 0x554   : > { %v3385_v39 = vpop.trf.xlu1 }
 0x555   : > { %v3389_v40 = vunpack.i.h.bf16 %v3385_v39  ;;  %v3386_v41 = vunpack.i.l.bf16 %v3385_v39 }
 0x557   : > { %v4921_v42 = vpack.c.bf16 %v3386_v41, %v3381_v38  ;;  %v4923_v43 = vpack.c.bf16 %v3389_v40, %v3384_v37 }
 0x558 LB: >> { %v4188_v48 = vmov 0.0   ;;  %s2835_s11 = sshll.u32 %s4147_s9, 4  ;;  %vm4189_vm1 = vmmov 0   ;;  %s4190_s13 = smov 64   ;;  %vm1219_vm5 = vcmask 64512   ;;  %vm1246_vm6 = vcmask 1043456   ;;  %s4147_s9 = sphi %s4933_s9, %s1118_s9   ;;  %v4143_v45 = vphi %v4931_v45, %v5376_v45   ;;  %v4139_v44 = vphi %v4929_v44, %v5375_v44  }
 0x559   : >> { %2956 = vmatprep.subr.bf16.mxu0 %v4188_v48  ;;  %2964 = vmatprep.subr.bf16.mxu1 %v4188_v48  ;;  %v1122_v50 = vstv %s2835_s11  ;;  %s1124_s25 = sadd.s32 16, %s2835_s11  ;;  %s1118_s9 = sadd.s32 1, %s4147_s9  }
 0x55a   : >> { %2957 = vmatpush3.bf16.msra.mxu0 %v4917_v34  ;;  %2965 = vmatpush3.bf16.msra.mxu1 %v4919_v35  ;;  %vm1123_vm2 = vcmp.ge.s32.totalorder %v4861_v18, %v1122_v50  ;;  %v1125_v51 = vstv %s1124_s25  ;;  %p1115_p1 = scmp.ge.s32.totalorder %s1118_s9, 2  }
 0x55b   : >> { %2958 = vmatprep.subr.bf16.mxu0 %v4188_v48  ;;  %2966 = vmatprep.subr.bf16.mxu1 %v4188_v48  ;;  %vm1126_vm3 = vcmp.lt.s32.totalorder %v4861_v18, %v1125_v51  ;;  %vm4192_vm7 = vmmov (%p1115_p1), 0   ;;  %s5103_s22 = smov (%p1115_p1), 0  }
 0x55c   : >> { %2960 = vmatprep.mubr.msk.bf16.mxu0 %vm4189_vm1, %v4188_v48  ;;  %2968 = vmatprep.mubr.msk.bf16.mxu1 %vm4189_vm1, %v4188_v48  ;;  %vm1127_vm4 = vmand %vm1123_vm2, %vm1126_vm3 }
 0x55d   : >> { %v4953_v52 = vsel %vm1127_vm4, 1.0, %v4188_v48  ;;  %1241 = vrot.lane.b32.xlu1 %v1111_v58, %s4190_s13  ;;  %v2844_v58 = vld [vmem:[#allocation17] ss:$0 sm:$0xff] (%p1115_p1) }
 0x55e   : >> { %2959 = vmatpush3.bf16.msra.mxu0 %v4921_v42  ;;  %2967 = vmatpush3.bf16.msra.mxu1 %v4923_v43  ;;  %v1130_v55 = vpack.c.bf16 %v4953_v52, %v4953_v52 }
 0x55f   : >> { %2972 = vmatprep.subr.bf16.mxu0 %v4188_v48  ;;  %2978 = vmatprep.subr.bf16.mxu1 %v4188_v48 }
 0x560   : >> { %v1131_v56 = vmul.bf16 %v1130_v55, %v1033_v25  ;;  %v1132_v57 = vmul.bf16 %v1130_v55, %v1034_v27 }
 0x561   : >> { %1291 = vrot.lane.b32.xlu1 %v1112_v63, %s4190_s13 }
 0x562   : >> { %2961 = vmatmul.mubr.msk.bf16.vlgmr.msra.gmra.mrb[0].mxu0 %vm870_vm0, %v1131_v56  ;;  %2969 = vmatmul.mubr.msk.bf16.vlgmr.msra.gmra.mrb[0].mxu1 %vm870_vm0, %v1132_v57 }
 0x563   : >> { %2974 = vmatprep.mubr.msk.bf16.mxu0 %vm4189_vm1, %v4188_v48  ;;  %2980 = vmatprep.mubr.msk.bf16.mxu1 %vm4189_vm1, %v4188_v48 }
 0x5cf   : >> { %v1242_v17 = vpop.permute.xlu1 %1241 }
 0x5d0   : >> { %v1248_v19 = vsel %vm1246_vm6, %v1242_v17, 0  ;;  %v3437_v17 = vld [vmem:[#allocation22] sm:$0xff] (%p1115_p1)  }
 0x5d1   : >> { %2973 = vmatpush3.bf16.msra.mxu0 %v1248_v19  ;;  %v3438_v19 = vld [vmem:[#allocation22 + $0x8] sm:$0xff] (%p1115_p1)  }
 0x5d3   : >> { %v1292_v20 = vpop.permute.xlu1 %1291 }
 0x5d4   : >> { %v1297_v21 = vsel %vm1246_vm6, %v1292_v20, 0 }
 0x5d5   : >> { %2979 = vmatpush3.bf16.msra.mxu1 %v1297_v21 }
 0x635   : >> { %v1170_v60 = vpop.f32.mrb[0].mxu0  ;;  %v1213_v61 = vpop.f32.mrb[0].mxu1 }
 0x636   : >> { %v1171_v62 = vadd.f32 %v4837_v0, %v1170_v60  ;;  %v2962_v2 = vpop.f32.mrb[1].mxu0  ;;  %v1214_v6 = vadd.f32 %v4839_v1, %v1213_v61  ;;  %v2970_v7 = vpop.f32.mrb[1].mxu1 }
 0x637   : >> { %v1173_v8 = vpop.f32.mrb[2].mxu0  ;;  %v1216_v9 = vpop.f32.mrb[2].mxu1 }
 0x638   : >> { %v2963_v10 = vpop.f32.mrb[3].mxu0  ;;  %v2971_v11 = vpop.f32.mrb[3].mxu1  ;;  %v1220_v12 = vsel %vm1219_vm5, %v1171_v62, -inf  ;;  %v1223_v15 = vsel %vm1219_vm5, %v1214_v6, -inf }
 0x639   : >> { %1221 = vmax.xlane.f32.xlu0 %v1220_v12  ;;  %v3436_v12 = vld [vmem:[#allocation16 + $0x8] sm:$0xff] (%p1115_p1)  }
 0x63d   : >> { %1224 = vmax.xlane.f32.xlu0 %v1223_v15 }
 0x6c6   : >> { %v1222_v23 = vpop.xlane.xlu0 %1221 }
 0x6c7   : >> { %v1226_v24 = vsub.f32 %v1171_v62, %v1222_v23 }
 0x6c9   : >> { %v1228_v28 = vmul.f32 1.442695, %v1226_v24 }
 0x6ca   : >> { %v1225_v29 = vpop.xlane.xlu0 %1224 }
 0x6cb   : >> { %3400 = vpow2.f32 %v1228_v28  ;;  %v1227_v30 = vsub.f32 %v1214_v6, %v1225_v29 }
 0x6cd   : >> { %v1230_v31 = vmul.f32 1.442695, %v1227_v30 }
 0x6cf   : >> { %3402 = vpow2.f32 %v1230_v31 }
 0x6d5   : >> { %v3401_v32 = vpop.eup %3400 }
 0x6d6   : >> { %v1232_v33 = vsel %vm1219_vm5, %v3401_v32, 0.0  ;;  %v1238_v36 = vpack.c.bf16 %v3401_v32, %v3401_v32 }
 0x6d7   : >> { %1233 = vadd.xlane.f32.xlu0 %v1232_v33 }
 0x6d8   : >> { %2975 = vmatmul.mubr.msk.bf16.vlgmr.msra.gmra.mrb[4].mxu0 %vm1219_vm5, %v1238_v36 }
 0x6d9   : >> { %v3403_v37 = vpop.eup %3402 }
 0x6da   : >> { %v1235_v38 = vsel %vm1219_vm5, %v3403_v37, 0.0  ;;  %v1239_v39 = vpack.c.bf16 %v3403_v37, %v3403_v37 }
 0x6db   : >> { %1236 = vadd.xlane.f32.xlu1 %v1235_v38 }
 0x6dc   : >> { %2981 = vmatmul.mubr.msk.bf16.vlgmr.msra.gmra.mrb[4].mxu1 %vm1219_vm5, %v1239_v39 }
 0x764   : >> { %v1234_v40 = vpop.xlane.xlu0 %1233 }
 0x765   : >> { %3404 = vrcp.f32 %v1234_v40 }
 0x768   : >> { %v1237_v41 = vpop.xlane.xlu1 %1236 }
 0x769   : >> { %3406 = vrcp.f32 %v1237_v41 }
 0x76f   : >> { %v3405_v48 = vpop.eup %3404 }
 0x770   : >> { %v1341_v50 = vmul.f32 %v3405_v48, %v4953_v52 }
 0x773   : >> { %v3407_v51 = vpop.eup %3406 }
 0x774   : >> { %v1342_v2 = vmul.f32 %v3407_v51, %v4953_v52  ;;  %v3435_v52 = vld [vmem:[#allocation16] sm:$0xff] (%p1115_p1)  }
 0x7ab   : >> { %v1284_v55 = vpop.f32.mrb[4].mxu0 }
 0x7ac   : >> { %v1343_v56 = vmul.f32 %v1341_v50, %v1284_v55  ;;  %v2976_v57 = vpop.f32.mrb[5].mxu0  ;;  %v2845_v50 = vld [vmem:[#allocation19] ss:$0 sm:$0xff] (%p1115_p1) }
 0x7ad   : >> { %v1287_v60 = vpop.f32.mrb[6].mxu0 }
 0x7ae   : >> { %v1345_v61 = vadd.f32 %v4143_v45, %v1343_v56   ;;  %v2977_v62 = vpop.f32.mrb[7].mxu0  ;;  %1117 = sbr.rel (!%p1115_p1) target bundleno = 1368 (0x558), region = 233  ;;  %v2846_v60 = vld [vmem:[#allocation20] ss:$0 sm:$0xff] (%p1115_p1) }
 0x7af   : >> { %v1333_v6 = vpop.f32.mrb[4].mxu1 }
 0x7b0   : >> { %v1344_v7 = vmul.f32 %v1342_v2, %v1333_v6  ;;  %v2982_v8 = vpop.f32.mrb[5].mxu1  ;;  %v5376_v45 = vmov %v1345_v61 }
 0x7b1   : >> { %v1336_v9 = vpop.f32.mrb[6].mxu1  ;;  %v4191_v45 = vmov (%p1115_p1), 0.0   ;;  %v3440_v8 = vld [vmem:[#allocation25 + $0x8] sm:$0xff] (%p1115_p1)  }
 0x7b2   : >> { %v1346_v10 = vadd.f32 %v4139_v44, %v1344_v7   ;;  %v2983_v11 = vpop.f32.mrb[7].mxu1  ;;  %2984 = vmatprep.subr.bf16.mxu1 (%p1115_p1), %v4191_v45  ;;  %3000 = vmatprep.subr.bf16.mxu0 (%p1115_p1), %v4191_v45  ;;  %v3439_v7 = vld [vmem:[#allocation25] sm:$0xff] (%p1115_p1)   ;;  %v3441_v9 = vld [vmem:[#allocation25 + $0x10] sm:$0xff] (%p1115_p1)  }
 0x7b3   : > { %2988 = vmatprep.mubr.msk.bf16.mxu1 (%p1115_p1), %vm4192_vm7, %v4191_v45  ;;  %3016 = vmatprep.mubr.msk.bf16.mxu0 (%p1115_p1), %vm4192_vm7, %v4191_v45  ;;  %v3443_v11 = vld [vmem:[#allocation25 + $0x20] sm:$0xff] (%p1115_p1)  }
 0x7b4   : >> { %v5375_v44 = vmov %v1346_v10  ;;  %2985 = vmatpush3.bf16.msra.mxu1 (%p1115_p1), %v3435_v52  ;;  %v1351_v15 = vpack.c.bf16 (%p1115_p1), %v1346_v10, %v1345_v61  ;;  %3001 = vmatpush3.bf16.msra.mxu0 (%p1115_p1), %v3439_v7  ;;  %v3442_v10 = vld [vmem:[#allocation25 + $0x18] sm:$0xff] (%p1115_p1)   ;;  %v3444_v52 = vld [vmem:[#allocation25 + $0x28] sm:$0xff] (%p1115_p1)  }
 0x7b5   : > { %2986 = vmatprep.subr.bf16.mxu1 %v4191_v45  ;;  %3002 = vmatprep.subr.bf16.mxu0 %v4191_v45 }
 0x7b8   : > { %2987 = vmatpush3.bf16.msra.mxu1 %v3436_v12  ;;  %3003 = vmatpush3.bf16.msra.mxu0 %v3440_v8  ;;  %v3446_v12 = vld [vmem:[#allocation25 + $0x38] sm:$0xff]  }
 0x7b9   : > { %2992 = vmatprep.subr.bf16.mxu1 %v4191_v45  ;;  %3004 = vmatprep.subr.bf16.mxu0 %v4191_v45 }
 0x7bb   : > { %2989 = vmatmul.mubr.msk.bf16.vlgmr.msra.gmra.mrb[0].mxu1 %vm870_vm0, %v1351_v15  ;;  %v2847_v15 = vld [vmem:[#allocation23] ss:$0 sm:$0xff] }
 0x7bc   : > { %2996 = vmatprep.mubr.msk.bf16.mxu1 %vm4192_vm7, %v4191_v45  ;;  %2993 = vmatpush3.bf16.msra.mxu1 %v3437_v17 }
 0x7bd   : > { %2994 = vmatprep.subr.bf16.mxu1 %v4191_v45  ;;  %3005 = vmatpush3.bf16.msra.mxu0 %v3441_v9 }
 0x7be   : > { %3006 = vmatprep.subr.bf16.mxu0 %v4191_v45 }
 0x7c0   : > { %2995 = vmatpush3.bf16.msra.mxu1 %v3438_v19 }
 0x7c1   : > { %3007 = vmatpush3.bf16.msra.mxu0 %v3442_v10 }
 0x7c2   : > { %3008 = vmatprep.subr.bf16.mxu0 %v4191_v45 }
 0x7c5   : > { %3009 = vmatpush3.bf16.msra.mxu0 %v3443_v11 }
 0x7c6   : > { %3010 = vmatprep.subr.bf16.mxu0 %v4191_v45 }
 0x7c9   : > { %3011 = vmatpush3.bf16.msra.mxu0 %v3444_v52 }
 0x7ca   : > { %3012 = vmatprep.subr.bf16.mxu0 %v4191_v45 }
 0x88e   : > { %v1401_v53 = vpop.f32.mrb[0].mxu1 }
 0x88f   : > { %v1408_v59 = vadd.f32 %v4841_v3, %v1401_v53  ;;  %v2990_v63 = vpop.f32.mrb[1].mxu1 }
 0x890   : > { %v1404_v22 = vpop.f32.mrb[2].mxu1 }
 0x891   : > { %v5006_v25 = vadd.f32 %v2844_v58, %v1408_v59  ;;  %v1409_v26 = vadd.f32 %v4843_v4, %v1404_v22  ;;  %v2991_v27 = vpop.f32.mrb[3].mxu1 }
 0x893   : > { %v5009_v34 = vadd.f32 %v2844_v58, %v1409_v26  ;;  %v1419_v35 = vsel %vm870_vm0, %v5006_v25, 0.0  ;;  %v1427_v42 = vmul.f32 %v5006_v25, %v5006_v25 }
 0x894   : > { %1420 = vadd.xlane.f32.xlu0 %v1419_v35 }
 0x895   : > { %v1429_v43 = vsel %vm870_vm0, %v1427_v42, 0.0  ;;  %v1428_v3 = vmul.f32 %v5009_v34, %v5009_v34  ;;  %v1422_v44 = vsel %vm870_vm0, %v5009_v34, 0.0 }
 0x896   : > { %1430 = vadd.xlane.f32.xlu1 %v1429_v43 }
 0x897   : > { %v1432_v4 = vsel %vm870_vm0, %v1428_v3, 0.0 }
 0x898   : > { %1423 = vadd.xlane.f32.xlu0 %v1422_v44 }
 0x89a   : > { %1433 = vadd.xlane.f32.xlu1 %v1432_v4 }
 0x921   : > { %v1421_v20 = vpop.xlane.xlu0 %1420 }
 0x922   : > { %v1425_v21 = vmul.f32 0.03125, %v1421_v20 }
 0x923   : > { %v1431_v23 = vpop.xlane.xlu1 %1430 }
 0x924   : > { %v1437_v24 = vmul.f32 %v1425_v21, %v1425_v21  ;;  %v1435_v28 = vmul.f32 0.03125, %v1431_v23  ;;  %v1441_v40 = vsub.f32 %v5006_v25, %v1425_v21 }
 0x925   : > { %v1424_v29 = vpop.xlane.xlu0 %1423 }
 0x926   : > { %v1439_v30 = vsub.f32 %v1435_v28, %v1437_v24  ;;  %v1426_v31 = vmul.f32 0.03125, %v1424_v29 }
 0x927   : > { %v1434_v32 = vpop.xlane.xlu1 %1433 }
 0x928   : > { %v1443_v33 = vadd.f32 1e-05, %v1439_v30  ;;  %v1438_v36 = vmul.f32 %v1426_v31, %v1426_v31  ;;  %v1436_v37 = vmul.f32 0.03125, %v1434_v32  ;;  %v1442_v51 = vsub.f32 %v5009_v34, %v1426_v31 }
 0x92a   : > { %3453 = vrsqrt.f32 %v1443_v33  ;;  %v1440_v38 = vsub.f32 %v1436_v37, %v1438_v36  ;;  %v2859_v37 = vld [vmem:[#allocation26] ss:$0 sm:$0xff] }
 0x92c   : > { %v1444_v39 = vadd.f32 1e-05, %v1440_v38 }
 0x92e   : > { %3455 = vrsqrt.f32 %v1444_v39 }
 0x934   : > { %v3454_v41 = vpop.eup %3453 }
 0x935   : > { %v1447_v48 = vmul.f32 %v3454_v41, %v1441_v40 }
 0x937   : > { %v1453_v57 = vmul.f32 %v2845_v50, %v1447_v48 }
 0x938   : > { %v3456_v55 = vpop.eup %3455 }
 0x939   : > { %v1448_v56 = vmul.f32 %v3456_v55, %v1442_v51  ;;  %v1459_v62 = vadd.f32 %v2846_v60, %v1453_v57 }
 0x93b   : > { %v1454_v61 = vmul.f32 %v2845_v50, %v1448_v56 }
 0x93d   : > { %v1460_v2 = vadd.f32 %v2846_v60, %v1454_v61  ;;  %v3447_v61 = vld [vmem:[#allocation13 + $0x20] ss:$8 sps:$4 sm:$0xff]  }
 0x93f   : > { %v1465_v6 = vpack.c.bf16 %v1460_v2, %v1459_v62  ;;  %v3449_v62 = vld [vmem:[#allocation13 + $0x24] ss:$8 sps:$4 sm:$0xff]   ;;  %v3452_v2 = vld [vmem:[#allocation13 + $0x34] ss:$8 sps:$4 sm:$0xff]  }
 0x940   : > { %1746 = vmatprep.subr.bf16.mxu1 %v3449_v62 }
 0x941   : > { %2997 = vmatmul.mubr.msk.bf16.vlgmr.msra.gmra.mrb[4].mxu1 %vm870_vm0, %v1465_v6  ;;  %v3450_v6 = vld [vmem:[#allocation13 + $0x30] ss:$8 sps:$4 sm:$0xff]  }
 0x942   : > { %1778 = vmatprep.mubr.bf16.mxu1 %v4185_v14  ;;  %v3445_v14 = vld [vmem:[#allocation25 + $0x30] sm:$0xff]   ;;  %1747 = vmatpush1.bf16.msra.mxu1 %v3447_v61 }
 0x943   : > { %3013 = vmatpush3.bf16.msra.mxu0 %v3445_v14  ;;  %1748 = vmatprep.subr.bf16.mxu1 %v3452_v2 }
 0x944   : > { %3014 = vmatprep.subr.bf16.mxu0 %v4191_v45 }
 0x946   : > { %1749 = vmatpush1.bf16.msra.mxu1 %v3450_v6 }
 0x947   : > { %3015 = vmatpush3.bf16.msra.mxu0 %v3446_v12 }
 0xa14   : > { %v1520_v53 = vpop.f32.mrb[4].mxu1 }
 0xa15   : > { %v1521_v58 = vadd.f32 %v2847_v15, %v1520_v53  ;;  %v2998_v59 = vpop.f32.mrb[5].mxu1 }
 0xa16   : > { %v1523_v63 = vpop.f32.mrb[6].mxu1 }
 0xa17   : > { %v1527_v22 = vmul.f32 %v1521_v58, %v1521_v58  ;;  %v1524_v26 = vadd.f32 %v2847_v15, %v1523_v63  ;;  %v2999_v27 = vpop.f32.mrb[7].mxu1 }
 0xa19   : > { %v1529_v35 = vmul.f32 %v1527_v22, %v1521_v58  ;;  %v1528_v42 = vmul.f32 %v1524_v26, %v1524_v26 }
 0xa1b   : > { %v1531_v43 = vmul.f32 0.044715, %v1529_v35  ;;  %v1530_v3 = vmul.f32 %v1528_v42, %v1524_v26  ;;  %v2860_v35 = vld [vmem:[#allocation10 + $0x1] ss:$0 sm:$0xff] }
 0xa1d   : > { %v1533_v44 = vadd.f32 %v1531_v43, %v1521_v58  ;;  %v1532_v4 = vmul.f32 0.044715, %v1530_v3 }
 0xa1f   : > { %v1535_v17 = vmul.f32 0.7978846, %v1533_v44  ;;  %v1534_v19 = vadd.f32 %v1532_v4, %v1524_v26 }
 0xa21   : > { %3457 = vtanh.f32 %v1535_v17  ;;  %v1536_v20 = vmul.f32 0.7978846, %v1534_v19  ;;  %v2861_v17 = vld [vmem:[#allocation11 + $0x1] ss:$0 sm:$0xff] }
 0xa23   : > { %3459 = vtanh.f32 %v1536_v20 }
 0xa2b   : > { %v3458_v21 = vpop.eup %3457 }
 0xa2c   : > { %v1539_v23 = vadd.f32 1.0, %v3458_v21 }
 0xa2d   : > { %v3460_v24 = vpop.eup %3459 }
 0xa2e   : > { %v1540_v28 = vadd.f32 1.0, %v3460_v24  ;;  %v1541_v29 = vmul.f32 0.5, %v1539_v23  ;;  %v1711_v24 = vld [vmem:[#allocation14 + $0x1] ss:$2 sm:$0x3] }
 0xa30   : > { %v1542_v30 = vmul.f32 0.5, %v1540_v28  ;;  %v1543_v31 = vmul.f32 %v1541_v29, %v1521_v58  ;;  %v1716_v28 = vrot.slane %v1711_v24, %v923_v47  ;;  %v1720_v29 = vrot.slane %v1711_v24, %v927_v49 }
 0xa32   : > { %v1544_v32 = vmul.f32 %v1542_v30, %v1524_v26 }
 0xa34   : > { %v1561_v33 = vpack.c.bf16 %v1544_v32, %v1543_v31 }
 0xa36   : > { %3017 = vmatmul.mubr.bf16.vlgmr.msra.gmra.mrb[0].mxu0 %v1561_v33 }
 0xb09   : > { %v1644_v36 = vpop.f32.mrb[0].mxu0 }
 0xb0a   : > { %v1651_v38 = vadd.f32 %v1644_v36, %v5006_v25  ;;  %v3018_v39 = vpop.f32.mrb[1].mxu0 }
 0xb0b   : > { %v1647_v40 = vpop.f32.mrb[2].mxu0 }
 0xb0c   : > { %v5034_v41 = vadd.f32 %v2859_v37, %v1651_v38  ;;  %v1652_v48 = vadd.f32 %v1647_v40, %v5009_v34  ;;  %v3019_v50 = vpop.f32.mrb[3].mxu0 }
 0xb0e   : > { %v5037_v51 = vadd.f32 %v2859_v37, %v1652_v48  ;;  %v1662_v55 = vsel %vm870_vm0, %v5034_v41, 0.0  ;;  %v1670_v56 = vmul.f32 %v5034_v41, %v5034_v41 }
 0xb0f   : > { %1663 = vadd.xlane.f32.xlu0 %v1662_v55 }
 0xb10   : > { %v1665_v57 = vsel %vm870_vm0, %v5037_v51, 0.0  ;;  %v1671_v25 = vmul.f32 %v5037_v51, %v5037_v51  ;;  %v1672_v60 = vsel %vm870_vm0, %v1670_v56, 0.0 }
 0xb11   : > { %1666 = vadd.xlane.f32.xlu1 %v1665_v57 }
 0xb12   : > { %v1675_v34 = vsel %vm870_vm0, %v1671_v25, 0.0 }
 0xb13   : > { %1673 = vadd.xlane.f32.xlu0 %v1672_v60 }
 0xb15   : > { %1676 = vadd.xlane.f32.xlu1 %v1675_v34 }
 0xb9c   : > { %v1664_v7 = vpop.xlane.xlu0 %1663 }
 0xb9d   : > { %v1668_v8 = vmul.f32 0.03125, %v1664_v7 }
 0xb9e   : > { %v1667_v9 = vpop.xlane.xlu1 %1666 }
 0xb9f   : > { %v1669_v10 = vmul.f32 0.03125, %v1667_v9  ;;  %v1680_v52 = vmul.f32 %v1668_v8, %v1668_v8  ;;  %v1684_v26 = vsub.f32 %v5034_v41, %v1668_v8 }
 0xba0   : > { %v1674_v11 = vpop.xlane.xlu0 %1673 }
 0xba1   : > { %v1678_v14 = vmul.f32 0.03125, %v1674_v11  ;;  %v1681_v15 = vmul.f32 %v1669_v10, %v1669_v10  ;;  %v1685_v42 = vsub.f32 %v5037_v51, %v1669_v10 }
 0xba2   : > { %v1677_v12 = vpop.xlane.xlu1 %1676 }
 0xba3   : > { %v1682_v53 = vsub.f32 %v1678_v14, %v1680_v52  ;;  %v1679_v58 = vmul.f32 0.03125, %v1677_v12 }
 0xba5   : > { %v1686_v59 = vadd.f32 1e-05, %v1682_v53  ;;  %v1683_v63 = vsub.f32 %v1679_v58, %v1681_v15 }
 0xba7   : > { %3461 = vrsqrt.f32 %v1686_v59  ;;  %v1687_v22 = vadd.f32 1e-05, %v1683_v63 }
 0xba9   : > { %3463 = vrsqrt.f32 %v1687_v22 }
 0xbb1   : > { %v3462_v27 = vpop.eup %3461 }
 0xbb2   : > { %v1690_v43 = vmul.f32 %v3462_v27, %v1684_v26 }
 0xbb3   : > { %v3464_v3 = vpop.eup %3463 }
 0xbb4   : > { %v1691_v44 = vmul.f32 %v3464_v3, %v1685_v42  ;;  %v1696_v4 = vmul.f32 %v2860_v35, %v1690_v43  ;;  %v5099_v43 = vmov 0.0   ;;  %v5101_v3 = vmov 0.0  }
 0xbb6   : > { %v1697_v19 = vmul.f32 %v2860_v35, %v1691_v44  ;;  %v1702_v20 = vadd.f32 %v2861_v17, %v1696_v4 }
 0xbb8   : > { %v1703_v21 = vadd.f32 %v2861_v17, %v1697_v19 }
 0xbba   : > { %v1709_v23 = vpack.c.bf16 %v1703_v21, %v1702_v20 }
 0xbbc   : > { %2866 = vmatmul.mubr.msk.bf16.vlgmr.msra.gmra.mrb[8].mxu1 %vm870_vm0, %v1709_v23 }
 0xc8f   : > { %v1780_v30 = vpop.f32.mrb[8].mxu1 }
 0xc90   : > { %v5056_v31 = vadd.f32 %v1780_v30, %v1716_v28  ;;  %v1782_v32 = vpop.f32.mrb[9].mxu1 }
 0xc91   : > { %v1783_v33 = vadd.f32 %v1782_v32, %v1720_v29  ;;  %v1784_v36 = vpop.f32.mrb[10].mxu1 }
 0xc92   : > { %v1895_v37 = vpack.c.bf16 %v5056_v31, %v5056_v31  ;;  %v5060_v38 = vadd.f32 %v1784_v36, %v1716_v28  ;;  %v1786_v39 = vpop.f32.mrb[11].mxu1  ;;  %v1803_v55 = vmul.f32 %v5056_v31, %v4890_v5  ;;  %v1791_v6 = vmul.f32 %v5056_v31, %v4896_v13 }
 0xc93   : > { %v1805_v40 = vmul.f32 %v1783_v33, %v4876_v54  ;;  %v1787_v48 = vadd.f32 %v1786_v39, %v1720_v29  ;;  %v1789_v7 = vmul.f32 %v5056_v31, %v4857_v16 }
 0xc94   : > { %v1896_v47 = vpack.c.bf16 %v5060_v38, %v5060_v38  ;;  %v1792_v49 = vmul.f32 %v5060_v38, %v4896_v13  ;;  %v1804_v56 = vmul.f32 %v5060_v38, %v4890_v5 }
 0xc95   : > { %v1806_v46 = vmul.f32 %v1787_v48, %v4876_v54  ;;  %1809 = vrot.lane.b32.xlu0 %v1805_v40, %s4186_s2  ;;  %v1790_v54 = vmul.f32 %v5060_v38, %v4857_v16 }
 0xc97   : > { %1811 = vrot.lane.b32.xlu1 %v1806_v46, %s4186_s2 }
 0xc99   : > { %1797 = vrot.lane.b32.xlu0 %v1792_v49, %s4186_s2 }
 0xd07   : > { %v1810_v50 = vpop.permute.xlu0 %1809 }
 0xd08   : > { %v1815_v25 = vadd.f32 %v1810_v50, %v1803_v55 }
 0xd09   : > { %v1812_v57 = vpop.permute.xlu1 %1811 }
 0xd0a   : > { %v1816_v60 = vadd.f32 %v1812_v57, %v1804_v56 }
 0xd0b   : > { %v1798_v34 = vpop.permute.xlu0 %1797 }
 0xd0c   : > { %v5077_v61 = vadd.f32 %v1798_v34, %v1790_v54  ;;  %v3408_v62 = vpack.i.bf16 %v1816_v60, %v1815_v25 }
 0xd0e   : > { %v1818_v2 = vpack.c.bf16 %v5077_v61, %v5077_v61  ;;  %3409 = vrot.lane.b32.xlu1 %v3408_v62, %s4187_s0 }
 0xd12   : > { %1795 = vrot.lane.b32.xlu1 %v1791_v6, %s4186_s2 }
 0xd80   : > { %v3410_v5 = vpop.permute.xlu1 %3409 }
 0xd81   : > { %3414 = vxpose.xlu1.b32.start.end [1/1] (short) (narrow) %v3410_v5, 32 }
 0xd84   : > { %v1796_v8 = vpop.permute.xlu1 %1795 }
 0xd85   : > { %v5087_v9 = vadd.f32 %v1796_v8, %v1789_v7 }
 0xd87   : > { %v1817_v10 = vpack.c.bf16 %v5087_v9, %v5087_v9 }
 0xe01   : > { %v3415_v11 = vpop.trf.xlu1 }
 0xe02   : > { %v3419_v52 = vunpack.i.h.bf16 %v3415_v11  ;;  %v3416_v14 = vunpack.i.l.bf16 %v3415_v11 }
 0xe05   : > { %v3420_v12 = vpop.trf.xlu1 }
 0xe06   : > { %v3424_v15 = vunpack.i.h.bf16 %v3420_v12  ;;  %v3421_v53 = vunpack.i.l.bf16 %v3420_v12 }
 0xe08   : > { %v5091_v13 = vpack.c.bf16 %v3421_v53, %v3416_v14  ;;  %v5093_v58 = vpack.c.bf16 %v3424_v15, %v3419_v52 }
 0xe09   : > { %v3425_v59 = vpop.trf.xlu1 }
 0xe0a   : > { %v3429_v63 = vunpack.i.h.bf16 %v3425_v59  ;;  %v3426_v16 = vunpack.i.l.bf16 %v3425_v59 }
 0xe0d   : > { %v3430_v22 = vpop.trf.xlu1 }
 0xe0e   : > { %v3434_v26 = vunpack.i.h.bf16 %v3430_v22  ;;  %v3431_v27 = vunpack.i.l.bf16 %v3430_v22 }
 0xe10   : > { %v5095_v35 = vpack.c.bf16 %v3431_v27, %v3426_v16  ;;  %v5097_v42 = vpack.c.bf16 %v3434_v26, %v3429_v63 }
 0xe11 LB: >> { %v4193_v44 = vmov 0.0   ;;  %s2867_s30 = sshll.u32 %s4159_s22, 4  ;;  %vm4194_vm8 = vmmov 0   ;;  %s4195_s27 = smov 64   ;;  %s4159_s22 = sphi %s5103_s22, %s1902_s22   ;;  %v4155_v3 = vphi %v5101_v3, %v5378_v3   ;;  %v4151_v43 = vphi %v5099_v43, %v5377_v43  }
 0xe12   : >> { %3020 = vmatprep.subr.bf16.mxu0 %v4193_v44  ;;  %3028 = vmatprep.subr.bf16.mxu1 %v4193_v44  ;;  %v1906_v4 = vstv %s2867_s30  ;;  %s1908_s1 = sadd.s32 16, %s2867_s30  ;;  %s1902_s22 = sadd.s32 1, %s4159_s22  }
 0xe13   : >> { %3021 = vmatpush3.bf16.msra.mxu0 %v5091_v13  ;;  %3029 = vmatpush3.bf16.msra.mxu1 %v5093_v58  ;;  %vm1907_vm9 = vcmp.ge.s32.totalorder %v4861_v18, %v1906_v4  ;;  %v1909_v17 = vstv %s1908_s1  ;;  %p1899_p3 = scmp.ge.s32.totalorder %s1902_s22, 2  }
 0xe14   : >> { %3022 = vmatprep.subr.bf16.mxu0 %v4193_v44  ;;  %3030 = vmatprep.subr.bf16.mxu1 %v4193_v44  ;;  %vm1910_vm10 = vcmp.lt.s32.totalorder %v4861_v18, %v1909_v17  ;;  %s5379_s29 = sld [smem:[#allocation48_spill]] (%p1899_p3)  ;;  %s2511_s4 = sshll.u32 (%p1899_p3), %s4927_s8, 4  ;;  %s5215_s4 = int_to_ptr.vmem [resolvable:$true] %s2511_s4 }
 0xe15   : >> { %3024 = vmatprep.mubr.msk.bf16.mxu0 %vm4194_vm8, %v4193_v44  ;;  %3032 = vmatprep.mubr.msk.bf16.mxu1 %vm4194_vm8, %v4193_v44  ;;  %vm1911_vm11 = vmand %vm1907_vm9, %vm1910_vm10  ;;  %s5380_s19 = sld [smem:[#allocation64_spill]] (%p1899_p3)  ;;  %s2498_s23 = scalar_lea.sflag (%p1899_p3), [#allocation4], %s4787_s6 }
 0xe16   : >> { %v5123_v19 = vsel %vm1911_vm11, 1.0, %v4193_v44  ;;  %2025 = vrot.lane.b32.xlu1 %v1895_v37, %s4195_s27  ;;  %s4005_s2 = scalar_lea.vmem (%p1899_p3), %s5215_s4, 256  ;;  %p5381_p2 = scmp.ne.s32.totalorder (%p1899_p3), %s5343_s26, 0 }
 0xe17   : >> { %3023 = vmatpush3.bf16.msra.mxu0 %v5095_v35  ;;  %3031 = vmatpush3.bf16.msra.mxu1 %v5097_v42  ;;  %v1914_v20 = vpack.c.bf16 %v5123_v19, %v5123_v19  ;;  %v3475_v35 = vld [vmem:[#allocation22 + $0x10] sm:$0xff] (%p1899_p3)   ;;  %v3476_v42 = vld [vmem:[#allocation22 + $0x18] sm:$0xff] (%p1899_p3)   ;;  %p4006_p6 = scmp.ne.s32.totalorder (%p1899_p3), %s5215_s4, %s4005_s2  ;;  %s4196_s0 = smov (%p1899_p3), [#allocation31]  }
 0xe18   : >> { %3036 = vmatprep.subr.bf16.mxu0 %v4193_v44  ;;  %3042 = vmatprep.subr.bf16.mxu1 %v4193_v44  ;;  %s4009_s9 = sshll.u32 (%p1899_p3), %s4196_s0, 4  ;;  %s4010_s9 = int_to_ptr.vmem [resolvable:$false] %s4009_s9 }
 0xe19   : >> { %v1915_v21 = vmul.bf16 %v1914_v20, %v1817_v10  ;;  %v1916_v23 = vmul.bf16 %v1914_v20, %v1818_v2  ;;  %p4007_p10 = pnand (%p1899_p3), %p4006_p6, %p5381_p2  ;;  %s4011_s11 = scalar_lea.vmem (%p1899_p3), %s4010_s9, 512 }
 0xe1a   : >> { %2075 = vrot.lane.b32.xlu1 %v1896_v47, %s4195_s27  ;;  %s2901_s5 = sshll.u32 (%p1899_p3), %s5379_s29, 8  ;;  %p4012_p5 = scmp.lt.s32.totalorder (%p1899_p3), %s5215_s4, %s4010_s9 }
 0xe1b   : >> { %3025 = vmatmul.mubr.msk.bf16.vlgmr.msra.gmra.mrb[0].mxu0 %vm870_vm0, %v1915_v21  ;;  %3033 = vmatmul.mubr.msk.bf16.vlgmr.msra.gmra.mrb[0].mxu1 %vm870_vm0, %v1916_v23  ;;  %s5213_s28 = scalar_lea.hbm (%p1899_p3), %s5380_s19, %s2901_s5  ;;  %p4008_p4 = pneg (%p1899_p3), %p4007_p10 }
 0xe1c   : >> { %3038 = vmatprep.mubr.msk.bf16.mxu0 %vm4194_vm8, %v4193_v44  ;;  %3044 = vmatprep.mubr.msk.bf16.mxu1 %vm4194_vm8, %v4193_v44  ;;  %p4013_p7 = scmp.lt.s32.totalorder (%p1899_p3), %s4011_s11, %s4005_s2 }
 0xe1e   : > { %p4014_p9 = por (%p1899_p3), %p4013_p7, %p4012_p5 }
 0xe20   : > { %p4015_p8 = pnand (%p1899_p3), %p4014_p9, %p4008_p4 }
 0xe88   : >> { %v2026_v50 = vpop.permute.xlu1 %2025 }
 0xe89   : >> { %v2032_v55 = vsel %vm1246_vm6, %v2026_v50, 0 }
 0xe8a   : >> { %3037 = vmatpush3.bf16.msra.mxu0 %v2032_v55 }
 0xe8b   : > { %3064 = vmatprep.subr.bf16.mxu0 (%p1899_p3), %v4191_v45 }
 0xe8c   : >> { %v2076_v56 = vpop.permute.xlu1 %2075 }
 0xe8d   : >> { %v2081_v57 = vsel %vm1246_vm6, %v2076_v56, 0 }
 0xe8e   : >> { %3043 = vmatpush3.bf16.msra.mxu1 %v2081_v57 }
 0xe8f   : > { %3048 = vmatprep.subr.bf16.mxu1 (%p1899_p3), %v4191_v45 }
 0xeee   : >> { %v1954_v24 = vpop.f32.mrb[0].mxu0  ;;  %v1997_v28 = vpop.f32.mrb[0].mxu1 }
 0xeef   : >> { %v1955_v29 = vadd.f32 %v4837_v0, %v1954_v24  ;;  %v3026_v30 = vpop.f32.mrb[1].mxu0  ;;  %v1998_v32 = vadd.f32 %v4839_v1, %v1997_v28  ;;  %v3034_v33 = vpop.f32.mrb[1].mxu1  ;;  %v2876_v1 = vld [vmem:[#allocation17 + $0x1] ss:$0 sm:$0xff] (%p1899_p3) }
 0xef0   : >> { %v1957_v36 = vpop.f32.mrb[2].mxu0  ;;  %v2000_v39 = vpop.f32.mrb[2].mxu1 }
 0xef1   : >> { %v3027_v40 = vpop.f32.mrb[3].mxu0  ;;  %v3035_v48 = vpop.f32.mrb[3].mxu1  ;;  %v2004_v46 = vsel %vm1219_vm5, %v1955_v29, -inf  ;;  %v2007_v49 = vsel %vm1219_vm5, %v1998_v32, -inf }
 0xef2   : >> { %2005 = vmax.xlane.f32.xlu0 %v2004_v46 }
 0xef6   : >> { %2008 = vmax.xlane.f32.xlu0 %v2007_v49 }
 0xf7f   : >> { %v2006_v25 = vpop.xlane.xlu0 %2005 }
 0xf80   : >> { %v2010_v60 = vsub.f32 %v1955_v29, %v2006_v25 }
 0xf82   : >> { %v2012_v54 = vmul.f32 1.442695, %v2010_v60 }
 0xf83   : >> { %v2009_v34 = vpop.xlane.xlu0 %2008 }
 0xf84   : >> { %3465 = vpow2.f32 %v2012_v54  ;;  %v2011_v62 = vsub.f32 %v1998_v32, %v2009_v34 }
 0xf86   : >> { %v2014_v6 = vmul.f32 1.442695, %v2011_v62  ;;  %v2877_v62 = vld [vmem:[#allocation19 + $0x1] ss:$0 sm:$0xff] (%p1899_p3) }
 0xf88   : >> { %3467 = vpow2.f32 %v2014_v6 }
 0xf8e   : >> { %v3466_v5 = vpop.eup %3465 }
 0xf8f   : >> { %v2016_v7 = vsel %vm1219_vm5, %v3466_v5, 0.0  ;;  %v2022_v8 = vpack.c.bf16 %v3466_v5, %v3466_v5 }
 0xf90   : >> { %2017 = vadd.xlane.f32.xlu0 %v2016_v7 }
 0xf91   : >> { %3039 = vmatmul.mubr.msk.bf16.vlgmr.msra.gmra.mrb[4].mxu0 %vm1219_vm5, %v2022_v8 }
 0xf92   : >> { %v3468_v11 = vpop.eup %3467  ;;  %3080 = vmatprep.mubr.msk.bf16.mxu0 (%p1899_p3), %vm4192_vm7, %v4191_v45 }
 0xf93   : >> { %v2019_v52 = vsel %vm1219_vm5, %v3468_v11, 0.0  ;;  %v2023_v14 = vpack.c.bf16 %v3468_v11, %v3468_v11  ;;  %v2878_v11 = vld [vmem:[#allocation20 + $0x1] ss:$0 sm:$0xff] (%p1899_p3) }
 0xf94   : >> { %2020 = vadd.xlane.f32.xlu1 %v2019_v52 }
 0xf95   : >> { %3045 = vmatmul.mubr.msk.bf16.vlgmr.msra.gmra.mrb[4].mxu1 %vm1219_vm5, %v2023_v14 }
 0xf96   : > { %3052 = vmatprep.mubr.msk.bf16.mxu1 (%p1899_p3), %vm4192_vm7, %v4191_v45 }
0x101d   : >> { %v2018_v12 = vpop.xlane.xlu0 %2017 }
0x101e   : >> { %3469 = vrcp.f32 %v2018_v12 }
0x1021   : >> { %v2021_v15 = vpop.xlane.xlu1 %2020 }
0x1022   : >> { %3471 = vrcp.f32 %v2021_v15 }
0x1028   : >> { %v3470_v53 = vpop.eup %3469 }
0x1029   : >> { %v2125_v59 = vmul.f32 %v3470_v53, %v5123_v19  ;;  %v3477_v53 = vld [vmem:[#allocation25 + $0x40] sm:$0xff] (%p1899_p3)  }
0x102a   : > { %3065 = vmatpush3.bf16.msra.mxu0 (%p1899_p3), %v3477_v53 }
0x102b   : > { %3066 = vmatprep.subr.bf16.mxu0 (%p1899_p3), %v4191_v45 }
0x102c   : >> { %v3472_v63 = vpop.eup %3471 }
0x102d   : >> { %v2126_v17 = vmul.f32 %v3472_v63, %v5123_v19  ;;  %v3474_v19 = vld [vmem:[#allocation16 + $0x18] sm:$0xff] (%p1899_p3)  }
0x102e   : > { %v3479_v63 = vld [vmem:[#allocation25 + $0x50] sm:$0xff] (%p1899_p3)  }
0x1064   : >> { %v2068_v16 = vpop.f32.mrb[4].mxu0 }
0x1065   : >> { %v2127_v22 = vmul.f32 %v2125_v59, %v2068_v16  ;;  %v3040_v26 = vpop.f32.mrb[5].mxu0  ;;  %v3478_v59 = vld [vmem:[#allocation25 + $0x48] sm:$0xff] (%p1899_p3)   ;;  %v3480_v16 = vld [vmem:[#allocation25 + $0x58] sm:$0xff] (%p1899_p3)  }
0x1066   : >> { %v2071_v27 = vpop.f32.mrb[6].mxu0  ;;  %3067 = vmatpush3.bf16.msra.mxu0 (%p1899_p3), %v3478_v59  ;;  %v3482_v26 = vld [vmem:[#allocation25 + $0x68] sm:$0xff] (%p1899_p3)   ;;  %v2892_v59 = vld [vmem:[#allocation28] ss:$0 sm:$0xff] (%p1899_p3) }
0x1067   : >> { %v2129_v44 = vadd.f32 %v4155_v3, %v2127_v22   ;;  %v3041_v4 = vpop.f32.mrb[7].mxu0  ;;  %1901 = sbr.rel (!%p1899_p3) target bundleno = 3601 (0xe11), region = 244  ;;  %3068 = vmatprep.subr.bf16.mxu0 (%p1899_p3), %v4191_v45  ;;  %v3481_v22 = vld [vmem:[#allocation25 + $0x60] sm:$0xff] (%p1899_p3)   ;;  %v3483_v27 = vld [vmem:[#allocation25 + $0x70] sm:$0xff] (%p1899_p3)  }
0x1068   : >> { %v2117_v20 = vpop.f32.mrb[4].mxu1  ;;  %v2879_v4 = vld [vmem:[#allocation23 + $0x1] ss:$0 sm:$0xff] (%p1899_p3) }
0x1069   : >> { %v2128_v21 = vmul.f32 %v2126_v17, %v2117_v20  ;;  %v3046_v23 = vpop.f32.mrb[5].mxu1  ;;  %v5378_v3 = vmov %v2129_v44 }
0x106a   : >> { %v2120_v24 = vpop.f32.mrb[6].mxu1  ;;  %v3473_v3 = vld [vmem:[#allocation16 + $0x10] sm:$0xff] (%p1899_p3)   ;;  %3069 = vmatpush3.bf16.msra.mxu0 (%p1899_p3), %v3479_v63 }
0x106b   : >> { %v2130_v28 = vadd.f32 %v4151_v43, %v2128_v21   ;;  %v3047_v29 = vpop.f32.mrb[7].mxu1  ;;  %3049 = vmatpush3.bf16.msra.mxu1 (%p1899_p3), %v3473_v3  ;;  %3070 = vmatprep.subr.bf16.mxu0 (%p1899_p3), %v4191_v45 }
0x106c   : > { %3050 = vmatprep.subr.bf16.mxu1 (%p1899_p3), %v4191_v45 }
0x106d   : >> { %v5377_v43 = vmov %v2130_v28  ;;  %v2136_v30 = vpack.c.bf16 (%p1899_p3), %v2130_v28, %v2129_v44  ;;  %v3484_v44 = vld [vmem:[#allocation25 + $0x78] sm:$0xff] (%p1899_p3)  }
0x106e   : > { %3071 = vmatpush3.bf16.msra.mxu0 %v3480_v16 }
0x106f   : > { %3051 = vmatpush3.bf16.msra.mxu1 %v3474_v19  ;;  %3072 = vmatprep.subr.bf16.mxu0 %v4191_v45 }
0x1070   : > { %3056 = vmatprep.subr.bf16.mxu1 %v4191_v45 }
0x1072   : > { %3053 = vmatmul.mubr.msk.bf16.vlgmr.msra.gmra.mrb[0].mxu1 %vm870_vm0, %v2136_v30  ;;  %3073 = vmatpush3.bf16.msra.mxu0 %v3481_v22 }
0x1073   : > { %3060 = vmatprep.mubr.msk.bf16.mxu1 %vm4192_vm7, %v4191_v45  ;;  %3057 = vmatpush3.bf16.msra.mxu1 %v3475_v35 }
0x1074   : > { %3058 = vmatprep.subr.bf16.mxu1 %v4191_v45  ;;  %3074 = vmatprep.subr.bf16.mxu0 %v4191_v45 }
0x1076   : > { %3075 = vmatpush3.bf16.msra.mxu0 %v3482_v26  ;;  %v2893_v26 = vld [vmem:[#allocation29] ss:$0 sm:$0xff] }
0x1077   : > { %3059 = vmatpush3.bf16.msra.mxu1 %v3476_v42  ;;  %3076 = vmatprep.subr.bf16.mxu0 %v4191_v45 }
0x107a   : > { %3077 = vmatpush3.bf16.msra.mxu0 %v3483_v27 }
0x107b   : > { %3078 = vmatprep.subr.bf16.mxu0 %v4191_v45 }
0x107e   : > { %3079 = vmatpush3.bf16.msra.mxu0 %v3484_v44 }
0x1145   : > { %v2186_v0 = vpop.f32.mrb[0].mxu1 }
0x1146   : > { %v2193_v18 = vadd.f32 %v2186_v0, %v5034_v41  ;;  %v3054_v31 = vpop.f32.mrb[1].mxu1 }
0x1147   : > { %v2189_v37 = vpop.f32.mrb[2].mxu1 }
0x1148   : > { %v5176_v38 = vadd.f32 %v2876_v1, %v2193_v18  ;;  %v2194_v47 = vadd.f32 %v2189_v37, %v5037_v51  ;;  %v3055_v61 = vpop.f32.mrb[3].mxu1 }
0x114a   : > { %v5179_v2 = vadd.f32 %v2876_v1, %v2194_v47  ;;  %v2204_v9 = vsel %vm870_vm0, %v5176_v38, 0.0  ;;  %v2212_v10 = vmul.f32 %v5176_v38, %v5176_v38 }
0x114b   : > { %2205 = vadd.xlane.f32.xlu0 %v2204_v9 }
0x114c   : > { %v2214_v13 = vsel %vm870_vm0, %v2212_v10, 0.0  ;;  %v2213_v41 = vmul.f32 %v5179_v2, %v5179_v2  ;;  %v2207_v58 = vsel %vm870_vm0, %v5179_v2, 0.0 }
0x114d   : > { %2215 = vadd.xlane.f32.xlu1 %v2214_v13 }
0x114e   : > { %v2217_v51 = vsel %vm870_vm0, %v2213_v41, 0.0 }
0x114f   : > { %2208 = vadd.xlane.f32.xlu0 %v2207_v58 }
0x1151   : > { %2218 = vadd.xlane.f32.xlu1 %v2217_v51 }
0x11d8   : > { %v2206_v43 = vpop.xlane.xlu0 %2205 }
0x11d9   : > { %v2210_v32 = vmul.f32 0.03125, %v2206_v43  ;;  %v2891_v43 = vld [vmem:[#allocation26 + $0x1] ss:$0 sm:$0xff] }
0x11da   : > { %v2216_v33 = vpop.xlane.xlu1 %2215 }
0x11db   : > { %v2222_v36 = vmul.f32 %v2210_v32, %v2210_v32  ;;  %v2220_v39 = vmul.f32 0.03125, %v2216_v33  ;;  %v2226_v60 = vsub.f32 %v5176_v38, %v2210_v32 }
0x11dc   : > { %v2209_v40 = vpop.xlane.xlu0 %2208 }
0x11dd   : > { %v2224_v48 = vsub.f32 %v2220_v39, %v2222_v36  ;;  %v2211_v46 = vmul.f32 0.03125, %v2209_v40 }
0x11de   : > { %v2219_v49 = vpop.xlane.xlu1 %2218 }
0x11df   : > { %v2228_v50 = vadd.f32 1e-05, %v2224_v48  ;;  %v2223_v55 = vmul.f32 %v2211_v46, %v2211_v46  ;;  %v2221_v56 = vmul.f32 0.03125, %v2219_v49  ;;  %v2227_v6 = vsub.f32 %v5179_v2, %v2211_v46 }
0x11e1   : > { %3485 = vrsqrt.f32 %v2228_v50  ;;  %v2225_v57 = vsub.f32 %v2221_v56, %v2223_v55 }
0x11e3   : > { %v2229_v25 = vadd.f32 1e-05, %v2225_v57 }
0x11e5   : > { %3487 = vrsqrt.f32 %v2229_v25 }
0x11eb   : > { %v3486_v54 = vpop.eup %3485 }
0x11ec   : > { %v2232_v34 = vmul.f32 %v3486_v54, %v2226_v60 }
0x11ee   : > { %v2238_v8 = vmul.f32 %v2877_v62, %v2232_v34 }
0x11ef   : > { %v3488_v5 = vpop.eup %3487 }
0x11f0   : > { %v2233_v7 = vmul.f32 %v3488_v5, %v2227_v6  ;;  %v2244_v14 = vadd.f32 %v2878_v11, %v2238_v8 }
0x11f2   : > { %v2239_v52 = vmul.f32 %v2877_v62, %v2233_v7 }
0x11f4   : > { %v2245_v12 = vadd.f32 %v2878_v11, %v2239_v52 }
0x11f6   : > { %v2251_v15 = vpack.c.bf16 %v2245_v12, %v2244_v14 }
0x11f8   : > { %3061 = vmatmul.mubr.msk.bf16.vlgmr.msra.gmra.mrb[4].mxu1 %vm870_vm0, %v2251_v15 }
0x12cb   : > { %v2306_v17 = vpop.f32.mrb[4].mxu1 }
0x12cc   : > { %v2307_v20 = vadd.f32 %v2879_v4, %v2306_v17  ;;  %v3062_v21 = vpop.f32.mrb[5].mxu1 }
0x12cd   : > { %v2309_v23 = vpop.f32.mrb[6].mxu1 }
0x12ce   : > { %v2313_v24 = vmul.f32 %v2307_v20, %v2307_v20  ;;  %v2310_v28 = vadd.f32 %v2879_v4, %v2309_v23  ;;  %v3063_v29 = vpop.f32.mrb[7].mxu1 }
0x12d0   : > { %v2315_v3 = vmul.f32 %v2313_v24, %v2307_v20  ;;  %v2314_v19 = vmul.f32 %v2310_v28, %v2310_v28 }
0x12d2   : > { %v2317_v30 = vmul.f32 0.044715, %v2315_v3  ;;  %v2316_v0 = vmul.f32 %v2314_v19, %v2310_v28 }
0x12d4   : > { %v2319_v1 = vadd.f32 %v2317_v30, %v2307_v20  ;;  %v2318_v18 = vmul.f32 0.044715, %v2316_v0 }
0x12d6   : > { %v2321_v31 = vmul.f32 0.7978846, %v2319_v1  ;;  %v2320_v37 = vadd.f32 %v2318_v18, %v2310_v28 }
0x12d8   : > { %3489 = vtanh.f32 %v2321_v31  ;;  %v2322_v47 = vmul.f32 0.7978846, %v2320_v37 }
0x12da   : > { %3491 = vtanh.f32 %v2322_v47 }
0x12e2   : > { %v3490_v45 = vpop.eup %3489 }
0x12e3   : > { %v2325_v61 = vadd.f32 1.0, %v3490_v45 }
0x12e4   : > { %v3492_v9 = vpop.eup %3491 }
0x12e5   : > { %v2326_v10 = vadd.f32 1.0, %v3492_v9  ;;  %v2327_v13 = vmul.f32 0.5, %v2325_v61 }
0x12e7   : > { %v2328_v41 = vmul.f32 0.5, %v2326_v10  ;;  %v2329_v58 = vmul.f32 %v2327_v13, %v2307_v20 }
0x12e9   : > { %v2330_v51 = vmul.f32 %v2328_v41, %v2310_v28 }
0x12eb   : > { %v2348_v35 = vpack.c.bf16 %v2330_v51, %v2329_v58 }
0x12ed   : > { %3081 = vmatmul.mubr.bf16.vlgmr.msra.gmra.mrb[0].mxu0 %v2348_v35 }
0x13c0   : > { %v2431_v42 = vpop.f32.mrb[0].mxu0 }
0x13c1   : > { %v2438_v32 = vadd.f32 %v2431_v42, %v5176_v38  ;;  %v3082_v33 = vpop.f32.mrb[1].mxu0 }
0x13c2   : > { %v2434_v36 = vpop.f32.mrb[2].mxu0 }
0x13c3   : > { %v2445_v39 = vadd.f32 %v2891_v43, %v2438_v32  ;;  %v2439_v40 = vadd.f32 %v2434_v36, %v5179_v2  ;;  %v3083_v48 = vpop.f32.mrb[3].mxu0 }
0x13c5   : > { %v2446_v46 = vadd.f32 %v2891_v43, %v2439_v40  ;;  %v2449_v49 = vsel %vm870_vm0, %v2445_v39, 0.0  ;;  %v2457_v50 = vmul.f32 %v2445_v39, %v2445_v39 }
0x13c6   : > { %2450 = vadd.xlane.f32.xlu0 %v2449_v49 }
0x13c7   : > { %v2452_v55 = vsel %vm870_vm0, %v2446_v46, 0.0  ;;  %v2458_v56 = vmul.f32 %v2446_v46, %v2446_v46  ;;  %v2459_v57 = vsel %vm870_vm0, %v2457_v50, 0.0 }
0x13c8   : > { %2453 = vadd.xlane.f32.xlu1 %v2452_v55 }
0x13c9   : > { %v2462_v38 = vsel %vm870_vm0, %v2458_v56, 0.0 }
0x13ca   : > { %2460 = vadd.xlane.f32.xlu0 %v2459_v57 }
0x13cc   : > { %2463 = vadd.xlane.f32.xlu1 %v2462_v38 }
0x1453   : > { %v2451_v25 = vpop.xlane.xlu0 %2450 }
0x1454   : > { %v2455_v60 = vmul.f32 0.03125, %v2451_v25 }
0x1455   : > { %v2454_v54 = vpop.xlane.xlu1 %2453 }
0x1456   : > { %v2456_v2 = vmul.f32 0.03125, %v2454_v54  ;;  %v2467_v62 = vmul.f32 %v2455_v60, %v2455_v60  ;;  %v2471_v15 = vsub.f32 %v2445_v39, %v2455_v60 }
0x1457   : > { %v2461_v34 = vpop.xlane.xlu0 %2460 }
0x1458   : > { %v2465_v6 = vmul.f32 0.03125, %v2461_v34  ;;  %v2468_v7 = vmul.f32 %v2456_v2, %v2456_v2  ;;  %v2472_v63 = vsub.f32 %v2446_v46, %v2456_v2 }
0x1459   : > { %v2464_v5 = vpop.xlane.xlu1 %2463 }
0x145a   : > { %v2469_v8 = vsub.f32 %v2465_v6, %v2467_v62  ;;  %v2466_v11 = vmul.f32 0.03125, %v2464_v5 }
0x145c   : > { %v2473_v52 = vadd.f32 1e-05, %v2469_v8  ;;  %v2470_v14 = vsub.f32 %v2466_v11, %v2468_v7 }
0x145e   : > { %3493 = vrsqrt.f32 %v2473_v52  ;;  %v2474_v12 = vadd.f32 1e-05, %v2470_v14 }
0x1460   : > { %3495 = vrsqrt.f32 %v2474_v12 }
0x1468   : > { %v3494_v53 = vpop.eup %3493 }
0x1469   : > { %v2477_v16 = vmul.f32 %v3494_v53, %v2471_v15 }
0x146a   : > { %v3496_v22 = vpop.eup %3495 }
0x146b   : > { %v2478_v27 = vmul.f32 %v3496_v22, %v2472_v63  ;;  %v2485_v44 = vmul.f32 %v2892_v59, %v2477_v16 }
0x146d   : > { %v2486_v4 = vmul.f32 %v2892_v59, %v2478_v27  ;;  %v2493_v17 = vadd.f32 %v2893_v26, %v2485_v44 }
0x146f   : > { %v2494_v20 = vadd.f32 %v2893_v26, %v2486_v4  ;;  %2495 = vst.msk [vmem:[%s4927_s8] sm:$0xff] %vm870_vm0, %v2493_v17 }
0x1471   : > { %2496 = vst.msk [vmem:[%s4927_s8 + $0x8] sm:$0xff] %vm870_vm0, %v2494_v20 }
0x1472   : > { %4018 = shalt.err (!%p4015_p8)
}
0x1473   : > { %s4019_s8 = scalar_lea.hbm %s5213_s28, 256  ;;  %s4023_s22 = scalar_lea.hbm %s5380_s19, 512 }
0x1474   : > { %p4020_p11 = scmp.ne.s32.totalorder %s5213_s28, %s4019_s8  ;;  %p4024_p13 = scmp.lt.u32.totalorder %s5213_s28, %s5380_s19 }
0x1475   : > { %p4025_p1 = scmp.lt.u32.totalorder %s4023_s22, %s4019_s8  ;;  %p4027_p6 = scmp.lt.u32.totalorder %s4019_s8, %s5213_s28 }
0x1476   : > { %p4021_p0 = pnand %p4020_p11, %p5381_p2 }
0x1477   : > { %p4026_p3 = por %p4025_p1, %p4024_p13 }
0x1478   : > { %p4022_p12 = pneg %p4021_p0 }
0x1479   : > { %p4028_p10 = por %p4027_p6, %p4026_p3 }
0x147b   : > { %p4029_p4 = pnand %p4028_p10, %p4022_p12 }
0x147d   : > { %4032 = shalt.err (!%p4029_p4)
}
0x147e   : > { %s4197_s27 = smov 128   ;;  %s4198_s29 = smov 8  }
0x147f   : > { %3152 = dma.vmem_to_hbm [thread:$0]  (%p5381_p2), %s5215_s4, 256, %s5213_s28, %s2498_s23, %s4197_s27, %s4197_s27, %s4198_s29  }
0x1480 PF: > { %s5382_s5 = sld [smem:[#allocation44_spill]]  ;;  %s5383_s10 = sld [smem:[#allocation47_spill]] }
0x1481   : > { %p5384_p5 = scmp.ne.s32.totalorder %s5344_s3, 0 }
0x1486   : > { %s2526_s12 = sand.u32 1, %s5382_s5   ;;  %p5385_p7 = scmp.ge.s32.totalorder %s5383_s10, 2 }
0x1487   : > { %s2527_s2 = scalar_lea.sflag [#allocation4], %s2526_s12 }
0x1488   : > { %p3211_p9 = pnand %p5385_p7, %p5384_p5 }
0x148a   : > { %4118 = dma.done.wait (!%p3211_p9), %s2527_s2, 256  }
0x148b   : > { %4120 = vsyncadd (!%p3211_p9), %s2527_s2, 4294967040  ;;  %s5386_s27 = sld [smem:[#allocation45_spill]]  ;;  %s5387_s28 = sld [smem:[#allocation46_spill]] }
0x148c   : > { %p42_p8 = scmp.ge.s32.totalorder %s4662_s24, 4   ;;  %s5388_s29 = smov %s4673_s18 }
0x148d   : > { %s5389_s30 = smov %s4662_s24 }
0x148e   :  { %44 = sbr.rel (!%p42_p8) target bundleno = 31 (0x1f), region = 255 }
0x1495   :  { %2532 = vsyncpa [#allocation3], 1 }
0x1496   :  { %2534 = vsyncpa [#allocation3 + $0x1], 1 }
0x1497   :  { %2535 = vsyncpa [#allocation6], 1 }
0x1498   :  { %2537 = vsyncpa [#allocation6 + $0x1], 1 }
0x1499   :  { %2538 = vsyncpa [#allocation9], 1 }
0x149a   :  { %2539 = vsyncpa [#allocation12], 1 }
0x149b   :  { %2540 = vsyncpa [#allocation15], 1 }
0x149c   :  { %2541 = vsyncpa [#allocation18], 1 }
0x149d   :  { %2542 = vsyncpa [#allocation21], 1 }
0x149e   :  { %2543 = vsyncpa [#allocation24], 1 }
0x149f   :  { %2544 = vsyncpa [#allocation27], 1 }
0x14a0   :  { %2545 = vsyncpa [#allocation30], 1 }
0x14a1   :  { %2546 = vsyncpa [#allocation4], 1 }
0x14a2   :  { %2548 = vsyncpa [#allocation4 + $0x1], 1 }

</bundles_post_ra>
